<compile_context>
chip_gen: v7x
topology: tpu7x:2x2x1
jax: 0.10.0
libtpu: 0.0.40
codegen_flags: <defaults>
</compile_context>

<pallas_src>
import functools

import jax
import jax.numpy as jnp
from jax.experimental import pallas as pl
from jax.experimental.pallas import tpu as pltpu

# Small, forward-consistent sizes (torch module uses nz, ngf, nc globals).
NZ, NGF, NC, KSZ = 16, 8, 3, 4
EPS = 1e-5      # BatchNorm2d default eps
LANE = 128


def _round_up(x, m):
    return (x + m - 1) // m * m


# --------------------------------------------------------- fused layer kernel

def _fused_layer_kernel(a_ref, w_ref, g_ref, b_ref, o_ref, sum_ref, ssq_ref,
                        *, act, use_bn, count, tm, n_chunks):
    """matmul -> (BN batch stats) -> BN affine + activation, fully fused.

    grid = (n_phases, n_m_tiles).  The (rows, Cp) output block is resident in
    VMEM for the whole grid (constant out index_map); it doubles as the
    accumulator for the post-matmul activations.
    """
    n_i = pl.num_programs(1)
    step = pl.program_id(0) * n_i + pl.program_id(1)
    n_steps = pl.num_programs(0) * n_i

    if use_bn:
        @pl.when(step == 0)
        def _():
            sum_ref[...] = jnp.zeros_like(sum_ref)
            ssq_ref[...] = jnp.zeros_like(ssq_ref)

    # bf16 x bf16 -> f32 accumulate on the MXU.
    y = jnp.dot(a_ref[...], w_ref[...], preferred_element_type=jnp.float32)

    row0 = pl.multiple_of(step * tm, tm)
    o_ref[pl.ds(row0, tm), :] = y

    if use_bn:
        sum_ref[...] += jnp.sum(y, axis=0, keepdims=True)
        ssq_ref[...] += jnp.sum(y * y, axis=0, keepdims=True)

    @pl.when(step == n_steps - 1)
    def _():
        if use_bn:
            inv = 1.0 / count                              # true (unpadded) count
            mean = sum_ref[...] * inv
            var = ssq_ref[...] * inv - mean * mean         # biased var, BN training
            scale = g_ref[...] * jax.lax.rsqrt(var + EPS)
            shift = b_ref[...] - mean * scale

        @pl.loop(0, n_chunks)                              # in-place epilogue
        def _(c):
            r0 = pl.multiple_of(c * tm, tm)
            yb = o_ref[pl.ds(r0, tm), :]
            if use_bn:
                yb = yb * scale + shift
            if act == "relu":
                yb = jnp.maximum(yb, 0.0)
            else:                                          # tanh
                yb = jnp.tanh(yb)
            o_ref[pl.ds(r0, tm), :] = yb


# ----------------------------------------------------- sub-pixel im2col glue

def _phase_taps(k, stride, padding):
    # For output phase r in [0, stride): list of (kernel_tap, input_offset)
    # such that input row = out_row//stride + input_offset contributes via tap.
    taps = []
    for r in range(stride):
        t = []
        for kk in range(k):
            if (r + padding - kk) % stride == 0:
                t.append((kk, (r + padding - kk) // stride))
        taps.append(t)
    return taps


def _phase_patches(x, w, stride, padding):
    """Sub-pixel im2col for ConvTranspose2d on an NHWC input.

    Returns patches (P, Mp, T*Cin) and weights (P, T*Cin, Cout), P = stride^2
    output phases.  Only kernel taps that touch real (non-dilation-zero) input
    samples are materialised, so stride-2 layers do 1/4 of the naive work.
    """
    N, H, W, Cin = x.shape
    Cout, k = w.shape[1], w.shape[2]
    Ho = (H - 1) * stride - 2 * padding + k
    Wo = (W - 1) * stride - 2 * padding + k
    assert Ho % stride == 0 and Wo % stride == 0 and k % stride == 0
    Hs, Ws = Ho // stride, Wo // stride

    taps = _phase_taps(k, stride, padding)
    offs = [o for t in taps for (_, o) in t]
    pad_lo = max(0, -min(offs))
    pad_hi_h = max(0, Hs - 1 + max(offs) - (H - 1))
    pad_hi_w = max(0, Ws - 1 + max(offs) - (W - 1))
    xp = jnp.pad(x, ((0, 0), (pad_lo, pad_hi_h), (pad_lo, pad_hi_w), (0, 0)))

    patch_list, wm_list = [], []
    for rh in range(stride):
        for rw in range(stride):
            cols, wts = [], []
            for (kh, oh) in taps[rh]:
                for (kw, ow) in taps[rw]:
                    r0, c0 = oh + pad_lo, ow + pad_lo
                    cols.append(xp[:, r0:r0 + Hs, c0:c0 + Ws, :])  # (N,Hs,Ws,Cin)
                    wts.append(w[:, :, kh, kw])                    # (Cin,Cout)
            pt = jnp.stack(cols, axis=3)                           # (N,Hs,Ws,T,Cin)
            patch_list.append(pt.reshape(N * Hs * Ws, -1))
            wm_list.append(jnp.stack(wts, axis=0).reshape(-1, Cout))
    patches = jnp.stack(patch_list, axis=0)                        # (P,Mp,T*Cin)
    wm = jnp.stack(wm_list, axis=0)                                # (P,T*Cin,Cout)
    return patches, wm, (N, Ho, Wo, Hs, Ws)


# -------------------------------------------------------------- layer wrapper

def conv_transpose_bn_act(x_nhwc, w, gamma, beta, stride, padding, act):
    c_out = w.shape[1]
    patches, wm, (N, Ho, Wo, Hs, Ws) = _phase_patches(x_nhwc, w, stride, padding)
    P, Mp, K = patches.shape
    Cp = _round_up(c_out, LANE)                       # lane-dense output channels

    tm = min(512, _round_up(Mp, 8))
    Mp_pad = _round_up(Mp, tm)
    if Mp_pad != Mp:
        # Zero rows contribute 0 to sum/ssq; the mean divides by the true
        # count, so BN stats remain exact for any batch size.
        patches = jnp.pad(patches, ((0, 0), (0, Mp_pad - Mp), (0, 0)))
    patches = patches.astype(jnp.bfloat16)
    wm = jnp.pad(wm, ((0, 0), (0, 0), (0, Cp - c_out))).astype(jnp.bfloat16)

    use_bn = gamma is not None
    if use_bn:
        g = jnp.pad(gamma, (0, Cp - c_out)).reshape(1, Cp).astype(jnp.float32)
        b = jnp.pad(beta, (0, Cp - c_out)).reshape(1, Cp).astype(jnp.float32)
    else:
        g = jnp.ones((1, Cp), jnp.float32)
        b = jnp.zeros((1, Cp), jnp.float32)

    n_i = Mp_pad // tm
    rows = P * Mp_pad
    # Resident output must fit comfortably in VMEM (4 MiB max for this net).
    assert rows * Cp * 4 <= 16 * 1024 * 1024

    kernel = functools.partial(
        _fused_layer_kernel, act=act, use_bn=use_bn,
        count=float(N * Ho * Wo), tm=tm, n_chunks=rows // tm)

    y = pl.pallas_call(
        kernel,
        out_shape=jax.ShapeDtypeStruct((rows, Cp), jnp.float32),
        grid_spec=pltpu.PrefetchScalarGridSpec(
            num_scalar_prefetch=0,
            grid=(P, n_i),
            in_specs=[
                pl.BlockSpec((None, tm, K), lambda ph, i: (ph, i, 0)),   # patches
                pl.BlockSpec((None, K, Cp), lambda ph, i: (ph, 0, 0)),   # weights
                pl.BlockSpec((1, Cp), lambda ph, i: (0, 0)),             # gamma
                pl.BlockSpec((1, Cp), lambda ph, i: (0, 0)),             # beta
            ],
            out_specs=pl.BlockSpec((rows, Cp), lambda ph, i: (0, 0)),    # resident
            scratch_shapes=[pltpu.VMEM((1, Cp), jnp.float32),
                            pltpu.VMEM((1, Cp), jnp.float32)]),
        compiler_params=pltpu.CompilerParams(
            dimension_semantics=("arbitrary", "arbitrary"),
            vmem_limit_bytes=32 * 1024 * 1024),
    )(patches, wm, g, b)

    # Drop M / channel padding, interleave the phases back into NHWC.
    y = y.reshape(P, Mp_pad, Cp)[:, :Mp, :c_out]
    y = y.reshape(stride, stride, N, Hs, Ws, c_out)
    return y.transpose(2, 3, 0, 4, 1, 5).reshape(N, Ho, Wo, c_out)


# ---------------------------------------------------------------- generator

def generator_forward(z, p):
    x = jnp.transpose(z, (0, 2, 3, 1))                     # NCHW -> NHWC (once)
    x = conv_transpose_bn_act(x, p["w1"], p["g1"], p["b1"], 1, 0, "relu")
    x = conv_transpose_bn_act(x, p["w2"], p["g2"], p["b2"], 2, 1, "relu")
    x = conv_transpose_bn_act(x, p["w3"], p["g3"], p["b3"], 2, 1, "relu")
    x = conv_transpose_bn_act(x, p["w4"], p["g4"], p["b4"], 2, 1, "relu")
    x = conv_transpose_bn_act(x, p["w5"], None, None, 2, 1, "tanh")
    return jnp.transpose(x, (0, 3, 1, 2))                  # NHWC -> NCHW (once)


def init_params(key):
    ks = jax.random.split(key, 5)

    def w(k, cin, cout):
        return jax.random.normal(k, (cin, cout, KSZ, KSZ), jnp.float32) * 0.02

    chans = [NGF * 8, NGF * 4, NGF * 2, NGF]
    params = {
        "w1": w(ks[0], NZ, NGF * 8),
        "w2": w(ks[1], NGF * 8, NGF * 4),
        "w3": w(ks[2], NGF * 4, NGF * 2),
        "w4": w(ks[3], NGF * 2, NGF),
        "w5": w(ks[4], NGF, NC),
    }
    for i, c in enumerate(chans, start=1):
        params[f"g{i}"] = jnp.ones((c,), jnp.float32)      # torch BN default affine
        params[f"b{i}"] = jnp.zeros((c,), jnp.float32)
    return params


if __name__ == "__main__":
    key = jax.random.PRNGKey(0)
    pkey, xkey = jax.random.split(key)
    params = init_params(pkey)
    z = jax.random.normal(xkey, (2, NZ, 1, 1), jnp.float32)   # (N, nz, 1, 1)

    out = jax.jit(generator_forward)(z, params)
    out = jax.block_until_ready(out)

    assert out.shape == (2, NC, 64, 64), out.shape
    assert bool(jnp.all(jnp.isfinite(out)))
    assert bool(jnp.all(jnp.abs(out) <= 1.0))                 # tanh range
    print("KERNEL_OK")
</pallas_src>

<mosaic_0001>
module attributes {stable_mosaic.version = 11 : i64} {
  func.func @_fused_layer_kernel(%arg0: i32, %arg1: i32, %arg2: memref<1x32x256xbf16, #tpu.memory_space<vmem>>, %arg3: memref<1x256x128xbf16, #tpu.memory_space<vmem>>, %arg4: memref<1x128xf32, #tpu.memory_space<vmem>>, %arg5: memref<1x128xf32, #tpu.memory_space<vmem>>, %arg6: memref<32x128xf32, #tpu.memory_space<vmem>>, %arg7: memref<1x128xf32, #tpu.memory_space<vmem>>, %arg8: memref<1x128xf32, #tpu.memory_space<vmem>>) attributes {dimension_semantics = [#tpu.dimension_semantics<arbitrary>, #tpu.dimension_semantics<arbitrary>], iteration_bounds = array<i64: 1, 1>, scalar_prefetch = 0 : i64, scratch_operands = 2 : i64, tpu.core_type = #tpu.core_type<tc>, window_params = [{transform_indices = @transform_0, window_bounds = array<i64: 1, 32, 256>}, {transform_indices = @transform_1, window_bounds = array<i64: 1, 256, 128>}, {pipeline_mode = #tpu.pipeline_mode<synchronous>, transform_indices = @transform_2, window_bounds = array<i64: 1, 128>}, {pipeline_mode = #tpu.pipeline_mode<synchronous>, transform_indices = @transform_3, window_bounds = array<i64: 1, 128>}, {pipeline_mode = #tpu.pipeline_mode<synchronous>, transform_indices = @transform_4, window_bounds = array<i64: 32, 128>}]} {
    %c1_i32 = arith.constant 1 : i32
    %0 = arith.muli %arg0, %c1_i32 : i32
    %1 = arith.addi %0, %arg1 : i32
    %c0_i32 = arith.constant 0 : i32
    %2 = arith.cmpi eq, %1, %c0_i32 : i32
    %3 = arith.extui %2 : i1 to i32
    %c0_i32_0 = arith.constant 0 : i32
    %4 = arith.cmpi ne, %3, %c0_i32_0 : i32
    scf.if %4 {
      %cst_19 = arith.constant 0.000000e+00 : f32
      %28 = vector.broadcast %cst_19 : f32 to vector<1x128xf32>
      %c0_20 = arith.constant 0 : index
      %c0_21 = arith.constant 0 : index
      %29 = vector.load %arg7[%c0_20, %c0_21] : memref<1x128xf32, #tpu.memory_space<vmem>>, vector<1x128xf32>
      tpu.vector_store %arg7[%c0_20, %c0_21], %28 {strides = array<i32>} : memref<1x128xf32, #tpu.memory_space<vmem>>, vector<1x128xf32>,
      %cst_22 = arith.constant 0.000000e+00 : f32
      %30 = vector.broadcast %cst_22 : f32 to vector<1x128xf32>
      %c0_23 = arith.constant 0 : index
      %c0_24 = arith.constant 0 : index
      %31 = vector.load %arg8[%c0_23, %c0_24] : memref<1x128xf32, #tpu.memory_space<vmem>>, vector<1x128xf32>
      tpu.vector_store %arg8[%c0_23, %c0_24], %30 {strides = array<i32>} : memref<1x128xf32, #tpu.memory_space<vmem>>, vector<1x128xf32>,
    } else {
    }
    %c0 = arith.constant 0 : index
    %c0_1 = arith.constant 0 : index
    %c0_2 = arith.constant 0 : index
    %5 = vector.load %arg2[%c0, %c0_1, %c0_2] : memref<1x32x256xbf16, #tpu.memory_space<vmem>>, vector<1x32x256xbf16>
    %6 = vector.shape_cast %5 : vector<1x32x256xbf16> to vector<32x256xbf16>
    %c0_3 = arith.constant 0 : index
    %c0_4 = arith.constant 0 : index
    %c0_5 = arith.constant 0 : index
    %7 = vector.load %arg3[%c0_3, %c0_4, %c0_5] : memref<1x256x128xbf16, #tpu.memory_space<vmem>>, vector<1x256x128xbf16>
    %8 = vector.shape_cast %7 : vector<1x256x128xbf16> to vector<256x128xbf16>
    %cst = arith.constant dense<0.000000e+00> : vector<32x128xf32>
    %9 = tpu.matmul %6, %8, %cst {dimension_numbers = #tpu.dot_dimension_numbers<[1], [0], [0], [1], [0, 0, 1, 1], [], []>} : vector<32x256xbf16>, vector<256x128xbf16>, vector<32x128xf32> -> vector<32x128xf32>
    %c32_i32 = arith.constant 32 : i32
    %10 = arith.muli %1, %c32_i32 : i32
    %11 = tpu.assume_multiple %10, 32 : i32
    %12 = arith.index_cast %11 : i32 to index
    %c0_6 = arith.constant 0 : index
    %13 = vector.load %arg6[%12, %c0_6] : memref<32x128xf32, #tpu.memory_space<vmem>>, vector<32x128xf32>
    tpu.vector_store %arg6[%12, %c0_6], %9 {strides = array<i32>} : memref<32x128xf32, #tpu.memory_space<vmem>>, vector<32x128xf32>,
    %c0_7 = arith.constant 0 : index
    %c0_8 = arith.constant 0 : index
    %14 = vector.load %arg7[%c0_7, %c0_8] : memref<1x128xf32, #tpu.memory_space<vmem>>, vector<1x128xf32>
    %cst_9 = arith.constant dense<0.000000e+00> : vector<128xf32>
    %15 = vector.multi_reduction <add>, %9, %cst_9 [0] : vector<32x128xf32> to vector<128xf32>
    %16 = vector.shape_cast %15 : vector<128xf32> to vector<1x128xf32>
    %17 = arith.addf %14, %16 : vector<1x128xf32>
    %c0_10 = arith.constant 0 : index
    %c0_11 = arith.constant 0 : index
    %18 = vector.load %arg7[%c0_10, %c0_11] : memref<1x128xf32, #tpu.memory_space<vmem>>, vector<1x128xf32>
    tpu.vector_store %arg7[%c0_10, %c0_11], %17 {strides = array<i32>} : memref<1x128xf32, #tpu.memory_space<vmem>>, vector<1x128xf32>,
    %c0_12 = arith.constant 0 : index
    %c0_13 = arith.constant 0 : index
    %19 = vector.load %arg8[%c0_12, %c0_13] : memref<1x128xf32, #tpu.memory_space<vmem>>, vector<1x128xf32>
    %20 = arith.mulf %9, %9 : vector<32x128xf32>
    %cst_14 = arith.constant dense<0.000000e+00> : vector<128xf32>
    %21 = vector.multi_reduction <add>, %20, %cst_14 [0] : vector<32x128xf32> to vector<128xf32>
    %22 = vector.shape_cast %21 : vector<128xf32> to vector<1x128xf32>
    %23 = arith.addf %19, %22 : vector<1x128xf32>
    %c0_15 = arith.constant 0 : index
    %c0_16 = arith.constant 0 : index
    %24 = vector.load %arg8[%c0_15, %c0_16] : memref<1x128xf32, #tpu.memory_space<vmem>>, vector<1x128xf32>
    tpu.vector_store %arg8[%c0_15, %c0_16], %23 {strides = array<i32>} : memref<1x128xf32, #tpu.memory_space<vmem>>, vector<1x128xf32>,
    %c0_i32_17 = arith.constant 0 : i32
    %25 = arith.cmpi eq, %1, %c0_i32_17 : i32
    %26 = arith.extui %25 : i1 to i32
    %c0_i32_18 = arith.constant 0 : i32
    %27 = arith.cmpi ne, %26, %c0_i32_18 : i32
    scf.if %27 {
      %c0_19 = arith.constant 0 : index
      %c0_20 = arith.constant 0 : index
      %28 = vector.load %arg7[%c0_19, %c0_20] : memref<1x128xf32, #tpu.memory_space<vmem>>, vector<1x128xf32>
      %cst_21 = arith.constant 3.125000e-02 : f32
      %29 = vector.broadcast %cst_21 : f32 to vector<1x128xf32>
      %30 = arith.mulf %28, %29 : vector<1x128xf32>
      %c0_22 = arith.constant 0 : index
      %c0_23 = arith.constant 0 : index
      %31 = vector.load %arg8[%c0_22, %c0_23] : memref<1x128xf32, #tpu.memory_space<vmem>>, vector<1x128xf32>
      %cst_24 = arith.constant 3.125000e-02 : f32
      %32 = vector.broadcast %cst_24 : f32 to vector<1x128xf32>
      %33 = arith.mulf %31, %32 : vector<1x128xf32>
      %34 = arith.mulf %30, %30 : vector<1x128xf32>
      %35 = arith.subf %33, %34 : vector<1x128xf32>
      %c0_25 = arith.constant 0 : index
      %c0_26 = arith.constant 0 : index
      %36 = vector.load %arg4[%c0_25, %c0_26] : memref<1x128xf32, #tpu.memory_space<vmem>>, vector<1x128xf32>
      %cst_27 = arith.constant 9.99999974E-6 : f32
      %37 = vector.broadcast %cst_27 : f32 to vector<1x128xf32>
      %38 = arith.addf %35, %37 : vector<1x128xf32>
      %39 = math.rsqrt %38 : vector<1x128xf32>
      %40 = arith.mulf %36, %39 : vector<1x128xf32>
      %c0_28 = arith.constant 0 : index
      %c0_29 = arith.constant 0 : index
      %41 = vector.load %arg5[%c0_28, %c0_29] : memref<1x128xf32, #tpu.memory_space<vmem>>, vector<1x128xf32>
      %42 = arith.mulf %30, %40 : vector<1x128xf32>
      %43 = arith.subf %41, %42 : vector<1x128xf32>
      %c0_i32_30 = arith.constant 0 : i32
      %c1_i32_31 = arith.constant 1 : i32
      %44 = arith.muli %c0_i32_30, %c1_i32_31 : i32
      %c0_i32_32 = arith.constant 0 : i32
      %45 = arith.addi %c0_i32_32, %44 : i32
      %c32_i32_33 = arith.constant 32 : i32
      %46 = arith.muli %45, %c32_i32_33 : i32
      %47 = tpu.assume_multiple %46, 32 : i32
      %48 = arith.index_cast %47 : i32 to index
      %c0_34 = arith.constant 0 : index
      %49 = vector.load %arg6[%48, %c0_34] : memref<32x128xf32, #tpu.memory_space<vmem>>, vector<32x128xf32>
      %50 = vector.broadcast %40 : vector<1x128xf32> to vector<32x128xf32>
      %51 = arith.mulf %49, %50 : vector<32x128xf32>
      %52 = vector.broadcast %43 : vector<1x128xf32> to vector<32x128xf32>
      %53 = arith.addf %51, %52 : vector<32x128xf32>
      %cst_35 = arith.constant 0.000000e+00 : f32
      %54 = vector.broadcast %cst_35 : f32 to vector<32x128xf32>
      %55 = arith.maximumf %53, %54 : vector<32x128xf32>
      %56 = arith.index_cast %47 : i32 to index
      %c0_36 = arith.constant 0 : index
      %57 = vector.load %arg6[%56, %c0_36] : memref<32x128xf32, #tpu.memory_space<vmem>>, vector<32x128xf32>
      tpu.vector_store %arg6[%56, %c0_36], %55 {strides = array<i32>} : memref<32x128xf32, #tpu.memory_space<vmem>>, vector<32x128xf32>,
      %c1_i32_37 = arith.constant 1 : i32
    } else {
    }
    return
  }
  func.func @transform_0(%arg0: i32, %arg1: i32) -> (i32, i32, i32) {
    %c0_i32 = arith.constant 0 : i32
    %c0_i32_0 = arith.constant 0 : i32
    return %arg0, %arg1, %c0_i32 : i32, i32, i32
  }
  func.func @transform_1(%arg0: i32, %arg1: i32) -> (i32, i32, i32) {
    %c0_i32 = arith.constant 0 : i32
    %c0_i32_0 = arith.constant 0 : i32
    %c0_i32_1 = arith.constant 0 : i32
    return %arg0, %c0_i32, %c0_i32_0 : i32, i32, i32
  }
  func.func @transform_2(%arg0: i32, %arg1: i32) -> (i32, i32) {
    %c0_i32 = arith.constant 0 : i32
    %c0_i32_0 = arith.constant 0 : i32
    %c0_i32_1 = arith.constant 0 : i32
    return %c0_i32, %c0_i32_0 : i32, i32
  }
  func.func @transform_3(%arg0: i32, %arg1: i32) -> (i32, i32) {
    %c0_i32 = arith.constant 0 : i32
    %c0_i32_0 = arith.constant 0 : i32
    %c0_i32_1 = arith.constant 0 : i32
    return %c0_i32, %c0_i32_0 : i32, i32
  }
  func.func @transform_4(%arg0: i32, %arg1: i32) -> (i32, i32) {
    %c0_i32 = arith.constant 0 : i32
    %c0_i32_0 = arith.constant 0 : i32
    %c0_i32_1 = arith.constant 0 : i32
    return %c0_i32, %c0_i32_0 : i32, i32
  }
}

module attributes {stable_mosaic.version = 11 : i64} {
  func.func @_fused_layer_kernel(%arg0: i32, %arg1: i32, %arg2: memref<1x32x256xbf16, #tpu.memory_space<vmem>>, %arg3: memref<1x256x128xbf16, #tpu.memory_space<vmem>>, %arg4: memref<1x128xf32, #tpu.memory_space<vmem>>, %arg5: memref<1x128xf32, #tpu.memory_space<vmem>>, %arg6: memref<128x128xf32, #tpu.memory_space<vmem>>, %arg7: memref<1x128xf32, #tpu.memory_space<vmem>>, %arg8: memref<1x128xf32, #tpu.memory_space<vmem>>) attributes {dimension_semantics = [#tpu.dimension_semantics<arbitrary>, #tpu.dimension_semantics<arbitrary>], iteration_bounds = array<i64: 4, 1>, scalar_prefetch = 0 : i64, scratch_operands = 2 : i64, tpu.core_type = #tpu.core_type<tc>, window_params = [{transform_indices = @transform_0, window_bounds = array<i64: 1, 32, 256>}, {transform_indices = @transform_1, window_bounds = array<i64: 1, 256, 128>}, {pipeline_mode = #tpu.pipeline_mode<synchronous>, transform_indices = @transform_2, window_bounds = array<i64: 1, 128>}, {pipeline_mode = #tpu.pipeline_mode<synchronous>, transform_indices = @transform_3, window_bounds = array<i64: 1, 128>}, {pipeline_mode = #tpu.pipeline_mode<synchronous>, transform_indices = @transform_4, window_bounds = array<i64: 128, 128>}]} {
    %c1_i32 = arith.constant 1 : i32
    %0 = arith.muli %arg0, %c1_i32 : i32
    %1 = arith.addi %0, %arg1 : i32
    %c0_i32 = arith.constant 0 : i32
    %2 = arith.cmpi eq, %1, %c0_i32 : i32
    %3 = arith.extui %2 : i1 to i32
    %c0_i32_0 = arith.constant 0 : i32
    %4 = arith.cmpi ne, %3, %c0_i32_0 : i32
    scf.if %4 {
      %cst_18 = arith.constant 0.000000e+00 : f32
      %28 = vector.broadcast %cst_18 : f32 to vector<1x128xf32>
      %c0_19 = arith.constant 0 : index
      %c0_20 = arith.constant 0 : index
      %29 = vector.load %arg7[%c0_19, %c0_20] : memref<1x128xf32, #tpu.memory_space<vmem>>, vector<1x128xf32>
      tpu.vector_store %arg7[%c0_19, %c0_20], %28 {strides = array<i32>} : memref<1x128xf32, #tpu.memory_space<vmem>>, vector<1x128xf32>,
      %cst_21 = arith.constant 0.000000e+00 : f32
      %30 = vector.broadcast %cst_21 : f32 to vector<1x128xf32>
      %c0_22 = arith.constant 0 : index
      %c0_23 = arith.constant 0 : index
      %31 = vector.load %arg8[%c0_22, %c0_23] : memref<1x128xf32, #tpu.memory_space<vmem>>, vector<1x128xf32>
      tpu.vector_store %arg8[%c0_22, %c0_23], %30 {strides = array<i32>} : memref<1x128xf32, #tpu.memory_space<vmem>>, vector<1x128xf32>,
    } else {
    }
    %c0 = arith.constant 0 : index
    %c0_1 = arith.constant 0 : index
    %c0_2 = arith.constant 0 : index
    %5 = vector.load %arg2[%c0, %c0_1, %c0_2] : memref<1x32x256xbf16, #tpu.memory_space<vmem>>, vector<1x32x256xbf16>
    %6 = vector.shape_cast %5 : vector<1x32x256xbf16> to vector<32x256xbf16>
    %c0_3 = arith.constant 0 : index
    %c0_4 = arith.constant 0 : index
    %c0_5 = arith.constant 0 : index
    %7 = vector.load %arg3[%c0_3, %c0_4, %c0_5] : memref<1x256x128xbf16, #tpu.memory_space<vmem>>, vector<1x256x128xbf16>
    %8 = vector.shape_cast %7 : vector<1x256x128xbf16> to vector<256x128xbf16>
    %cst = arith.constant dense<0.000000e+00> : vector<32x128xf32>
    %9 = tpu.matmul %6, %8, %cst {dimension_numbers = #tpu.dot_dimension_numbers<[1], [0], [0], [1], [0, 0, 1, 1], [], []>} : vector<32x256xbf16>, vector<256x128xbf16>, vector<32x128xf32> -> vector<32x128xf32>
    %c32_i32 = arith.constant 32 : i32
    %10 = arith.muli %1, %c32_i32 : i32
    %11 = tpu.assume_multiple %10, 32 : i32
    %12 = arith.index_cast %11 : i32 to index
    %c0_6 = arith.constant 0 : index
    %13 = vector.load %arg6[%12, %c0_6] : memref<128x128xf32, #tpu.memory_space<vmem>>, vector<32x128xf32>
    tpu.vector_store %arg6[%12, %c0_6], %9 {strides = array<i32>} : memref<128x128xf32, #tpu.memory_space<vmem>>, vector<32x128xf32>,
    %c0_7 = arith.constant 0 : index
    %c0_8 = arith.constant 0 : index
    %14 = vector.load %arg7[%c0_7, %c0_8] : memref<1x128xf32, #tpu.memory_space<vmem>>, vector<1x128xf32>
    %cst_9 = arith.constant dense<0.000000e+00> : vector<128xf32>
    %15 = vector.multi_reduction <add>, %9, %cst_9 [0] : vector<32x128xf32> to vector<128xf32>
    %16 = vector.shape_cast %15 : vector<128xf32> to vector<1x128xf32>
    %17 = arith.addf %14, %16 : vector<1x128xf32>
    %c0_10 = arith.constant 0 : index
    %c0_11 = arith.constant 0 : index
    %18 = vector.load %arg7[%c0_10, %c0_11] : memref<1x128xf32, #tpu.memory_space<vmem>>, vector<1x128xf32>
    tpu.vector_store %arg7[%c0_10, %c0_11], %17 {strides = array<i32>} : memref<1x128xf32, #tpu.memory_space<vmem>>, vector<1x128xf32>,
    %c0_12 = arith.constant 0 : index
    %c0_13 = arith.constant 0 : index
    %19 = vector.load %arg8[%c0_12, %c0_13] : memref<1x128xf32, #tpu.memory_space<vmem>>, vector<1x128xf32>
    %20 = arith.mulf %9, %9 : vector<32x128xf32>
    %cst_14 = arith.constant dense<0.000000e+00> : vector<128xf32>
    %21 = vector.multi_reduction <add>, %20, %cst_14 [0] : vector<32x128xf32> to vector<128xf32>
    %22 = vector.shape_cast %21 : vector<128xf32> to vector<1x128xf32>
    %23 = arith.addf %19, %22 : vector<1x128xf32>
    %c0_15 = arith.constant 0 : index
    %c0_16 = arith.constant 0 : index
    %24 = vector.load %arg8[%c0_15, %c0_16] : memref<1x128xf32, #tpu.memory_space<vmem>>, vector<1x128xf32>
    tpu.vector_store %arg8[%c0_15, %c0_16], %23 {strides = array<i32>} : memref<1x128xf32, #tpu.memory_space<vmem>>, vector<1x128xf32>,
    %c3_i32 = arith.constant 3 : i32
    %25 = arith.cmpi eq, %1, %c3_i32 : i32
    %26 = arith.extui %25 : i1 to i32
    %c0_i32_17 = arith.constant 0 : i32
    %27 = arith.cmpi ne, %26, %c0_i32_17 : i32
    scf.if %27 {
      %c0_18 = arith.constant 0 : index
      %c0_19 = arith.constant 0 : index
      %28 = vector.load %arg7[%c0_18, %c0_19] : memref<1x128xf32, #tpu.memory_space<vmem>>, vector<1x128xf32>
      %cst_20 = arith.constant 7.812500e-03 : f32
      %29 = vector.broadcast %cst_20 : f32 to vector<1x128xf32>
      %30 = arith.mulf %28, %29 : vector<1x128xf32>
      %c0_21 = arith.constant 0 : index
      %c0_22 = arith.constant 0 : index
      %31 = vector.load %arg8[%c0_21, %c0_22] : memref<1x128xf32, #tpu.memory_space<vmem>>, vector<1x128xf32>
      %cst_23 = arith.constant 7.812500e-03 : f32
      %32 = vector.broadcast %cst_23 : f32 to vector<1x128xf32>
      %33 = arith.mulf %31, %32 : vector<1x128xf32>
      %34 = arith.mulf %30, %30 : vector<1x128xf32>
      %35 = arith.subf %33, %34 : vector<1x128xf32>
      %c0_24 = arith.constant 0 : index
      %c0_25 = arith.constant 0 : index
      %36 = vector.load %arg4[%c0_24, %c0_25] : memref<1x128xf32, #tpu.memory_space<vmem>>, vector<1x128xf32>
      %cst_26 = arith.constant 9.99999974E-6 : f32
      %37 = vector.broadcast %cst_26 : f32 to vector<1x128xf32>
      %38 = arith.addf %35, %37 : vector<1x128xf32>
      %39 = math.rsqrt %38 : vector<1x128xf32>
      %40 = arith.mulf %36, %39 : vector<1x128xf32>
      %c0_27 = arith.constant 0 : index
      %c0_28 = arith.constant 0 : index
      %41 = vector.load %arg5[%c0_27, %c0_28] : memref<1x128xf32, #tpu.memory_space<vmem>>, vector<1x128xf32>
      %42 = arith.mulf %30, %40 : vector<1x128xf32>
      %43 = arith.subf %41, %42 : vector<1x128xf32>
      %c0_i32_29 = arith.constant 0 : i32
      %c4_i32 = arith.constant 4 : i32
      %44 = arith.addi %c0_i32_29, %c4_i32 : i32
      %c1_i32_30 = arith.constant 1 : i32
      scf.for %arg9 = %c0_i32_29 to %44 step %c1_i32_30  : i32 {
        %c1_i32_32 = arith.constant 1 : i32
        %45 = arith.muli %arg9, %c1_i32_32 : i32
        %c0_i32_33 = arith.constant 0 : i32
        %46 = arith.addi %c0_i32_33, %45 : i32
        %c32_i32_34 = arith.constant 32 : i32
        %47 = arith.muli %46, %c32_i32_34 : i32
        %48 = tpu.assume_multiple %47, 32 : i32
        %49 = arith.index_cast %48 : i32 to index
        %c0_35 = arith.constant 0 : index
        %50 = vector.load %arg6[%49, %c0_35] : memref<128x128xf32, #tpu.memory_space<vmem>>, vector<32x128xf32>
        %51 = vector.broadcast %40 : vector<1x128xf32> to vector<32x128xf32>
        %52 = arith.mulf %50, %51 : vector<32x128xf32>
        %53 = vector.broadcast %43 : vector<1x128xf32> to vector<32x128xf32>
        %54 = arith.addf %52, %53 : vector<32x128xf32>
        %cst_36 = arith.constant 0.000000e+00 : f32
        %55 = vector.broadcast %cst_36 : f32 to vector<32x128xf32>
        %56 = arith.maximumf %54, %55 : vector<32x128xf32>
        %57 = arith.index_cast %48 : i32 to index
        %c0_37 = arith.constant 0 : index
        %58 = vector.load %arg6[%57, %c0_37] : memref<128x128xf32, #tpu.memory_space<vmem>>, vector<32x128xf32>
        tpu.vector_store %arg6[%57, %c0_37], %56 {strides = array<i32>} : memref<128x128xf32, #tpu.memory_space<vmem>>, vector<32x128xf32>,
      }
      %c4_i32_31 = arith.constant 4 : i32
    } else {
    }
    return
  }
  func.func @transform_0(%arg0: i32, %arg1: i32) -> (i32, i32, i32) {
    %c0_i32 = arith.constant 0 : i32
    %c0_i32_0 = arith.constant 0 : i32
    return %arg0, %arg1, %c0_i32 : i32, i32, i32
  }
  func.func @transform_1(%arg0: i32, %arg1: i32) -> (i32, i32, i32) {
    %c0_i32 = arith.constant 0 : i32
    %c0_i32_0 = arith.constant 0 : i32
    %c0_i32_1 = arith.constant 0 : i32
    return %arg0, %c0_i32, %c0_i32_0 : i32, i32, i32
  }
  func.func @transform_2(%arg0: i32, %arg1: i32) -> (i32, i32) {
    %c0_i32 = arith.constant 0 : i32
    %c0_i32_0 = arith.constant 0 : i32
    %c0_i32_1 = arith.constant 0 : i32
    return %c0_i32, %c0_i32_0 : i32, i32
  }
  func.func @transform_3(%arg0: i32, %arg1: i32) -> (i32, i32) {
    %c0_i32 = arith.constant 0 : i32
    %c0_i32_0 = arith.constant 0 : i32
    %c0_i32_1 = arith.constant 0 : i32
    return %c0_i32, %c0_i32_0 : i32, i32
  }
  func.func @transform_4(%arg0: i32, %arg1: i32) -> (i32, i32) {
    %c0_i32 = arith.constant 0 : i32
    %c0_i32_0 = arith.constant 0 : i32
    %c0_i32_1 = arith.constant 0 : i32
    return %c0_i32, %c0_i32_0 : i32, i32
  }
}

module attributes {stable_mosaic.version = 11 : i64} {
  func.func @_fused_layer_kernel(%arg0: i32, %arg1: i32, %arg2: memref<1x128x128xbf16, #tpu.memory_space<vmem>>, %arg3: memref<1x128x128xbf16, #tpu.memory_space<vmem>>, %arg4: memref<1x128xf32, #tpu.memory_space<vmem>>, %arg5: memref<1x128xf32, #tpu.memory_space<vmem>>, %arg6: memref<512x128xf32, #tpu.memory_space<vmem>>, %arg7: memref<1x128xf32, #tpu.memory_space<vmem>>, %arg8: memref<1x128xf32, #tpu.memory_space<vmem>>) attributes {dimension_semantics = [#tpu.dimension_semantics<arbitrary>, #tpu.dimension_semantics<arbitrary>], iteration_bounds = array<i64: 4, 1>, scalar_prefetch = 0 : i64, scratch_operands = 2 : i64, tpu.core_type = #tpu.core_type<tc>, window_params = [{transform_indices = @transform_0, window_bounds = array<i64: 1, 128, 128>}, {transform_indices = @transform_1, window_bounds = array<i64: 1, 128, 128>}, {pipeline_mode = #tpu.pipeline_mode<synchronous>, transform_indices = @transform_2, window_bounds = array<i64: 1, 128>}, {pipeline_mode = #tpu.pipeline_mode<synchronous>, transform_indices = @transform_3, window_bounds = array<i64: 1, 128>}, {pipeline_mode = #tpu.pipeline_mode<synchronous>, transform_indices = @transform_4, window_bounds = array<i64: 512, 128>}]} {
    %c1_i32 = arith.constant 1 : i32
    %0 = arith.muli %arg0, %c1_i32 : i32
    %1 = arith.addi %0, %arg1 : i32
    %c0_i32 = arith.constant 0 : i32
    %2 = arith.cmpi eq, %1, %c0_i32 : i32
    %3 = arith.extui %2 : i1 to i32
    %c0_i32_0 = arith.constant 0 : i32
    %4 = arith.cmpi ne, %3, %c0_i32_0 : i32
    scf.if %4 {
      %cst_18 = arith.constant 0.000000e+00 : f32
      %28 = vector.broadcast %cst_18 : f32 to vector<1x128xf32>
      %c0_19 = arith.constant 0 : index
      %c0_20 = arith.constant 0 : index
      %29 = vector.load %arg7[%c0_19, %c0_20] : memref<1x128xf32, #tpu.memory_space<vmem>>, vector<1x128xf32>
      tpu.vector_store %arg7[%c0_19, %c0_20], %28 {strides = array<i32>} : memref<1x128xf32, #tpu.memory_space<vmem>>, vector<1x128xf32>,
      %cst_21 = arith.constant 0.000000e+00 : f32
      %30 = vector.broadcast %cst_21 : f32 to vector<1x128xf32>
      %c0_22 = arith.constant 0 : index
      %c0_23 = arith.constant 0 : index
      %31 = vector.load %arg8[%c0_22, %c0_23] : memref<1x128xf32, #tpu.memory_space<vmem>>, vector<1x128xf32>
      tpu.vector_store %arg8[%c0_22, %c0_23], %30 {strides = array<i32>} : memref<1x128xf32, #tpu.memory_space<vmem>>, vector<1x128xf32>,
    } else {
    }
    %c0 = arith.constant 0 : index
    %c0_1 = arith.constant 0 : index
    %c0_2 = arith.constant 0 : index
    %5 = vector.load %arg2[%c0, %c0_1, %c0_2] : memref<1x128x128xbf16, #tpu.memory_space<vmem>>, vector<1x128x128xbf16>
    %6 = vector.shape_cast %5 : vector<1x128x128xbf16> to vector<128x128xbf16>
    %c0_3 = arith.constant 0 : index
    %c0_4 = arith.constant 0 : index
    %c0_5 = arith.constant 0 : index
    %7 = vector.load %arg3[%c0_3, %c0_4, %c0_5] : memref<1x128x128xbf16, #tpu.memory_space<vmem>>, vector<1x128x128xbf16>
    %8 = vector.shape_cast %7 : vector<1x128x128xbf16> to vector<128x128xbf16>
    %cst = arith.constant dense<0.000000e+00> : vector<128x128xf32>
    %9 = tpu.matmul %6, %8, %cst {dimension_numbers = #tpu.dot_dimension_numbers<[1], [0], [0], [1], [0, 0, 1, 1], [], []>} : vector<128x128xbf16>, vector<128x128xbf16>, vector<128x128xf32> -> vector<128x128xf32>
    %c128_i32 = arith.constant 128 : i32
    %10 = arith.muli %1, %c128_i32 : i32
    %11 = tpu.assume_multiple %10, 128 : i32
    %12 = arith.index_cast %11 : i32 to index
    %c0_6 = arith.constant 0 : index
    %13 = vector.load %arg6[%12, %c0_6] : memref<512x128xf32, #tpu.memory_space<vmem>>, vector<128x128xf32>
    tpu.vector_store %arg6[%12, %c0_6], %9 {strides = array<i32>} : memref<512x128xf32, #tpu.memory_space<vmem>>, vector<128x128xf32>,
    %c0_7 = arith.constant 0 : index
    %c0_8 = arith.constant 0 : index
    %14 = vector.load %arg7[%c0_7, %c0_8] : memref<1x128xf32, #tpu.memory_space<vmem>>, vector<1x128xf32>
    %cst_9 = arith.constant dense<0.000000e+00> : vector<128xf32>
    %15 = vector.multi_reduction <add>, %9, %cst_9 [0] : vector<128x128xf32> to vector<128xf32>
    %16 = vector.shape_cast %15 : vector<128xf32> to vector<1x128xf32>
    %17 = arith.addf %14, %16 : vector<1x128xf32>
    %c0_10 = arith.constant 0 : index
    %c0_11 = arith.constant 0 : index
    %18 = vector.load %arg7[%c0_10, %c0_11] : memref<1x128xf32, #tpu.memory_space<vmem>>, vector<1x128xf32>
    tpu.vector_store %arg7[%c0_10, %c0_11], %17 {strides = array<i32>} : memref<1x128xf32, #tpu.memory_space<vmem>>, vector<1x128xf32>,
    %c0_12 = arith.constant 0 : index
    %c0_13 = arith.constant 0 : index
    %19 = vector.load %arg8[%c0_12, %c0_13] : memref<1x128xf32, #tpu.memory_space<vmem>>, vector<1x128xf32>
    %20 = arith.mulf %9, %9 : vector<128x128xf32>
    %cst_14 = arith.constant dense<0.000000e+00> : vector<128xf32>
    %21 = vector.multi_reduction <add>, %20, %cst_14 [0] : vector<128x128xf32> to vector<128xf32>
    %22 = vector.shape_cast %21 : vector<128xf32> to vector<1x128xf32>
    %23 = arith.addf %19, %22 : vector<1x128xf32>
    %c0_15 = arith.constant 0 : index
    %c0_16 = arith.constant 0 : index
    %24 = vector.load %arg8[%c0_15, %c0_16] : memref<1x128xf32, #tpu.memory_space<vmem>>, vector<1x128xf32>
    tpu.vector_store %arg8[%c0_15, %c0_16], %23 {strides = array<i32>} : memref<1x128xf32, #tpu.memory_space<vmem>>, vector<1x128xf32>,
    %c3_i32 = arith.constant 3 : i32
    %25 = arith.cmpi eq, %1, %c3_i32 : i32
    %26 = arith.extui %25 : i1 to i32
    %c0_i32_17 = arith.constant 0 : i32
    %27 = arith.cmpi ne, %26, %c0_i32_17 : i32
    scf.if %27 {
      %c0_18 = arith.constant 0 : index
      %c0_19 = arith.constant 0 : index
      %28 = vector.load %arg7[%c0_18, %c0_19] : memref<1x128xf32, #tpu.memory_space<vmem>>, vector<1x128xf32>
      %cst_20 = arith.constant 0.001953125 : f32
      %29 = vector.broadcast %cst_20 : f32 to vector<1x128xf32>
      %30 = arith.mulf %28, %29 : vector<1x128xf32>
      %c0_21 = arith.constant 0 : index
      %c0_22 = arith.constant 0 : index
      %31 = vector.load %arg8[%c0_21, %c0_22] : memref<1x128xf32, #tpu.memory_space<vmem>>, vector<1x128xf32>
      %cst_23 = arith.constant 0.001953125 : f32
      %32 = vector.broadcast %cst_23 : f32 to vector<1x128xf32>
      %33 = arith.mulf %31, %32 : vector<1x128xf32>
      %34 = arith.mulf %30, %30 : vector<1x128xf32>
      %35 = arith.subf %33, %34 : vector<1x128xf32>
      %c0_24 = arith.constant 0 : index
      %c0_25 = arith.constant 0 : index
      %36 = vector.load %arg4[%c0_24, %c0_25] : memref<1x128xf32, #tpu.memory_space<vmem>>, vector<1x128xf32>
      %cst_26 = arith.constant 9.99999974E-6 : f32
      %37 = vector.broadcast %cst_26 : f32 to vector<1x128xf32>
      %38 = arith.addf %35, %37 : vector<1x128xf32>
      %39 = math.rsqrt %38 : vector<1x128xf32>
      %40 = arith.mulf %36, %39 : vector<1x128xf32>
      %c0_27 = arith.constant 0 : index
      %c0_28 = arith.constant 0 : index
      %41 = vector.load %arg5[%c0_27, %c0_28] : memref<1x128xf32, #tpu.memory_space<vmem>>, vector<1x128xf32>
      %42 = arith.mulf %30, %40 : vector<1x128xf32>
      %43 = arith.subf %41, %42 : vector<1x128xf32>
      %c0_i32_29 = arith.constant 0 : i32
      %c4_i32 = arith.constant 4 : i32
      %44 = arith.addi %c0_i32_29, %c4_i32 : i32
      %c1_i32_30 = arith.constant 1 : i32
      scf.for %arg9 = %c0_i32_29 to %44 step %c1_i32_30  : i32 {
        %c1_i32_32 = arith.constant 1 : i32
        %45 = arith.muli %arg9, %c1_i32_32 : i32
        %c0_i32_33 = arith.constant 0 : i32
        %46 = arith.addi %c0_i32_33, %45 : i32
        %c128_i32_34 = arith.constant 128 : i32
        %47 = arith.muli %46, %c128_i32_34 : i32
        %48 = tpu.assume_multiple %47, 128 : i32
        %49 = arith.index_cast %48 : i32 to index
        %c0_35 = arith.constant 0 : index
        %50 = vector.load %arg6[%49, %c0_35] : memref<512x128xf32, #tpu.memory_space<vmem>>, vector<128x128xf32>
        %51 = vector.broadcast %40 : vector<1x128xf32> to vector<128x128xf32>
        %52 = arith.mulf %50, %51 : vector<128x128xf32>
        %53 = vector.broadcast %43 : vector<1x128xf32> to vector<128x128xf32>
        %54 = arith.addf %52, %53 : vector<128x128xf32>
        %cst_36 = arith.constant 0.000000e+00 : f32
        %55 = vector.broadcast %cst_36 : f32 to vector<128x128xf32>
        %56 = arith.maximumf %54, %55 : vector<128x128xf32>
        %57 = arith.index_cast %48 : i32 to index
        %c0_37 = arith.constant 0 : index
        %58 = vector.load %arg6[%57, %c0_37] : memref<512x128xf32, #tpu.memory_space<vmem>>, vector<128x128xf32>
        tpu.vector_store %arg6[%57, %c0_37], %56 {strides = array<i32>} : memref<512x128xf32, #tpu.memory_space<vmem>>, vector<128x128xf32>,
      }
      %c4_i32_31 = arith.constant 4 : i32
    } else {
    }
    return
  }
  func.func @transform_0(%arg0: i32, %arg1: i32) -> (i32, i32, i32) {
    %c0_i32 = arith.constant 0 : i32
    %c0_i32_0 = arith.constant 0 : i32
    return %arg0, %arg1, %c0_i32 : i32, i32, i32
  }
  func.func @transform_1(%arg0: i32, %arg1: i32) -> (i32, i32, i32) {
    %c0_i32 = arith.constant 0 : i32
    %c0_i32_0 = arith.constant 0 : i32
    %c0_i32_1 = arith.constant 0 : i32
    return %arg0, %c0_i32, %c0_i32_0 : i32, i32, i32
  }
  func.func @transform_2(%arg0: i32, %arg1: i32) -> (i32, i32) {
    %c0_i32 = arith.constant 0 : i32
    %c0_i32_0 = arith.constant 0 : i32
    %c0_i32_1 = arith.constant 0 : i32
    return %c0_i32, %c0_i32_0 : i32, i32
  }
  func.func @transform_3(%arg0: i32, %arg1: i32) -> (i32, i32) {
    %c0_i32 = arith.constant 0 : i32
    %c0_i32_0 = arith.constant 0 : i32
    %c0_i32_1 = arith.constant 0 : i32
    return %c0_i32, %c0_i32_0 : i32, i32
  }
  func.func @transform_4(%arg0: i32, %arg1: i32) -> (i32, i32) {
    %c0_i32 = arith.constant 0 : i32
    %c0_i32_0 = arith.constant 0 : i32
    %c0_i32_1 = arith.constant 0 : i32
    return %c0_i32, %c0_i32_0 : i32, i32
  }
}

module attributes {stable_mosaic.version = 11 : i64} {
  func.func @_fused_layer_kernel(%arg0: i32, %arg1: i32, %arg2: memref<1x512x64xbf16, #tpu.memory_space<vmem>>, %arg3: memref<1x64x128xbf16, #tpu.memory_space<vmem>>, %arg4: memref<1x128xf32, #tpu.memory_space<vmem>>, %arg5: memref<1x128xf32, #tpu.memory_space<vmem>>, %arg6: memref<2048x128xf32, #tpu.memory_space<vmem>>, %arg7: memref<1x128xf32, #tpu.memory_space<vmem>>, %arg8: memref<1x128xf32, #tpu.memory_space<vmem>>) attributes {dimension_semantics = [#tpu.dimension_semantics<arbitrary>, #tpu.dimension_semantics<arbitrary>], iteration_bounds = array<i64: 4, 1>, scalar_prefetch = 0 : i64, scratch_operands = 2 : i64, tpu.core_type = #tpu.core_type<tc>, window_params = [{transform_indices = @transform_0, window_bounds = array<i64: 1, 512, 64>}, {transform_indices = @transform_1, window_bounds = array<i64: 1, 64, 128>}, {pipeline_mode = #tpu.pipeline_mode<synchronous>, transform_indices = @transform_2, window_bounds = array<i64: 1, 128>}, {pipeline_mode = #tpu.pipeline_mode<synchronous>, transform_indices = @transform_3, window_bounds = array<i64: 1, 128>}, {pipeline_mode = #tpu.pipeline_mode<synchronous>, transform_indices = @transform_4, window_bounds = array<i64: 2048, 128>}]} {
    %c1_i32 = arith.constant 1 : i32
    %0 = arith.muli %arg0, %c1_i32 : i32
    %1 = arith.addi %0, %arg1 : i32
    %c0_i32 = arith.constant 0 : i32
    %2 = arith.cmpi eq, %1, %c0_i32 : i32
    %3 = arith.extui %2 : i1 to i32
    %c0_i32_0 = arith.constant 0 : i32
    %4 = arith.cmpi ne, %3, %c0_i32_0 : i32
    scf.if %4 {
      %cst_18 = arith.constant 0.000000e+00 : f32
      %28 = vector.broadcast %cst_18 : f32 to vector<1x128xf32>
      %c0_19 = arith.constant 0 : index
      %c0_20 = arith.constant 0 : index
      %29 = vector.load %arg7[%c0_19, %c0_20] : memref<1x128xf32, #tpu.memory_space<vmem>>, vector<1x128xf32>
      tpu.vector_store %arg7[%c0_19, %c0_20], %28 {strides = array<i32>} : memref<1x128xf32, #tpu.memory_space<vmem>>, vector<1x128xf32>,
      %cst_21 = arith.constant 0.000000e+00 : f32
      %30 = vector.broadcast %cst_21 : f32 to vector<1x128xf32>
      %c0_22 = arith.constant 0 : index
      %c0_23 = arith.constant 0 : index
      %31 = vector.load %arg8[%c0_22, %c0_23] : memref<1x128xf32, #tpu.memory_space<vmem>>, vector<1x128xf32>
      tpu.vector_store %arg8[%c0_22, %c0_23], %30 {strides = array<i32>} : memref<1x128xf32, #tpu.memory_space<vmem>>, vector<1x128xf32>,
    } else {
    }
    %c0 = arith.constant 0 : index
    %c0_1 = arith.constant 0 : index
    %c0_2 = arith.constant 0 : index
    %5 = vector.load %arg2[%c0, %c0_1, %c0_2] : memref<1x512x64xbf16, #tpu.memory_space<vmem>>, vector<1x512x64xbf16>
    %6 = vector.shape_cast %5 : vector<1x512x64xbf16> to vector<512x64xbf16>
    %c0_3 = arith.constant 0 : index
    %c0_4 = arith.constant 0 : index
    %c0_5 = arith.constant 0 : index
    %7 = vector.load %arg3[%c0_3, %c0_4, %c0_5] : memref<1x64x128xbf16, #tpu.memory_space<vmem>>, vector<1x64x128xbf16>
    %8 = vector.shape_cast %7 : vector<1x64x128xbf16> to vector<64x128xbf16>
    %cst = arith.constant dense<0.000000e+00> : vector<512x128xf32>
    %9 = tpu.matmul %6, %8, %cst {dimension_numbers = #tpu.dot_dimension_numbers<[1], [0], [0], [1], [0, 0, 1, 1], [], []>} : vector<512x64xbf16>, vector<64x128xbf16>, vector<512x128xf32> -> vector<512x128xf32>
    %c512_i32 = arith.constant 512 : i32
    %10 = arith.muli %1, %c512_i32 : i32
    %11 = tpu.assume_multiple %10, 512 : i32
    %12 = arith.index_cast %11 : i32 to index
    %c0_6 = arith.constant 0 : index
    %13 = vector.load %arg6[%12, %c0_6] : memref<2048x128xf32, #tpu.memory_space<vmem>>, vector<512x128xf32>
    tpu.vector_store %arg6[%12, %c0_6], %9 {strides = array<i32>} : memref<2048x128xf32, #tpu.memory_space<vmem>>, vector<512x128xf32>,
    %c0_7 = arith.constant 0 : index
    %c0_8 = arith.constant 0 : index
    %14 = vector.load %arg7[%c0_7, %c0_8] : memref<1x128xf32, #tpu.memory_space<vmem>>, vector<1x128xf32>
    %cst_9 = arith.constant dense<0.000000e+00> : vector<128xf32>
    %15 = vector.multi_reduction <add>, %9, %cst_9 [0] : vector<512x128xf32> to vector<128xf32>
    %16 = vector.shape_cast %15 : vector<128xf32> to vector<1x128xf32>
    %17 = arith.addf %14, %16 : vector<1x128xf32>
    %c0_10 = arith.constant 0 : index
    %c0_11 = arith.constant 0 : index
    %18 = vector.load %arg7[%c0_10, %c0_11] : memref<1x128xf32, #tpu.memory_space<vmem>>, vector<1x128xf32>
    tpu.vector_store %arg7[%c0_10, %c0_11], %17 {strides = array<i32>} : memref<1x128xf32, #tpu.memory_space<vmem>>, vector<1x128xf32>,
    %c0_12 = arith.constant 0 : index
    %c0_13 = arith.constant 0 : index
    %19 = vector.load %arg8[%c0_12, %c0_13] : memref<1x128xf32, #tpu.memory_space<vmem>>, vector<1x128xf32>
    %20 = arith.mulf %9, %9 : vector<512x128xf32>
    %cst_14 = arith.constant dense<0.000000e+00> : vector<128xf32>
    %21 = vector.multi_reduction <add>, %20, %cst_14 [0] : vector<512x128xf32> to vector<128xf32>
    %22 = vector.shape_cast %21 : vector<128xf32> to vector<1x128xf32>
    %23 = arith.addf %19, %22 : vector<1x128xf32>
    %c0_15 = arith.constant 0 : index
    %c0_16 = arith.constant 0 : index
    %24 = vector.load %arg8[%c0_15, %c0_16] : memref<1x128xf32, #tpu.memory_space<vmem>>, vector<1x128xf32>
    tpu.vector_store %arg8[%c0_15, %c0_16], %23 {strides = array<i32>} : memref<1x128xf32, #tpu.memory_space<vmem>>, vector<1x128xf32>,
    %c3_i32 = arith.constant 3 : i32
    %25 = arith.cmpi eq, %1, %c3_i32 : i32
    %26 = arith.extui %25 : i1 to i32
    %c0_i32_17 = arith.constant 0 : i32
    %27 = arith.cmpi ne, %26, %c0_i32_17 : i32
    scf.if %27 {
      %c0_18 = arith.constant 0 : index
      %c0_19 = arith.constant 0 : index
      %28 = vector.load %arg7[%c0_18, %c0_19] : memref<1x128xf32, #tpu.memory_space<vmem>>, vector<1x128xf32>
      %cst_20 = arith.constant 4.8828125E-4 : f32
      %29 = vector.broadcast %cst_20 : f32 to vector<1x128xf32>
      %30 = arith.mulf %28, %29 : vector<1x128xf32>
      %c0_21 = arith.constant 0 : index
      %c0_22 = arith.constant 0 : index
      %31 = vector.load %arg8[%c0_21, %c0_22] : memref<1x128xf32, #tpu.memory_space<vmem>>, vector<1x128xf32>
      %cst_23 = arith.constant 4.8828125E-4 : f32
      %32 = vector.broadcast %cst_23 : f32 to vector<1x128xf32>
      %33 = arith.mulf %31, %32 : vector<1x128xf32>
      %34 = arith.mulf %30, %30 : vector<1x128xf32>
      %35 = arith.subf %33, %34 : vector<1x128xf32>
      %c0_24 = arith.constant 0 : index
      %c0_25 = arith.constant 0 : index
      %36 = vector.load %arg4[%c0_24, %c0_25] : memref<1x128xf32, #tpu.memory_space<vmem>>, vector<1x128xf32>
      %cst_26 = arith.constant 9.99999974E-6 : f32
      %37 = vector.broadcast %cst_26 : f32 to vector<1x128xf32>
      %38 = arith.addf %35, %37 : vector<1x128xf32>
      %39 = math.rsqrt %38 : vector<1x128xf32>
      %40 = arith.mulf %36, %39 : vector<1x128xf32>
      %c0_27 = arith.constant 0 : index
      %c0_28 = arith.constant 0 : index
      %41 = vector.load %arg5[%c0_27, %c0_28] : memref<1x128xf32, #tpu.memory_space<vmem>>, vector<1x128xf32>
      %42 = arith.mulf %30, %40 : vector<1x128xf32>
      %43 = arith.subf %41, %42 : vector<1x128xf32>
      %c0_i32_29 = arith.constant 0 : i32
      %c4_i32 = arith.constant 4 : i32
      %44 = arith.addi %c0_i32_29, %c4_i32 : i32
      %c1_i32_30 = arith.constant 1 : i32
      scf.for %arg9 = %c0_i32_29 to %44 step %c1_i32_30  : i32 {
        %c1_i32_32 = arith.constant 1 : i32
        %45 = arith.muli %arg9, %c1_i32_32 : i32
        %c0_i32_33 = arith.constant 0 : i32
        %46 = arith.addi %c0_i32_33, %45 : i32
        %c512_i32_34 = arith.constant 512 : i32
        %47 = arith.muli %46, %c512_i32_34 : i32
        %48 = tpu.assume_multiple %47, 512 : i32
        %49 = arith.index_cast %48 : i32 to index
        %c0_35 = arith.constant 0 : index
        %50 = vector.load %arg6[%49, %c0_35] : memref<2048x128xf32, #tpu.memory_space<vmem>>, vector<512x128xf32>
        %51 = vector.broadcast %40 : vector<1x128xf32> to vector<512x128xf32>
        %52 = arith.mulf %50, %51 : vector<512x128xf32>
        %53 = vector.broadcast %43 : vector<1x128xf32> to vector<512x128xf32>
        %54 = arith.addf %52, %53 : vector<512x128xf32>
        %cst_36 = arith.constant 0.000000e+00 : f32
        %55 = vector.broadcast %cst_36 : f32 to vector<512x128xf32>
        %56 = arith.maximumf %54, %55 : vector<512x128xf32>
        %57 = arith.index_cast %48 : i32 to index
        %c0_37 = arith.constant 0 : index
        %58 = vector.load %arg6[%57, %c0_37] : memref<2048x128xf32, #tpu.memory_space<vmem>>, vector<512x128xf32>
        tpu.vector_store %arg6[%57, %c0_37], %56 {strides = array<i32>} : memref<2048x128xf32, #tpu.memory_space<vmem>>, vector<512x128xf32>,
      }
      %c4_i32_31 = arith.constant 4 : i32
    } else {
    }
    return
  }
  func.func @transform_0(%arg0: i32, %arg1: i32) -> (i32, i32, i32) {
    %c0_i32 = arith.constant 0 : i32
    %c0_i32_0 = arith.constant 0 : i32
    return %arg0, %arg1, %c0_i32 : i32, i32, i32
  }
  func.func @transform_1(%arg0: i32, %arg1: i32) -> (i32, i32, i32) {
    %c0_i32 = arith.constant 0 : i32
    %c0_i32_0 = arith.constant 0 : i32
    %c0_i32_1 = arith.constant 0 : i32
    return %arg0, %c0_i32, %c0_i32_0 : i32, i32, i32
  }
  func.func @transform_2(%arg0: i32, %arg1: i32) -> (i32, i32) {
    %c0_i32 = arith.constant 0 : i32
    %c0_i32_0 = arith.constant 0 : i32
    %c0_i32_1 = arith.constant 0 : i32
    return %c0_i32, %c0_i32_0 : i32, i32
  }
  func.func @transform_3(%arg0: i32, %arg1: i32) -> (i32, i32) {
    %c0_i32 = arith.constant 0 : i32
    %c0_i32_0 = arith.constant 0 : i32
    %c0_i32_1 = arith.constant 0 : i32
    return %c0_i32, %c0_i32_0 : i32, i32
  }
  func.func @transform_4(%arg0: i32, %arg1: i32) -> (i32, i32) {
    %c0_i32 = arith.constant 0 : i32
    %c0_i32_0 = arith.constant 0 : i32
    %c0_i32_1 = arith.constant 0 : i32
    return %c0_i32, %c0_i32_0 : i32, i32
  }
}

module attributes {stable_mosaic.version = 11 : i64} {
  func.func @_fused_layer_kernel(%arg0: i32, %arg1: i32, %arg2: memref<1x512x32xbf16, #tpu.memory_space<vmem>>, %arg3: memref<1x32x128xbf16, #tpu.memory_space<vmem>>, %arg4: memref<1x128xf32, #tpu.memory_space<vmem>>, %arg5: memref<1x128xf32, #tpu.memory_space<vmem>>, %arg6: memref<8192x128xf32, #tpu.memory_space<vmem>>, %arg7: memref<1x128xf32, #tpu.memory_space<vmem>>, %arg8: memref<1x128xf32, #tpu.memory_space<vmem>>) attributes {dimension_semantics = [#tpu.dimension_semantics<arbitrary>, #tpu.dimension_semantics<arbitrary>], iteration_bounds = array<i64: 4, 4>, scalar_prefetch = 0 : i64, scratch_operands = 2 : i64, tpu.core_type = #tpu.core_type<tc>, window_params = [{transform_indices = @transform_0, window_bounds = array<i64: 1, 512, 32>}, {transform_indices = @transform_1, window_bounds = array<i64: 1, 32, 128>}, {pipeline_mode = #tpu.pipeline_mode<synchronous>, transform_indices = @transform_2, window_bounds = array<i64: 1, 128>}, {pipeline_mode = #tpu.pipeline_mode<synchronous>, transform_indices = @transform_3, window_bounds = array<i64: 1, 128>}, {pipeline_mode = #tpu.pipeline_mode<synchronous>, transform_indices = @transform_4, window_bounds = array<i64: 8192, 128>}]} {
    %c4_i32 = arith.constant 4 : i32
    %0 = arith.muli %arg0, %c4_i32 : i32
    %1 = arith.addi %0, %arg1 : i32
    %c0 = arith.constant 0 : index
    %c0_0 = arith.constant 0 : index
    %c0_1 = arith.constant 0 : index
    %2 = vector.load %arg2[%c0, %c0_0, %c0_1] : memref<1x512x32xbf16, #tpu.memory_space<vmem>>, vector<1x512x32xbf16>
    %3 = vector.shape_cast %2 : vector<1x512x32xbf16> to vector<512x32xbf16>
    %c0_2 = arith.constant 0 : index
    %c0_3 = arith.constant 0 : index
    %c0_4 = arith.constant 0 : index
    %4 = vector.load %arg3[%c0_2, %c0_3, %c0_4] : memref<1x32x128xbf16, #tpu.memory_space<vmem>>, vector<1x32x128xbf16>
    %5 = vector.shape_cast %4 : vector<1x32x128xbf16> to vector<32x128xbf16>
    %cst = arith.constant dense<0.000000e+00> : vector<512x128xf32>
    %6 = tpu.matmul %3, %5, %cst {dimension_numbers = #tpu.dot_dimension_numbers<[1], [0], [0], [1], [0, 0, 1, 1], [], []>} : vector<512x32xbf16>, vector<32x128xbf16>, vector<512x128xf32> -> vector<512x128xf32>
    %c512_i32 = arith.constant 512 : i32
    %7 = arith.muli %1, %c512_i32 : i32
    %8 = tpu.assume_multiple %7, 512 : i32
    %9 = arith.index_cast %8 : i32 to index
    %c0_5 = arith.constant 0 : index
    %10 = vector.load %arg6[%9, %c0_5] : memref<8192x128xf32, #tpu.memory_space<vmem>>, vector<512x128xf32>
    tpu.vector_store %arg6[%9, %c0_5], %6 {strides = array<i32>} : memref<8192x128xf32, #tpu.memory_space<vmem>>, vector<512x128xf32>,
    %c15_i32 = arith.constant 15 : i32
    %11 = arith.cmpi eq, %1, %c15_i32 : i32
    %12 = arith.extui %11 : i1 to i32
    %c0_i32 = arith.constant 0 : i32
    %13 = arith.cmpi ne, %12, %c0_i32 : i32
    scf.if %13 {
      %c0_i32_6 = arith.constant 0 : i32
      %c16_i32 = arith.constant 16 : i32
      %14 = arith.addi %c0_i32_6, %c16_i32 : i32
      %c1_i32 = arith.constant 1 : i32
      scf.for %arg9 = %c0_i32_6 to %14 step %c1_i32  : i32 {
        %c1_i32_8 = arith.constant 1 : i32
        %15 = arith.muli %arg9, %c1_i32_8 : i32
        %c0_i32_9 = arith.constant 0 : i32
        %16 = arith.addi %c0_i32_9, %15 : i32
        %c512_i32_10 = arith.constant 512 : i32
        %17 = arith.muli %16, %c512_i32_10 : i32
        %18 = tpu.assume_multiple %17, 512 : i32
        %19 = arith.index_cast %18 : i32 to index
        %c0_11 = arith.constant 0 : index
        %20 = vector.load %arg6[%19, %c0_11] : memref<8192x128xf32, #tpu.memory_space<vmem>>, vector<512x128xf32>
        %21 = math.tanh %20 : vector<512x128xf32>
        %22 = arith.index_cast %18 : i32 to index
        %c0_12 = arith.constant 0 : index
        %23 = vector.load %arg6[%22, %c0_12] : memref<8192x128xf32, #tpu.memory_space<vmem>>, vector<512x128xf32>
        tpu.vector_store %arg6[%22, %c0_12], %21 {strides = array<i32>} : memref<8192x128xf32, #tpu.memory_space<vmem>>, vector<512x128xf32>,
      }
      %c16_i32_7 = arith.constant 16 : i32
    } else {
    }
    return
  }
  func.func @transform_0(%arg0: i32, %arg1: i32) -> (i32, i32, i32) {
    %c0_i32 = arith.constant 0 : i32
    %c0_i32_0 = arith.constant 0 : i32
    return %arg0, %arg1, %c0_i32 : i32, i32, i32
  }
  func.func @transform_1(%arg0: i32, %arg1: i32) -> (i32, i32, i32) {
    %c0_i32 = arith.constant 0 : i32
    %c0_i32_0 = arith.constant 0 : i32
    %c0_i32_1 = arith.constant 0 : i32
    return %arg0, %c0_i32, %c0_i32_0 : i32, i32, i32
  }
  func.func @transform_2(%arg0: i32, %arg1: i32) -> (i32, i32) {
    %c0_i32 = arith.constant 0 : i32
    %c0_i32_0 = arith.constant 0 : i32
    %c0_i32_1 = arith.constant 0 : i32
    return %c0_i32, %c0_i32_0 : i32, i32
  }
  func.func @transform_3(%arg0: i32, %arg1: i32) -> (i32, i32) {
    %c0_i32 = arith.constant 0 : i32
    %c0_i32_0 = arith.constant 0 : i32
    %c0_i32_1 = arith.constant 0 : i32
    return %c0_i32, %c0_i32_0 : i32, i32
  }
  func.func @transform_4(%arg0: i32, %arg1: i32) -> (i32, i32) {
    %c0_i32 = arith.constant 0 : i32
    %c0_i32_0 = arith.constant 0 : i32
    %c0_i32_1 = arith.constant 0 : i32
    return %c0_i32, %c0_i32_0 : i32, i32
  }
}

</mosaic_0001>

<bundles_post_ra>
// kernel: generator_forward.5
= control target key start
LH: loop header
LB: loop body
LE: loop exit
PB: predicated region body
PF: predicated region fallthrough
CT: control target
= control target key end

     0   :  { %v401_v20 = vmov 0.0   ;;  %s505_s1 = inlined_call_operand.vmem [shape: bf16[1,256,128], index: 1, kind: input, shape index: {}]   ;;  %s506_s0 = inlined_call_operand.vmem [shape: bf16[1,32,256], index: 0, kind: input, shape index: {}]   ;;  %s507_s2 = inlined_call_operand.vmem [shape: f32[1,128], index: 2, kind: input, shape index: {}]   ;;  %s508_s3 = inlined_call_operand.vmem [shape: f32[1,128], index: 3, kind: input, shape index: {}]   ;;  %s509_s4 = inlined_call_operand.vmem [shape: f32[32,128], index: 4, kind: output, shape index: {}]  }
   0x1   :  { %v377_v0 = vld [vmem:[%s505_s1 + $0x40] sm:$0xff]   ;;  %v379_v2 = vld [vmem:[%s505_s1 + $0x48] sm:$0xff]   ;;  %v381_v4 = vld [vmem:[%s505_s1 + $0x50] sm:$0xff]   ;;  %23 = vst [vmem:[#allocation2] sm:$0x1] %v401_v20 }
   0x2   :  { %v378_v1 = vld [vmem:[%s505_s1] sm:$0xff]   ;;  %332 = vmatprep.subr.bf16.mxu0 %v377_v0  ;;  %360 = vmatprep.subr.bf16.mxu1 %v377_v0  ;;  %v380_v3 = vld [vmem:[%s505_s1 + $0x8] sm:$0xff]   ;;  %v382_v5 = vld [vmem:[%s505_s1 + $0x10] sm:$0xff]   ;;  %24 = vst [vmem:[#allocation3] sm:$0x1] %v401_v20 }
   0x3   :  { %333 = vmatpush3.bf16.msra.mxu0 %v378_v1  ;;  %368 = vmatpush3.bf16.msra.mxu1 %v378_v1  ;;  %v383_v6 = vld [vmem:[%s505_s1 + $0x58] sm:$0xff]   ;;  %v385_v8 = vld [vmem:[%s505_s1 + $0x60] sm:$0xff]   ;;  %v387_v10 = vld [vmem:[%s505_s1 + $0x68] sm:$0xff]  }
   0x4   :  { %334 = vmatprep.subr.bf16.mxu0 %v379_v2  ;;  %361 = vmatprep.subr.bf16.mxu1 %v379_v2  ;;  %v384_v7 = vld [vmem:[%s505_s1 + $0x18] sm:$0xff]   ;;  %v386_v9 = vld [vmem:[%s505_s1 + $0x20] sm:$0xff]   ;;  %v388_v13 = vld [vmem:[%s505_s1 + $0x28] sm:$0xff]   ;;  %v281_v2 = vlaneseq }
   0x5   :  { %v395_v11 = vld [vmem:[%s506_s0 + $0x4] ss:$8 sps:$4 sm:$0xff]   ;;  %v398_v12 = vld [vmem:[%s506_s0 + $0x14] ss:$8 sps:$4 sm:$0xff]   ;;  %v393_v18 = vld [vmem:[%s506_s0] ss:$8 sps:$4 sm:$0xff]  }
   0x6   :  { %v389_v14 = vld [vmem:[%s505_s1 + $0x70] sm:$0xff]   ;;  %209 = vmatprep.mubr.bf16.mxu0 %v395_v11  ;;  %217 = vmatprep.mubr.bf16.mxu1 %v398_v12  ;;  %v391_v16 = vld [vmem:[%s505_s1 + $0x78] sm:$0xff]  }
   0x7   :  { %335 = vmatpush3.bf16.msra.mxu0 %v380_v3  ;;  %369 = vmatpush3.bf16.msra.mxu1 %v380_v3  ;;  %v390_v15 = vld [vmem:[%s505_s1 + $0x30] sm:$0xff]   ;;  %v392_v17 = vld [vmem:[%s505_s1 + $0x38] sm:$0xff]   ;;  %v282_v3 = vshrl.u32 %v281_v2, 7 }
   0x8   :  { %336 = vmatprep.subr.bf16.mxu0 %v381_v4  ;;  %362 = vmatprep.subr.bf16.mxu1 %v381_v4  ;;  %v396_v19 = vld [vmem:[%s506_s0 + $0x10] ss:$8 sps:$4 sm:$0xff]   ;;  %v232_v52 = vld [vmem:[#allocation2] sm:$0x1] }
   0x9   :  { %v244_v55 = vld [vmem:[#allocation3] sm:$0x1]  ;;  %v269_v4 = vld [vmem:[%s507_s2] sm:$0x1] }
   0xb   :  { %337 = vmatpush3.bf16.msra.mxu0 %v382_v5  ;;  %370 = vmatpush3.bf16.msra.mxu1 %v382_v5  ;;  %v283_v5 = vsub.s32 0, %v282_v3 }
   0xc   :  { %338 = vmatprep.subr.bf16.mxu0 %v383_v6  ;;  %363 = vmatprep.subr.bf16.mxu1 %v383_v6 }
   0xf   :  { %339 = vmatpush3.bf16.msra.mxu0 %v384_v7  ;;  %371 = vmatpush3.bf16.msra.mxu1 %v384_v7 }
  0x10   :  { %340 = vmatprep.subr.bf16.mxu0 %v385_v8  ;;  %364 = vmatprep.subr.bf16.mxu1 %v385_v8  ;;  %v273_v8 = vld [vmem:[%s508_s3] sm:$0x1] }
  0x13   :  { %341 = vmatpush3.bf16.msra.mxu0 %v386_v9  ;;  %372 = vmatpush3.bf16.msra.mxu1 %v386_v9 }
  0x14   :  { %342 = vmatprep.subr.bf16.mxu0 %v387_v10  ;;  %365 = vmatprep.subr.bf16.mxu1 %v387_v10 }
  0x17   :  { %343 = vmatpush3.bf16.msra.mxu0 %v388_v13  ;;  %373 = vmatpush3.bf16.msra.mxu1 %v388_v13 }
  0x18   :  { %344 = vmatprep.subr.bf16.mxu0 %v389_v14  ;;  %366 = vmatprep.subr.bf16.mxu1 %v389_v14 }
  0x1b   :  { %345 = vmatpush3.bf16.msra.mxu0 %v390_v15  ;;  %374 = vmatpush3.bf16.msra.mxu1 %v390_v15 }
  0x1c   :  { %346 = vmatprep.subr.bf16.mxu0 %v391_v16  ;;  %367 = vmatprep.subr.bf16.mxu1 %v391_v16 }
  0x1f   :  { %347 = vmatpush3.bf16.msra.mxu0 %v392_v17  ;;  %375 = vmatpush3.bf16.msra.mxu1 %v392_v17 }
  0x22   :  { %210 = vmatmul.mubr.bf16.vlgmr.msra.gmra.mrb[0].mxu0 %v393_v18  ;;  %218 = vmatmul.mubr.bf16.vlgmr.msra.gmra.mrb[0].mxu1 %v396_v19 }
  0xf5   :  { %v348_v21 = vpop.f32.mrb[0].mxu0  ;;  %v354_v22 = vpop.f32.mrb[0].mxu1 }
  0xf6   :  { %v349_v23 = vpop.f32.mrb[1].mxu0  ;;  %v355_v24 = vpop.f32.mrb[1].mxu1 }
  0xf7   :  { %v350_v25 = vadd.f32 %v349_v23, %v348_v21  ;;  %v351_v26 = vpop.f32.mrb[2].mxu0  ;;  %v356_v27 = vadd.f32 %v355_v24, %v354_v22  ;;  %v357_v28 = vpop.f32.mrb[2].mxu1 }
  0xf8   :  { %v352_v29 = vpop.f32.mrb[3].mxu0  ;;  %v358_v30 = vpop.f32.mrb[3].mxu1 }
  0xf9   :  { %v353_v31 = vadd.f32 %v352_v29, %v351_v26  ;;  %v359_v32 = vadd.f32 %v358_v30, %v357_v28  ;;  %v245_v33 = vmul.f32 %v350_v25, %v350_v25  ;;  %v247_v34 = vmul.f32 %v356_v27, %v356_v27 }
  0xfb   :  { %v233_v35 = vadd.f32 %v353_v31, %v350_v25  ;;  %v246_v36 = vmul.f32 %v353_v31, %v353_v31  ;;  %v248_v40 = vmul.f32 %v359_v32, %v359_v32 }
  0xfd   :  { %v249_v37 = vadd.f32 %v246_v36, %v245_v33  ;;  %v234_v38 = vadd.f32 %v356_v27, %v233_v35 }
  0xff   :  { %v235_v39 = vadd.f32 %v359_v32, %v234_v38  ;;  %v250_v41 = vadd.f32 %v249_v37, %v247_v34 }
 0x101   :  { %v236_v42 = vrot.slane %v235_v39, 4  ;;  %v251_v43 = vadd.f32 %v250_v41, %v248_v40 }
 0x103   :  { %v237_v44 = vadd.f32 %v236_v42, %v235_v39  ;;  %v252_v45 = vrot.slane %v251_v43, 4 }
 0x105   :  { %v238_v46 = vrot.slane %v237_v44, 2  ;;  %v253_v47 = vadd.f32 %v252_v45, %v251_v43 }
 0x107   :  { %v239_v48 = vadd.f32 %v238_v46, %v237_v44  ;;  %v254_v49 = vrot.slane %v253_v47, 2 }
 0x109   :  { %v240_v50 = vrot.slane %v239_v48, 1  ;;  %v255_v51 = vadd.f32 %v254_v49, %v253_v47 }
 0x10b   :  { %v241_v53 = vadd.f32 %v240_v50, %v239_v48  ;;  %v256_v54 = vrot.slane %v255_v51, 1 }
 0x10d   :  { %v242_v56 = vadd.f32 %v241_v53, %v232_v52  ;;  %v257_v57 = vadd.f32 %v256_v54, %v255_v51 }
 0x10f   :  { %243 = vst [vmem:[#allocation2] sm:$0x1] %v242_v56  ;;  %v258_v58 = vadd.f32 %v257_v57, %v244_v55 }
 0x111   :  { %259 = vst [vmem:[#allocation3] sm:$0x1] %v258_v58 }
 0x116   :  { %v263_v59 = vld [vmem:[#allocation2] sm:$0x1] }
 0x117   :  { %v264_v60 = vmul.f32 0.03125, %v263_v59 }
 0x118   :  { %v265_v61 = vld [vmem:[#allocation3] sm:$0x1] }
 0x119   :  { %v266_v62 = vmul.f32 0.03125, %v265_v61  ;;  %v267_v63 = vmul.f32 %v264_v60, %v264_v60 }
 0x11b   :  { %v268_v0 = vsub.f32 %v266_v62, %v267_v63 }
 0x11d   :  { %v270_v1 = vadd.f32 1e-05, %v268_v0 }
 0x11f   :  { %399 = vrsqrt.f32 %v270_v1 }
 0x129   :  { %v400_v6 = vpop.eup %399 }
 0x12a   :  { %v272_v7 = vmul.f32 %v400_v6, %v269_v4 }
 0x12c   :  { %v274_v9 = vmul.f32 %v272_v7, %v264_v60  ;;  %v284_v10 = vrot.slane %v272_v7, %v283_v5 }
 0x12e   :  { %v275_v11 = vsub.f32 %v273_v8, %v274_v9  ;;  %v286_v12 = vmul.f32 %v350_v25, %v284_v10  ;;  %v287_v13 = vmul.f32 %v353_v31, %v284_v10  ;;  %v288_v14 = vmul.f32 %v356_v27, %v284_v10 }
 0x12f   :  { %v289_v15 = vmul.f32 %v359_v32, %v284_v10 }
 0x130   :  { %v294_v16 = vrot.slane %v275_v11, %v283_v5 }
 0x132   :  { %v296_v17 = vadd.f32 %v294_v16, %v286_v12  ;;  %v297_v18 = vadd.f32 %v294_v16, %v287_v13  ;;  %v298_v19 = vadd.f32 %v294_v16, %v288_v14  ;;  %v299_v20 = vadd.f32 %v294_v16, %v289_v15 }
 0x134   :  { %v300_v21 = vmax.f32 %v296_v17, 0.0  ;;  %v301_v22 = vmax.f32 %v297_v18, 0.0  ;;  %v302_v23 = vmax.f32 %v298_v19, 0.0  ;;  %v303_v24 = vmax.f32 %v299_v20, 0.0 }
 0x136   :  { %304 = vst [vmem:[%s509_s4] sm:$0xff] %v300_v21  ;;  %305 = vst [vmem:[%s509_s4 + $0x8] sm:$0xff] %v301_v22 }
 0x137   :  { %306 = vst [vmem:[%s509_s4 + $0x10] sm:$0xff] %v302_v23  ;;  %307 = vst [vmem:[%s509_s4 + $0x18] sm:$0xff] %v303_v24 }

// kernel: generator_forward.6
= control target key start
LH: loop header
LB: loop body
LE: loop exit
PB: predicated region body
PF: predicated region fallthrough
CT: control target
= control target key end

     0   :  { %s796_s15 = smov 0   ;;  %s798_s16 = smov 0   ;;  %s881_s0 = inlined_call_operand.vmem [shape: bf16[4,32,256], index: 0, kind: input, shape index: {}]   ;;  %s882_s1 = inlined_call_operand.vmem [shape: bf16[4,256,128], index: 1, kind: input, shape index: {}]   ;;  %s883_s2 = inlined_call_operand.vmem [shape: f32[1,128], index: 2, kind: input, shape index: {}]   ;;  %s884_s3 = inlined_call_operand.vmem [shape: f32[1,128], index: 3, kind: input, shape index: {}]   ;;  %s885_s4 = inlined_call_operand.vmem [shape: f32[128,128], index: 4, kind: output, shape index: {}]  }
   0x1   :  { %s800_s17 = smov 0  }
   0x2 LB: > { %s26_s18 = sadd.s32 1, %s760_s16  ;;  %p604_p0 = scmp.ge.s32.totalorder %s764_s17, 1  ;;  %s764_s17 = sphi %s800_s17, %s14_s17   ;;  %s760_s16 = sphi %s798_s16, %s887_s16   ;;  %s756_s15 = sphi %s796_s15, %s886_s15  }
   0x3   : > { %p28_p1 = scmp.ge.s32.totalorder %s26_s18, 4  ;;  %p187_p2 = scmp.lt.s32.totalorder %s764_s17, 5 }
   0x5   : > { %s889_s18 = smov (%p28_p1, %s26_s18), 0  ;;  %p188_p3 = pnand %p604_p0, %p187_p2 }
   0x6   : > { %p219_p4 = scmp.lt.s32.totalorder (!%p188_p3), %s756_s15, 3  ;;  %p609_p5 = scmp.ne.s32.totalorder (!%p188_p3), %s756_s15, 0 }
   0x7   : > { %191 = sbr.rel (%p188_p3) target bundleno = 340 (0x154), region = 36 }
   0xe   : > { %s220_s19 = scalar_select %p219_p4, %s756_s15, 3 }
   0xf   : > { %239 = sbr.rel (%p609_p5) target bundleno = 22 (0x16), region = 40  ;;  %v770_v0 = vmov (!%p609_p5), 0.0  }
  0x10   : > { %s635_s20 = sshll.u32 %s220_s19, 5  ;;  %s636_s21 = sshll.u32 %s220_s19, 7  ;;  %240 = vst [vmem:[#allocation2] sm:$0x1] (!%p609_p5), %v770_v0  ;;  %241 = vst [vmem:[#allocation3] sm:$0x1] (!%p609_p5), %v770_v0 }
  0x11   : > { %s821_s24 = scalar_lea.vmem %s881_s0, %s635_s20  ;;  %s826_s27 = scalar_lea.vmem %s882_s1, %s636_s21 }
  0x16 PF: > { %v714_v1 = vld [vmem:[%s826_s27 + $0x40] sm:$0xff]   ;;  %v716_v3 = vld [vmem:[%s826_s27 + $0x48] sm:$0xff]   ;;  %v718_v5 = vld [vmem:[%s826_s27 + $0x50] sm:$0xff]   ;;  %s630_s28 = sshll.u32 %s756_s15, 5  ;;  %p631_p6 = scmp.ne.s32.totalorder %s756_s15, 3 }
  0x17   : > { %v715_v2 = vld [vmem:[%s826_s27] sm:$0xff]   ;;  %637 = vmatprep.subr.bf16.mxu0 %v714_v1  ;;  %665 = vmatprep.subr.bf16.mxu1 %v714_v1  ;;  %v717_v4 = vld [vmem:[%s826_s27 + $0x8] sm:$0xff]   ;;  %v719_v6 = vld [vmem:[%s826_s27 + $0x10] sm:$0xff]   ;;  %s444_s5 = scalar_lea.vmem %s885_s4, %s630_s28  ;;  %s860_s10 = smov (!%p631_p6), 0  }
  0x18   : > { %638 = vmatpush3.bf16.msra.mxu0 %v715_v2  ;;  %673 = vmatpush3.bf16.msra.mxu1 %v715_v2  ;;  %v720_v7 = vld [vmem:[%s826_s27 + $0x58] sm:$0xff]   ;;  %v722_v9 = vld [vmem:[%s826_s27 + $0x60] sm:$0xff]   ;;  %v724_v11 = vld [vmem:[%s826_s27 + $0x68] sm:$0xff]  }
  0x19   : > { %639 = vmatprep.subr.bf16.mxu0 %v716_v3  ;;  %666 = vmatprep.subr.bf16.mxu1 %v716_v3  ;;  %v721_v8 = vld [vmem:[%s826_s27 + $0x18] sm:$0xff]   ;;  %v723_v10 = vld [vmem:[%s826_s27 + $0x20] sm:$0xff]   ;;  %v725_v14 = vld [vmem:[%s826_s27 + $0x28] sm:$0xff]  }
  0x1a   : > { %v732_v12 = vld [vmem:[%s821_s24 + $0x4] ss:$8 sps:$4 sm:$0xff]   ;;  %v735_v13 = vld [vmem:[%s821_s24 + $0x14] ss:$8 sps:$4 sm:$0xff]   ;;  %v730_v19 = vld [vmem:[%s821_s24] ss:$8 sps:$4 sm:$0xff]  }
  0x1b   : > { %v726_v15 = vld [vmem:[%s826_s27 + $0x70] sm:$0xff]   ;;  %426 = vmatprep.mubr.bf16.mxu0 %v732_v12  ;;  %434 = vmatprep.mubr.bf16.mxu1 %v735_v13  ;;  %v728_v17 = vld [vmem:[%s826_s27 + $0x78] sm:$0xff]   ;;  %v449_v52 = vld [vmem:[#allocation2] sm:$0x1] }
  0x1c   : > { %640 = vmatpush3.bf16.msra.mxu0 %v717_v4  ;;  %674 = vmatpush3.bf16.msra.mxu1 %v717_v4  ;;  %v727_v16 = vld [vmem:[%s826_s27 + $0x30] sm:$0xff]   ;;  %v729_v18 = vld [vmem:[%s826_s27 + $0x38] sm:$0xff]   ;;  %v461_v55 = vld [vmem:[#allocation3] sm:$0x1] }
  0x1d   : > { %641 = vmatprep.subr.bf16.mxu0 %v718_v5  ;;  %667 = vmatprep.subr.bf16.mxu1 %v718_v5  ;;  %v733_v20 = vld [vmem:[%s821_s24 + $0x10] ss:$8 sps:$4 sm:$0xff]   ;;  %v487_v2 = vld [vmem:[%s883_s2] sm:$0x1] (!%p631_p6) }
  0x1e   : > { %v491_v5 = vld [vmem:[%s884_s3] sm:$0x1] (!%p631_p6) }
  0x20   : > { %642 = vmatpush3.bf16.msra.mxu0 %v719_v6  ;;  %675 = vmatpush3.bf16.msra.mxu1 %v719_v6 }
  0x21   : > { %643 = vmatprep.subr.bf16.mxu0 %v720_v7  ;;  %668 = vmatprep.subr.bf16.mxu1 %v720_v7 }
  0x24   : > { %644 = vmatpush3.bf16.msra.mxu0 %v721_v8  ;;  %676 = vmatpush3.bf16.msra.mxu1 %v721_v8 }
  0x25   : > { %645 = vmatprep.subr.bf16.mxu0 %v722_v9  ;;  %669 = vmatprep.subr.bf16.mxu1 %v722_v9 }
  0x28   : > { %646 = vmatpush3.bf16.msra.mxu0 %v723_v10  ;;  %677 = vmatpush3.bf16.msra.mxu1 %v723_v10 }
  0x29   : > { %647 = vmatprep.subr.bf16.mxu0 %v724_v11  ;;  %670 = vmatprep.subr.bf16.mxu1 %v724_v11 }
  0x2c   : > { %648 = vmatpush3.bf16.msra.mxu0 %v725_v14  ;;  %678 = vmatpush3.bf16.msra.mxu1 %v725_v14 }
  0x2d   : > { %649 = vmatprep.subr.bf16.mxu0 %v726_v15  ;;  %671 = vmatprep.subr.bf16.mxu1 %v726_v15 }
  0x30   : > { %650 = vmatpush3.bf16.msra.mxu0 %v727_v16  ;;  %679 = vmatpush3.bf16.msra.mxu1 %v727_v16 }
  0x31   : > { %651 = vmatprep.subr.bf16.mxu0 %v728_v17  ;;  %672 = vmatprep.subr.bf16.mxu1 %v728_v17 }
  0x34   : > { %652 = vmatpush3.bf16.msra.mxu0 %v729_v18  ;;  %680 = vmatpush3.bf16.msra.mxu1 %v729_v18 }
  0x37   : > { %427 = vmatmul.mubr.bf16.vlgmr.msra.gmra.mrb[0].mxu0 %v730_v19  ;;  %435 = vmatmul.mubr.bf16.vlgmr.msra.gmra.mrb[0].mxu1 %v733_v20 }
 0x10a   : > { %v653_v21 = vpop.f32.mrb[0].mxu0  ;;  %v659_v22 = vpop.f32.mrb[0].mxu1 }
 0x10b   : > { %v654_v23 = vpop.f32.mrb[1].mxu0  ;;  %v660_v24 = vpop.f32.mrb[1].mxu1 }
 0x10c   : > { %v655_v25 = vadd.f32 %v654_v23, %v653_v21  ;;  %v656_v26 = vpop.f32.mrb[2].mxu0  ;;  %v661_v27 = vadd.f32 %v660_v24, %v659_v22  ;;  %v662_v28 = vpop.f32.mrb[2].mxu1 }
 0x10d   : > { %v657_v29 = vpop.f32.mrb[3].mxu0  ;;  %v663_v30 = vpop.f32.mrb[3].mxu1 }
 0x10e   : > { %445 = vst [vmem:[%s444_s5] sm:$0xff] %v655_v25  ;;  %447 = vst [vmem:[%s444_s5 + $0x10] sm:$0xff] %v661_v27  ;;  %v658_v31 = vadd.f32 %v657_v29, %v656_v26  ;;  %v664_v32 = vadd.f32 %v663_v30, %v662_v28  ;;  %v462_v33 = vmul.f32 %v655_v25, %v655_v25 }
 0x10f   : > { %v464_v34 = vmul.f32 %v661_v27, %v661_v27 }
 0x110   : > { %446 = vst [vmem:[%s444_s5 + $0x8] sm:$0xff] %v658_v31  ;;  %v450_v35 = vadd.f32 %v658_v31, %v655_v25  ;;  %v463_v36 = vmul.f32 %v658_v31, %v658_v31  ;;  %448 = vst [vmem:[%s444_s5 + $0x18] sm:$0xff] %v664_v32  ;;  %v465_v40 = vmul.f32 %v664_v32, %v664_v32 }
 0x112   : > { %v466_v37 = vadd.f32 %v463_v36, %v462_v33  ;;  %v451_v38 = vadd.f32 %v661_v27, %v450_v35 }
 0x114   : > { %v452_v39 = vadd.f32 %v664_v32, %v451_v38  ;;  %v467_v41 = vadd.f32 %v466_v37, %v464_v34 }
 0x116   : > { %v453_v42 = vrot.slane %v452_v39, 4  ;;  %v468_v43 = vadd.f32 %v467_v41, %v465_v40 }
 0x118   : > { %v454_v44 = vadd.f32 %v453_v42, %v452_v39  ;;  %v469_v45 = vrot.slane %v468_v43, 4 }
 0x11a   : > { %v455_v46 = vrot.slane %v454_v44, 2  ;;  %v470_v47 = vadd.f32 %v469_v45, %v468_v43 }
 0x11c   : > { %v456_v48 = vadd.f32 %v455_v46, %v454_v44  ;;  %v471_v49 = vrot.slane %v470_v47, 2 }
 0x11e   : > { %v457_v50 = vrot.slane %v456_v48, 1  ;;  %v472_v51 = vadd.f32 %v471_v49, %v470_v47 }
 0x120   : > { %v458_v53 = vadd.f32 %v457_v50, %v456_v48  ;;  %v473_v54 = vrot.slane %v472_v51, 1  ;;  %480 = sbr.rel (%p631_p6) target bundleno = 340 (0x154), region = 44 }
 0x122   : > { %v459_v56 = vadd.f32 %v458_v53, %v449_v52  ;;  %v474_v57 = vadd.f32 %v473_v54, %v472_v51 }
 0x124   : > { %460 = vst [vmem:[#allocation2] sm:$0x1] %v459_v56  ;;  %v475_v58 = vadd.f32 %v474_v57, %v461_v55 }
 0x126   : > { %476 = vst [vmem:[#allocation3] sm:$0x1] %v475_v58 }
 0x12b   : > { %v481_v59 = vld [vmem:[#allocation2] sm:$0x1] }
 0x12c   : > { %v482_v61 = vmul.f32 0.0078125, %v481_v59 }
 0x12d   : > { %v483_v60 = vld [vmem:[#allocation3] sm:$0x1] }
 0x12e   : > { %v484_v62 = vmul.f32 0.0078125, %v483_v60  ;;  %v485_v63 = vmul.f32 %v482_v61, %v482_v61 }
 0x130   : > { %v486_v0 = vsub.f32 %v484_v62, %v485_v63 }
 0x132   : > { %v488_v1 = vadd.f32 1e-05, %v486_v0 }
 0x134   : > { %736 = vrsqrt.f32 %v488_v1 }
 0x13e   : > { %v737_v3 = vpop.eup %736 }
 0x13f   : > { %v490_v4 = vmul.f32 %v737_v3, %v487_v2 }
 0x141   : > { %v492_v6 = vmul.f32 %v490_v4, %v482_v61 }
 0x143   : > { %v493_v7 = vsub.f32 %v491_v5, %v492_v6 }
 0x144 LB: >> { %v507_v8 = vlaneseq  ;;  %s632_s11 = sshll.u32 %s768_s10, 5  ;;  %s499_s10 = sadd.s32 1, %s768_s10   ;;  %s768_s10 = sphi %s860_s10, %s499_s10  }
 0x145   : >> { %s501_s14 = scalar_lea.vmem %s885_s4, %s632_s11  ;;  %p496_p7 = scmp.ge.s32.totalorder %s499_s10, 4  }
 0x146   : >> { %v508_v9 = vshrl.u32 %v507_v8, 7  ;;  %v502_v10 = vld [vmem:[%s501_s14] sm:$0xff]  ;;  %v503_v12 = vld [vmem:[%s501_s14 + $0x8] sm:$0xff]  ;;  %v504_v13 = vld [vmem:[%s501_s14 + $0x10] sm:$0xff] }
 0x147   : >> { %v505_v14 = vld [vmem:[%s501_s14 + $0x18] sm:$0xff] }
 0x148   : >> { %v509_v11 = vsub.s32 0, %v508_v9 }
 0x14a   : >> { %v510_v15 = vrot.slane %v490_v4, %v509_v11  ;;  %v520_v16 = vrot.slane %v493_v7, %v509_v11 }
 0x14c   : >> { %v512_v17 = vmul.f32 %v510_v15, %v502_v10  ;;  %v513_v18 = vmul.f32 %v510_v15, %v503_v12  ;;  %v514_v19 = vmul.f32 %v510_v15, %v504_v13  ;;  %v515_v20 = vmul.f32 %v510_v15, %v505_v14 }
 0x14d   : > { %498 = sbr.rel (!%p496_p7) target bundleno = 324 (0x144), region = 82 }
 0x14e   : >> { %v522_v21 = vadd.f32 %v520_v16, %v512_v17  ;;  %v523_v22 = vadd.f32 %v520_v16, %v513_v18  ;;  %v524_v23 = vadd.f32 %v520_v16, %v514_v19  ;;  %v525_v24 = vadd.f32 %v520_v16, %v515_v20 }
 0x150   : >> { %v526_v25 = vmax.f32 %v522_v21, 0.0  ;;  %v527_v26 = vmax.f32 %v523_v22, 0.0  ;;  %v528_v27 = vmax.f32 %v524_v23, 0.0  ;;  %v529_v28 = vmax.f32 %v525_v24, 0.0 }
 0x152   : >> { %530 = vst [vmem:[%s501_s14] sm:$0xff] %v526_v25  ;;  %531 = vst [vmem:[%s501_s14 + $0x8] sm:$0xff] %v527_v26 }
 0x153   : >> { %532 = vst [vmem:[%s501_s14 + $0x10] sm:$0xff] %v528_v27  ;;  %533 = vst [vmem:[%s501_s14 + $0x18] sm:$0xff] %v529_v28 }
 0x154 PF: > { %s14_s17 = sadd.s32 1, %s764_s17   ;;  %s886_s15 = smov %s760_s16 }
 0x155   : > { %p11_p8 = scmp.ge.s32.totalorder %s14_s17, 6   ;;  %s887_s16 = smov %s889_s18 }
 0x157   :  { %13 = sbr.rel (!%p11_p8) target bundleno = 2 (0x2), region = 93 }

// kernel: generator_forward.7
= control target key start
LH: loop header
LB: loop body
LE: loop exit
PB: predicated region body
PF: predicated region fallthrough
CT: control target
= control target key end

     0   :  { %s932_s15 = smov 0   ;;  %s934_s16 = smov 0   ;;  %s1078_s0 = inlined_call_operand.vmem [shape: bf16[4,128,128], index: 0, kind: input, shape index: {}]   ;;  %s1079_s1 = inlined_call_operand.vmem [shape: bf16[4,128,128], index: 1, kind: input, shape index: {}]   ;;  %s1080_s2 = inlined_call_operand.vmem [shape: f32[1,128], index: 2, kind: input, shape index: {}]   ;;  %s1081_s3 = inlined_call_operand.vmem [shape: f32[1,128], index: 3, kind: input, shape index: {}]   ;;  %s1082_s4 = inlined_call_operand.vmem [shape: f32[512,128], index: 4, kind: output, shape index: {}]  }
   0x1   :  { %s936_s17 = smov 0  }
   0x2 LB: > { %s26_s18 = sadd.s32 1, %s896_s16  ;;  %p730_p0 = scmp.ge.s32.totalorder %s900_s17, 1  ;;  %s900_s17 = sphi %s936_s17, %s14_s17   ;;  %s896_s16 = sphi %s934_s16, %s1084_s16   ;;  %s892_s15 = sphi %s932_s15, %s1083_s15  }
   0x3   : > { %p28_p1 = scmp.ge.s32.totalorder %s26_s18, 4  ;;  %p186_p2 = scmp.lt.s32.totalorder %s900_s17, 5 }
   0x5   : > { %s1086_s18 = smov (%p28_p1, %s26_s18), 0  ;;  %p187_p3 = pnand %p730_p0, %p186_p2 }
   0x6   : > { %p217_p4 = scmp.lt.s32.totalorder (!%p187_p3), %s892_s15, 3  ;;  %p735_p5 = scmp.ne.s32.totalorder (!%p187_p3), %s892_s15, 0 }
   0x7   : > { %190 = sbr.rel (%p187_p3) target bundleno = 371 (0x173), region = 36 }
   0xe   : > { %s218_s19 = scalar_select %p217_p4, %s892_s15, 3 }
   0xf   : > { %236 = sbr.rel (%p735_p5) target bundleno = 22 (0x16), region = 40  ;;  %v906_v0 = vmov (!%p735_p5), 0.0  }
  0x10   : > { %s757_s20 = sshll.u32 %s218_s19, 6  ;;  %237 = vst [vmem:[#allocation2] sm:$0x1] (!%p735_p5), %v906_v0  ;;  %238 = vst [vmem:[#allocation3] sm:$0x1] (!%p735_p5), %v906_v0 }
  0x11   : > { %s957_s23 = scalar_lea.vmem %s1078_s0, %s757_s20  ;;  %s962_s26 = scalar_lea.vmem %s1079_s1, %s757_s20 }
  0x16 PF: > { %v856_v1 = vld [vmem:[%s962_s26] sm:$0xff]   ;;  %v857_v2 = vld [vmem:[%s962_s26 + $0x8] sm:$0xff]   ;;  %v858_v3 = vld [vmem:[%s962_s26 + $0x10] sm:$0xff]   ;;  %s752_s27 = sshll.u32 %s892_s15, 7  ;;  %p753_p6 = scmp.ne.s32.totalorder %s892_s15, 3 }
  0x17   : > { %775 = vmatprep.subr.bf16.mxu0 %v856_v1  ;;  %807 = vmatprep.subr.bf16.mxu1 %v856_v1  ;;  %v859_v4 = vld [vmem:[%s962_s26 + $0x18] sm:$0xff]   ;;  %v864_v5 = vld [vmem:[%s957_s23] sm:$0xff]   ;;  %v861_v8 = vld [vmem:[%s962_s26 + $0x28] sm:$0xff]   ;;  %s985_s30 = scalar_lea.vmem %s1082_s4, %s752_s27  ;;  %s1019_s9 = smov (!%p753_p6), 0  }
  0x18   : > { %776 = vmatpush3.bf16.msra.mxu0 %v856_v1  ;;  %815 = vmatpush3.bf16.msra.mxu1 %v856_v1  ;;  %v860_v6 = vld [vmem:[%s962_s26 + $0x20] sm:$0xff]   ;;  %v862_v9 = vld [vmem:[%s962_s26 + $0x30] sm:$0xff]   ;;  %v863_v10 = vld [vmem:[%s962_s26 + $0x38] sm:$0xff]  }
  0x19   : > { %777 = vmatprep.subr.bf16.mxu0 %v857_v2  ;;  %808 = vmatprep.subr.bf16.mxu1 %v857_v2  ;;  %v868_v7 = vld [vmem:[%s957_s23 + $0x20] sm:$0xff]   ;;  %v865_v11 = vld [vmem:[%s957_s23 + $0x8] sm:$0xff]   ;;  %v866_v13 = vld [vmem:[%s957_s23 + $0x10] sm:$0xff]  }
  0x1a   : > { %791 = vmatprep.mubr.bf16.mxu0 %v864_v5  ;;  %799 = vmatprep.mubr.bf16.mxu1 %v868_v7  ;;  %v869_v12 = vld [vmem:[%s957_s23 + $0x28] sm:$0xff]   ;;  %v870_v14 = vld [vmem:[%s957_s23 + $0x30] sm:$0xff]   ;;  %v867_v15 = vld [vmem:[%s957_s23 + $0x18] sm:$0xff]  }
  0x1b   : > { %v871_v16 = vld [vmem:[%s957_s23 + $0x38] sm:$0xff]  }
  0x1c   : > { %778 = vmatpush3.bf16.msra.mxu0 %v857_v2  ;;  %816 = vmatpush3.bf16.msra.mxu1 %v857_v2 }
  0x1d   : > { %779 = vmatprep.subr.bf16.mxu0 %v858_v3  ;;  %809 = vmatprep.subr.bf16.mxu1 %v858_v3 }
  0x20   : > { %780 = vmatpush3.bf16.msra.mxu0 %v858_v3  ;;  %817 = vmatpush3.bf16.msra.mxu1 %v858_v3 }
  0x21   : > { %781 = vmatprep.subr.bf16.mxu0 %v859_v4  ;;  %810 = vmatprep.subr.bf16.mxu1 %v859_v4 }
  0x24   : > { %782 = vmatpush3.bf16.msra.mxu0 %v859_v4  ;;  %818 = vmatpush3.bf16.msra.mxu1 %v859_v4 }
  0x25   : > { %783 = vmatprep.subr.bf16.mxu0 %v860_v6  ;;  %811 = vmatprep.subr.bf16.mxu1 %v860_v6 }
  0x28   : > { %784 = vmatpush3.bf16.msra.mxu0 %v860_v6  ;;  %819 = vmatpush3.bf16.msra.mxu1 %v860_v6 }
  0x29   : > { %785 = vmatprep.subr.bf16.mxu0 %v861_v8  ;;  %812 = vmatprep.subr.bf16.mxu1 %v861_v8 }
  0x2c   : > { %786 = vmatpush3.bf16.msra.mxu0 %v861_v8  ;;  %820 = vmatpush3.bf16.msra.mxu1 %v861_v8 }
  0x2d   : > { %787 = vmatprep.subr.bf16.mxu0 %v862_v9  ;;  %813 = vmatprep.subr.bf16.mxu1 %v862_v9 }
  0x30   : > { %788 = vmatpush3.bf16.msra.mxu0 %v862_v9  ;;  %821 = vmatpush3.bf16.msra.mxu1 %v862_v9 }
  0x31   : > { %789 = vmatprep.subr.bf16.mxu0 %v863_v10  ;;  %814 = vmatprep.subr.bf16.mxu1 %v863_v10 }
  0x34   : > { %790 = vmatpush3.bf16.msra.mxu0 %v863_v10  ;;  %822 = vmatpush3.bf16.msra.mxu1 %v863_v10 }
  0x37   : > { %792 = vmatmul.mubr.bf16.vlgmr.msra.gmra.mrb[0].mxu0 %v865_v11  ;;  %800 = vmatmul.mubr.bf16.vlgmr.msra.gmra.mrb[0].mxu1 %v869_v12 }
  0x38   : > { %795 = vmatprep.mubr.bf16.mxu0 %v866_v13  ;;  %803 = vmatprep.mubr.bf16.mxu1 %v870_v14 }
  0x3f   : > { %796 = vmatmul.mubr.bf16.gmra.mrb[4].mxu0 %v867_v15  ;;  %804 = vmatmul.mubr.bf16.gmra.mrb[4].mxu1 %v871_v16 }
 0x10a   : > { %v793_v17 = vpop.f32.mrb[0].mxu0  ;;  %v801_v18 = vpop.f32.mrb[0].mxu1 }
 0x10b   : > { %468 = vst [vmem:[%s985_s30 + $0x10] sm:$0xff] %v793_v17  ;;  %v401_v19 = vpop.f32.mrb[1].mxu0  ;;  %476 = vst [vmem:[%s985_s30 + $0x50] sm:$0xff] %v801_v18  ;;  %v433_v20 = vpop.f32.mrb[1].mxu1  ;;  %v509_v28 = vmul.f32 %v793_v17, %v793_v17  ;;  %v517_v60 = vmul.f32 %v801_v18, %v801_v18 }
 0x10c   : > { %466 = vst [vmem:[%s985_s30] sm:$0xff] %v401_v19  ;;  %v794_v21 = vpop.f32.mrb[2].mxu0  ;;  %474 = vst [vmem:[%s985_s30 + $0x40] sm:$0xff] %v433_v20  ;;  %v802_v22 = vpop.f32.mrb[2].mxu1  ;;  %v507_v25 = vmul.f32 %v401_v19, %v401_v19  ;;  %v515_v54 = vmul.f32 %v433_v20, %v433_v20 }
 0x10d   : > { %469 = vst [vmem:[%s985_s30 + $0x18] sm:$0xff] %v794_v21  ;;  %v404_v23 = vpop.f32.mrb[3].mxu0  ;;  %477 = vst [vmem:[%s985_s30 + $0x58] sm:$0xff] %v802_v22  ;;  %v436_v24 = vpop.f32.mrb[3].mxu1  ;;  %v510_v31 = vmul.f32 %v794_v21, %v794_v21  ;;  %v518_v63 = vmul.f32 %v802_v22, %v802_v22 }
 0x10e   : > { %467 = vst [vmem:[%s985_s30 + $0x8] sm:$0xff] %v404_v23  ;;  %v483_v26 = vadd.f32 %v404_v23, %v401_v19  ;;  %v508_v27 = vmul.f32 %v404_v23, %v404_v23  ;;  %475 = vst [vmem:[%s985_s30 + $0x48] sm:$0xff] %v436_v24  ;;  %v516_v59 = vmul.f32 %v436_v24, %v436_v24 }
 0x110   : > { %v484_v29 = vadd.f32 %v793_v17, %v483_v26  ;;  %v523_v30 = vadd.f32 %v508_v27, %v507_v25  ;;  %v506_v27 = vld [vmem:[#allocation3] sm:$0x1] }
 0x112   : > { %v524_v32 = vadd.f32 %v523_v30, %v509_v28  ;;  %v797_v33 = vpop.f32.mrb[4].mxu0  ;;  %v485_v34 = vadd.f32 %v794_v21, %v484_v29  ;;  %v805_v35 = vpop.f32.mrb[4].mxu1 }
 0x113   : > { %472 = vst [vmem:[%s985_s30 + $0x30] sm:$0xff] %v797_v33  ;;  %v417_v36 = vpop.f32.mrb[5].mxu0  ;;  %480 = vst [vmem:[%s985_s30 + $0x70] sm:$0xff] %v805_v35  ;;  %v449_v37 = vpop.f32.mrb[5].mxu1  ;;  %v513_v48 = vmul.f32 %v797_v33, %v797_v33  ;;  %v521_v8 = vmul.f32 %v805_v35, %v805_v35 }
 0x114   : > { %470 = vst [vmem:[%s985_s30 + $0x20] sm:$0xff] %v417_v36  ;;  %v486_v38 = vadd.f32 %v485_v34, %v417_v36  ;;  %v511_v39 = vmul.f32 %v417_v36, %v417_v36  ;;  %v525_v40 = vadd.f32 %v524_v32, %v510_v31  ;;  %v798_v41 = vpop.f32.mrb[6].mxu0  ;;  %478 = vst [vmem:[%s985_s30 + $0x60] sm:$0xff] %v449_v37  ;;  %v806_v42 = vpop.f32.mrb[6].mxu1 }
 0x115   : > { %473 = vst [vmem:[%s985_s30 + $0x38] sm:$0xff] %v798_v41  ;;  %v420_v43 = vpop.f32.mrb[7].mxu0  ;;  %481 = vst [vmem:[%s985_s30 + $0x78] sm:$0xff] %v806_v42  ;;  %v452_v44 = vpop.f32.mrb[7].mxu1  ;;  %v514_v51 = vmul.f32 %v798_v41, %v798_v41  ;;  %v519_v2 = vmul.f32 %v449_v37, %v449_v37  ;;  %v522_v11 = vmul.f32 %v806_v42, %v806_v42 }
 0x116   : > { %v526_v45 = vadd.f32 %v525_v40, %v511_v39  ;;  %471 = vst [vmem:[%s985_s30 + $0x28] sm:$0xff] %v420_v43  ;;  %v487_v46 = vadd.f32 %v486_v38, %v420_v43  ;;  %v512_v47 = vmul.f32 %v420_v43, %v420_v43  ;;  %479 = vst [vmem:[%s985_s30 + $0x68] sm:$0xff] %v452_v44  ;;  %v556_v38 = vld [vmem:[%s1080_s2] sm:$0x1] (!%p753_p6) }
 0x117   : > { %v520_v7 = vmul.f32 %v452_v44, %v452_v44 }
 0x118   : > { %v488_v49 = vadd.f32 %v797_v33, %v487_v46  ;;  %v527_v50 = vadd.f32 %v526_v45, %v512_v47 }
 0x11a   : > { %v528_v52 = vadd.f32 %v527_v50, %v513_v48  ;;  %v489_v53 = vadd.f32 %v798_v41, %v488_v49  ;;  %v1012_v41 = vld [vmem:[%s1081_s3] sm:$0x1] (!%p753_p6) }
 0x11c   : > { %v490_v55 = vadd.f32 %v489_v53, %v433_v20  ;;  %v529_v56 = vadd.f32 %v528_v52, %v514_v51 }
 0x11e   : > { %v530_v57 = vadd.f32 %v529_v56, %v515_v54  ;;  %v491_v58 = vadd.f32 %v490_v55, %v436_v24  ;;  %v482_v24 = vld [vmem:[#allocation2] sm:$0x1] }
 0x120   : > { %v492_v61 = vadd.f32 %v801_v18, %v491_v58  ;;  %v531_v62 = vadd.f32 %v530_v57, %v516_v59 }
 0x122   : > { %v532_v0 = vadd.f32 %v531_v62, %v517_v60  ;;  %v493_v1 = vadd.f32 %v802_v22, %v492_v61 }
 0x124   : > { %v494_v3 = vadd.f32 %v493_v1, %v449_v37  ;;  %v533_v4 = vadd.f32 %v532_v0, %v518_v63 }
 0x126   : > { %v534_v5 = vadd.f32 %v533_v4, %v519_v2  ;;  %v495_v6 = vadd.f32 %v494_v3, %v452_v44 }
 0x128   : > { %v496_v9 = vadd.f32 %v805_v35, %v495_v6  ;;  %v535_v10 = vadd.f32 %v534_v5, %v520_v7 }
 0x12a   : > { %v497_v12 = vadd.f32 %v806_v42, %v496_v9  ;;  %v536_v13 = vadd.f32 %v535_v10, %v521_v8 }
 0x12c   : > { %v498_v14 = vrot.slane %v497_v12, 4  ;;  %v537_v15 = vadd.f32 %v536_v13, %v522_v11 }
 0x12e   : > { %v499_v16 = vadd.f32 %v498_v14, %v497_v12  ;;  %v538_v17 = vrot.slane %v537_v15, 4 }
 0x130   : > { %v500_v18 = vrot.slane %v499_v16, 2  ;;  %v539_v19 = vadd.f32 %v538_v17, %v537_v15 }
 0x132   : > { %v501_v20 = vadd.f32 %v500_v18, %v499_v16  ;;  %v540_v21 = vrot.slane %v539_v19, 2 }
 0x134   : > { %v502_v22 = vrot.slane %v501_v20, 1  ;;  %v541_v23 = vadd.f32 %v540_v21, %v539_v19 }
 0x136   : > { %v503_v25 = vadd.f32 %v502_v22, %v501_v20  ;;  %v542_v26 = vrot.slane %v541_v23, 1  ;;  %549 = sbr.rel (%p753_p6) target bundleno = 371 (0x173), region = 44 }
 0x138   : > { %v504_v28 = vadd.f32 %v503_v25, %v482_v24  ;;  %v543_v29 = vadd.f32 %v542_v26, %v541_v23 }
 0x13a   : > { %505 = vst [vmem:[#allocation2] sm:$0x1] %v504_v28  ;;  %v544_v30 = vadd.f32 %v543_v29, %v506_v27 }
 0x13c   : > { %545 = vst [vmem:[#allocation3] sm:$0x1] %v544_v30 }
 0x141   : > { %v550_v31 = vld [vmem:[#allocation2] sm:$0x1] }
 0x142   : > { %v551_v33 = vmul.f32 0.001953125, %v550_v31 }
 0x143   : > { %v552_v32 = vld [vmem:[#allocation3] sm:$0x1] }
 0x144   : > { %v553_v34 = vmul.f32 0.001953125, %v552_v32  ;;  %v554_v35 = vmul.f32 %v551_v33, %v551_v33 }
 0x146   : > { %v555_v36 = vsub.f32 %v553_v34, %v554_v35 }
 0x148   : > { %v557_v37 = vadd.f32 1e-05, %v555_v36 }
 0x14a   : > { %872 = vrsqrt.f32 %v557_v37 }
 0x154   : > { %v873_v39 = vpop.eup %872 }
 0x155   : > { %v1007_v40 = vmul.f32 %v873_v39, %v556_v38 }
 0x157   : > { %v1015_v42 = vmul.f32 %v1007_v40, %v551_v33 }
 0x159   : > { %v562_v43 = vsub.f32 %v1012_v41, %v1015_v42 }
 0x15a LB: >> { %v588_v44 = vlaneseq  ;;  %s754_s10 = sshll.u32 %s904_s9, 7  ;;  %s568_s9 = sadd.s32 1, %s904_s9   ;;  %s904_s9 = sphi %s1019_s9, %s568_s9  }
 0x15b   : >> { %s1028_s13 = scalar_lea.vmem %s1082_s4, %s754_s10  ;;  %p565_p7 = scmp.ge.s32.totalorder %s568_s9, 4  }
 0x15c   : >> { %v589_v45 = vshrl.u32 %v588_v44, 7  ;;  %v571_v46 = vld [vmem:[%s1028_s13] sm:$0xff]  ;;  %v572_v48 = vld [vmem:[%s1028_s13 + $0x8] sm:$0xff]  ;;  %v573_v49 = vld [vmem:[%s1028_s13 + $0x10] sm:$0xff] }
 0x15d   : >> { %v574_v50 = vld [vmem:[%s1028_s13 + $0x18] sm:$0xff]  ;;  %v575_v51 = vld [vmem:[%s1028_s13 + $0x20] sm:$0xff]  ;;  %v576_v54 = vld [vmem:[%s1028_s13 + $0x28] sm:$0xff] }
 0x15e   : >> { %v590_v47 = vsub.s32 0, %v589_v45  ;;  %v577_v55 = vld [vmem:[%s1028_s13 + $0x30] sm:$0xff]  ;;  %v578_v56 = vld [vmem:[%s1028_s13 + $0x38] sm:$0xff]  ;;  %v579_v5 = vld [vmem:[%s1028_s13 + $0x40] sm:$0xff] }
 0x15f   : >> { %v580_v6 = vld [vmem:[%s1028_s13 + $0x48] sm:$0xff]  ;;  %v581_v7 = vld [vmem:[%s1028_s13 + $0x50] sm:$0xff]  ;;  %v582_v12 = vld [vmem:[%s1028_s13 + $0x58] sm:$0xff] }
 0x160   : >> { %v591_v52 = vrot.slane %v1007_v40, %v590_v47  ;;  %v613_v53 = vrot.slane %v562_v43, %v590_v47  ;;  %v583_v13 = vld [vmem:[%s1028_s13 + $0x60] sm:$0xff]  ;;  %v584_v14 = vld [vmem:[%s1028_s13 + $0x68] sm:$0xff]  ;;  %v585_v19 = vld [vmem:[%s1028_s13 + $0x70] sm:$0xff] }
 0x161   : >> { %v586_v20 = vld [vmem:[%s1028_s13 + $0x78] sm:$0xff] }
 0x162   : >> { %v593_v57 = vmul.f32 %v591_v52, %v571_v46  ;;  %v594_v58 = vmul.f32 %v591_v52, %v572_v48  ;;  %v595_v59 = vmul.f32 %v591_v52, %v573_v49  ;;  %v596_v60 = vmul.f32 %v591_v52, %v574_v50 }
 0x163   : >> { %v597_v61 = vmul.f32 %v591_v52, %v575_v51  ;;  %v598_v62 = vmul.f32 %v591_v52, %v576_v54  ;;  %v599_v63 = vmul.f32 %v591_v52, %v577_v55  ;;  %v600_v0 = vmul.f32 %v591_v52, %v578_v56 }
 0x164   : >> { %v615_v1 = vadd.f32 %v613_v53, %v593_v57  ;;  %v616_v2 = vadd.f32 %v613_v53, %v594_v58  ;;  %v617_v3 = vadd.f32 %v613_v53, %v595_v59  ;;  %v618_v4 = vadd.f32 %v613_v53, %v596_v60 }
 0x165   : >> { %v619_v8 = vadd.f32 %v613_v53, %v597_v61  ;;  %v620_v9 = vadd.f32 %v613_v53, %v598_v62  ;;  %v621_v10 = vadd.f32 %v613_v53, %v599_v63  ;;  %v622_v11 = vadd.f32 %v613_v53, %v600_v0 }
 0x166   : >> { %v631_v15 = vmax.f32 %v615_v1, 0.0  ;;  %v632_v16 = vmax.f32 %v616_v2, 0.0  ;;  %v633_v17 = vmax.f32 %v617_v3, 0.0  ;;  %v634_v18 = vmax.f32 %v618_v4, 0.0 }
 0x167   : >> { %v635_v21 = vmax.f32 %v619_v8, 0.0  ;;  %v636_v22 = vmax.f32 %v620_v9, 0.0  ;;  %v637_v23 = vmax.f32 %v621_v10, 0.0  ;;  %v638_v24 = vmax.f32 %v622_v11, 0.0 }
 0x168   : >> { %647 = vst [vmem:[%s1028_s13] sm:$0xff] %v631_v15  ;;  %648 = vst [vmem:[%s1028_s13 + $0x8] sm:$0xff] %v632_v16  ;;  %v601_v25 = vmul.f32 %v591_v52, %v579_v5  ;;  %v602_v26 = vmul.f32 %v591_v52, %v580_v6  ;;  %v603_v27 = vmul.f32 %v591_v52, %v581_v7 }
 0x169   : >> { %649 = vst [vmem:[%s1028_s13 + $0x10] sm:$0xff] %v633_v17  ;;  %650 = vst [vmem:[%s1028_s13 + $0x18] sm:$0xff] %v634_v18  ;;  %v604_v28 = vmul.f32 %v591_v52, %v582_v12  ;;  %v605_v29 = vmul.f32 %v591_v52, %v583_v13  ;;  %v606_v30 = vmul.f32 %v591_v52, %v584_v14 }
 0x16a   : >> { %651 = vst [vmem:[%s1028_s13 + $0x20] sm:$0xff] %v635_v21  ;;  %652 = vst [vmem:[%s1028_s13 + $0x28] sm:$0xff] %v636_v22  ;;  %v607_v31 = vmul.f32 %v591_v52, %v585_v19  ;;  %v608_v32 = vmul.f32 %v591_v52, %v586_v20  ;;  %v623_v33 = vadd.f32 %v613_v53, %v601_v25 }
 0x16b   : >> { %653 = vst [vmem:[%s1028_s13 + $0x30] sm:$0xff] %v637_v23  ;;  %654 = vst [vmem:[%s1028_s13 + $0x38] sm:$0xff] %v638_v24  ;;  %v624_v34 = vadd.f32 %v613_v53, %v602_v26  ;;  %v625_v35 = vadd.f32 %v613_v53, %v603_v27  ;;  %v626_v36 = vadd.f32 %v613_v53, %v604_v28 }
 0x16c   : >> { %v627_v37 = vadd.f32 %v613_v53, %v605_v29  ;;  %v628_v38 = vadd.f32 %v613_v53, %v606_v30  ;;  %v629_v39 = vadd.f32 %v613_v53, %v607_v31  ;;  %v630_v44 = vadd.f32 %v613_v53, %v608_v32  ;;  %567 = sbr.rel (!%p565_p7) target bundleno = 346 (0x15a), region = 82 }
 0x16d   : >> { %v639_v45 = vmax.f32 %v623_v33, 0.0  ;;  %v640_v46 = vmax.f32 %v624_v34, 0.0  ;;  %v641_v47 = vmax.f32 %v625_v35, 0.0  ;;  %v642_v48 = vmax.f32 %v626_v36, 0.0 }
 0x16e   : >> { %v643_v49 = vmax.f32 %v627_v37, 0.0  ;;  %v644_v50 = vmax.f32 %v628_v38, 0.0  ;;  %v645_v51 = vmax.f32 %v629_v39, 0.0  ;;  %v646_v52 = vmax.f32 %v630_v44, 0.0 }
 0x16f   : >> { %655 = vst [vmem:[%s1028_s13 + $0x40] sm:$0xff] %v639_v45  ;;  %656 = vst [vmem:[%s1028_s13 + $0x48] sm:$0xff] %v640_v46 }
 0x170   : >> { %657 = vst [vmem:[%s1028_s13 + $0x50] sm:$0xff] %v641_v47  ;;  %658 = vst [vmem:[%s1028_s13 + $0x58] sm:$0xff] %v642_v48 }
 0x171   : >> { %659 = vst [vmem:[%s1028_s13 + $0x60] sm:$0xff] %v643_v49  ;;  %660 = vst [vmem:[%s1028_s13 + $0x68] sm:$0xff] %v644_v50 }
 0x172   : >> { %661 = vst [vmem:[%s1028_s13 + $0x70] sm:$0xff] %v645_v51  ;;  %662 = vst [vmem:[%s1028_s13 + $0x78] sm:$0xff] %v646_v52 }
 0x173 PF: > { %s14_s17 = sadd.s32 1, %s900_s17   ;;  %s1083_s15 = smov %s896_s16 }
 0x174   : > { %p11_p8 = scmp.ge.s32.totalorder %s14_s17, 6   ;;  %s1084_s16 = smov %s1086_s18 }
 0x176   :  { %13 = sbr.rel (!%p11_p8) target bundleno = 2 (0x2), region = 93 }

// kernel: generator_forward.8
= control target key start
LH: loop header
LB: loop body
LE: loop exit
PB: predicated region body
PF: predicated region fallthrough
CT: control target
= control target key end

     0   :  { %s1905_s15 = smov 0   ;;  %s1907_s16 = smov 0   ;;  %s2565_s0 = inlined_call_operand.vmem [shape: bf16[4,512,64], index: 0, kind: input, shape index: {}]   ;;  %s2566_s1 = inlined_call_operand.vmem [shape: bf16[4,64,128], index: 1, kind: input, shape index: {}]   ;;  %s2567_s2 = inlined_call_operand.vmem [shape: f32[1,128], index: 2, kind: input, shape index: {}]   ;;  %s2568_s3 = inlined_call_operand.vmem [shape: f32[1,128], index: 3, kind: input, shape index: {}]   ;;  %s2569_s4 = inlined_call_operand.vmem [shape: f32[2048,128], index: 4, kind: output, shape index: {}]  }
   0x1   :  { %s1909_s17 = smov 0  }
   0x2 LB: > { %s26_s18 = sadd.s32 1, %s1869_s16  ;;  %p1579_p0 = scmp.ge.s32.totalorder %s1873_s17, 1  ;;  %s1873_s17 = sphi %s1909_s17, %s14_s17   ;;  %s1869_s16 = sphi %s1907_s16, %s2571_s16   ;;  %s1865_s15 = sphi %s1905_s15, %s2570_s15  }
   0x3   : > { %p28_p1 = scmp.ge.s32.totalorder %s26_s18, 4  ;;  %p186_p2 = scmp.lt.s32.totalorder %s1873_s17, 5 }
   0x5   : > { %s2573_s18 = smov (%p28_p1, %s26_s18), 0  ;;  %p187_p3 = pnand %p1579_p0, %p186_p2 }
   0x6   : > { %p217_p4 = scmp.lt.s32.totalorder (!%p187_p3), %s1865_s15, 3  ;;  %p1584_p5 = scmp.ne.s32.totalorder (!%p187_p3), %s1865_s15, 0 }
   0x7   : > { %190 = sbr.rel (%p187_p3) target bundleno = 493 (0x1ed), region = 36 }
   0xe   : > { %s218_s19 = scalar_select %p217_p4, %s1865_s15, 3 }
   0xf   : > { %236 = sbr.rel (%p1584_p5) target bundleno = 22 (0x16), region = 40  ;;  %v1879_v0 = vmov (!%p1584_p5), 0.0  }
  0x10   : > { %s1658_s20 = sshll.u32 %s218_s19, 8  ;;  %s1659_s21 = sshll.u32 %s218_s19, 5  ;;  %237 = vst [vmem:[#allocation2] sm:$0x1] (!%p1584_p5), %v1879_v0  ;;  %238 = vst [vmem:[#allocation3] sm:$0x1] (!%p1584_p5), %v1879_v0 }
  0x11   : > { %s1930_s24 = scalar_lea.vmem %s2565_s0, %s1658_s20  ;;  %s230_s27 = scalar_lea.vmem %s2566_s1, %s1659_s21 }
  0x16 PF: > { %v1809_v1 = vld [vmem:[%s230_s27] sm:$0xff]   ;;  %v1810_v2 = vld [vmem:[%s230_s27 + $0x8] sm:$0xff]   ;;  %v1811_v3 = vld [vmem:[%s230_s27 + $0x10] sm:$0xff]   ;;  %vm495_vm0 = vcmask 523264   ;;  %s1653_s28 = sshll.u32 %s1865_s15, 9  ;;  %p1654_p6 = scmp.ne.s32.totalorder %s1865_s15, 3 }
  0x17   : > { %1696 = vmatprep.subr.bf16.mxu0 %v1809_v1  ;;  %1768 = vmatprep.subr.bf16.mxu1 %v1809_v1  ;;  %v1813_v4 = vld [vmem:[%s1930_s24] sm:$0xff]   ;;  %v1812_v5 = vld [vmem:[%s230_s27 + $0x18] sm:$0xff]   ;;  %v1814_v6 = vld [vmem:[%s1930_s24 + $0x8] sm:$0xff]   ;;  %s2004_s5 = scalar_lea.vmem %s2569_s4, %s1653_s28  ;;  %s2278_s10 = smov (!%p1654_p6), 0  }
  0x18   : > { %1697 = vmatpush3.bf16.msra.mxu0 %v1809_v1  ;;  %1772 = vmatpush3.bf16.msra.mxu1 %v1809_v1  ;;  %v1815_v7 = vld [vmem:[%s1930_s24 + $0x10] sm:$0xff]   ;;  %v1816_v8 = vld [vmem:[%s1930_s24 + $0x18] sm:$0xff]   ;;  %v1829_v9 = vld [vmem:[%s1930_s24 + $0x80] sm:$0xff]  }
  0x19   : > { %1698 = vmatprep.subr.bf16.mxu0 %v1810_v2  ;;  %1769 = vmatprep.subr.bf16.mxu1 %v1810_v2  ;;  %v1830_v10 = vld [vmem:[%s1930_s24 + $0x88] sm:$0xff]   ;;  %v1831_v11 = vld [vmem:[%s1930_s24 + $0x90] sm:$0xff]   ;;  %v1817_v12 = vld [vmem:[%s1930_s24 + $0x20] sm:$0xff]  }
  0x1a   : > { %1704 = vmatprep.mubr.msk.bf16.mxu0 %vm495_vm0, %v1813_v4  ;;  %1736 = vmatprep.mubr.msk.bf16.mxu1 %vm495_vm0, %v1829_v9  ;;  %v1832_v13 = vld [vmem:[%s1930_s24 + $0x98] sm:$0xff]   ;;  %v1833_v14 = vld [vmem:[%s1930_s24 + $0xa0] sm:$0xff]   ;;  %v1818_v15 = vld [vmem:[%s1930_s24 + $0x28] sm:$0xff]  }
  0x1b   : > { %v1819_v16 = vld [vmem:[%s1930_s24 + $0x30] sm:$0xff]   ;;  %v1834_v17 = vld [vmem:[%s1930_s24 + $0xa8] sm:$0xff]   ;;  %v1820_v19 = vld [vmem:[%s1930_s24 + $0x38] sm:$0xff]  }
  0x1c   : > { %1699 = vmatpush3.bf16.msra.mxu0 %v1810_v2  ;;  %1773 = vmatpush3.bf16.msra.mxu1 %v1810_v2  ;;  %v1835_v18 = vld [vmem:[%s1930_s24 + $0xb0] sm:$0xff]   ;;  %v1821_v20 = vld [vmem:[%s1930_s24 + $0x40] sm:$0xff]   ;;  %v1836_v21 = vld [vmem:[%s1930_s24 + $0xb8] sm:$0xff]  }
  0x1d   : > { %1700 = vmatprep.subr.bf16.mxu0 %v1811_v3  ;;  %1770 = vmatprep.subr.bf16.mxu1 %v1811_v3  ;;  %v1837_v22 = vld [vmem:[%s1930_s24 + $0xc0] sm:$0xff]   ;;  %v1822_v23 = vld [vmem:[%s1930_s24 + $0x48] sm:$0xff]   ;;  %v1823_v24 = vld [vmem:[%s1930_s24 + $0x50] sm:$0xff]  }
  0x1e   : > { %v1838_v25 = vld [vmem:[%s1930_s24 + $0xc8] sm:$0xff]   ;;  %v1839_v26 = vld [vmem:[%s1930_s24 + $0xd0] sm:$0xff]   ;;  %v1824_v27 = vld [vmem:[%s1930_s24 + $0x58] sm:$0xff]  }
  0x1f   : > { %v1825_v28 = vld [vmem:[%s1930_s24 + $0x60] sm:$0xff]   ;;  %v1840_v29 = vld [vmem:[%s1930_s24 + $0xd8] sm:$0xff]   ;;  %v1826_v31 = vld [vmem:[%s1930_s24 + $0x68] sm:$0xff]  }
  0x20   : > { %1701 = vmatpush3.bf16.msra.mxu0 %v1811_v3  ;;  %1774 = vmatpush3.bf16.msra.mxu1 %v1811_v3  ;;  %v1841_v30 = vld [vmem:[%s1930_s24 + $0xe0] sm:$0xff]   ;;  %v1827_v32 = vld [vmem:[%s1930_s24 + $0x70] sm:$0xff]   ;;  %v1842_v33 = vld [vmem:[%s1930_s24 + $0xe8] sm:$0xff]  }
  0x21   : > { %1702 = vmatprep.subr.bf16.mxu0 %v1812_v5  ;;  %1771 = vmatprep.subr.bf16.mxu1 %v1812_v5  ;;  %v1843_v34 = vld [vmem:[%s1930_s24 + $0xf0] sm:$0xff]   ;;  %v1828_v35 = vld [vmem:[%s1930_s24 + $0x78] sm:$0xff]  }
  0x22   : > { %v1844_v36 = vld [vmem:[%s1930_s24 + $0xf8] sm:$0xff]  }
  0x24   : > { %1703 = vmatpush3.bf16.msra.mxu0 %v1812_v5  ;;  %1775 = vmatpush3.bf16.msra.mxu1 %v1812_v5 }
  0x27   : > { %1705 = vmatmul.mubr.msk.bf16.vlgmr.msra.gmra.mrb[0].mxu0 %vm495_vm0, %v1814_v6  ;;  %1737 = vmatmul.mubr.msk.bf16.vlgmr.msra.gmra.mrb[0].mxu1 %vm495_vm0, %v1830_v10 }
  0x28   : > { %1708 = vmatprep.mubr.msk.bf16.mxu0 %vm495_vm0, %v1815_v7  ;;  %1740 = vmatprep.mubr.msk.bf16.mxu1 %vm495_vm0, %v1831_v11 }
  0x2f   : > { %1709 = vmatmul.mubr.msk.bf16.gmra.mrb[4].mxu0 %vm495_vm0, %v1816_v8  ;;  %1741 = vmatmul.mubr.msk.bf16.gmra.mrb[4].mxu1 %vm495_vm0, %v1832_v13 }
  0x30   : > { %1712 = vmatprep.mubr.msk.bf16.mxu0 %vm495_vm0, %v1817_v12  ;;  %1744 = vmatprep.mubr.msk.bf16.mxu1 %vm495_vm0, %v1833_v14 }
  0x37   : > { %1713 = vmatmul.mubr.msk.bf16.gmra.mrb[8].mxu0 %vm495_vm0, %v1818_v15  ;;  %1745 = vmatmul.mubr.msk.bf16.gmra.mrb[8].mxu1 %vm495_vm0, %v1834_v17 }
  0x38   : > { %1716 = vmatprep.mubr.msk.bf16.mxu0 %vm495_vm0, %v1819_v16  ;;  %1748 = vmatprep.mubr.msk.bf16.mxu1 %vm495_vm0, %v1835_v18 }
  0x3f   : > { %1717 = vmatmul.mubr.msk.bf16.gmra.mrb[12].mxu0 %vm495_vm0, %v1820_v19  ;;  %1749 = vmatmul.mubr.msk.bf16.gmra.mrb[12].mxu1 %vm495_vm0, %v1836_v21 }
  0x40   : > { %1720 = vmatprep.mubr.msk.bf16.mxu0 %vm495_vm0, %v1821_v20  ;;  %1752 = vmatprep.mubr.msk.bf16.mxu1 %vm495_vm0, %v1837_v22 }
  0x47   : > { %1721 = vmatmul.mubr.msk.bf16.gmra.mrb[16].mxu0 %vm495_vm0, %v1822_v23  ;;  %1753 = vmatmul.mubr.msk.bf16.gmra.mrb[16].mxu1 %vm495_vm0, %v1838_v25 }
  0x48   : > { %1724 = vmatprep.mubr.msk.bf16.mxu0 %vm495_vm0, %v1823_v24  ;;  %1756 = vmatprep.mubr.msk.bf16.mxu1 %vm495_vm0, %v1839_v26 }
  0x4f   : > { %1725 = vmatmul.mubr.msk.bf16.gmra.mrb[20].mxu0 %vm495_vm0, %v1824_v27  ;;  %1757 = vmatmul.mubr.msk.bf16.gmra.mrb[20].mxu1 %vm495_vm0, %v1840_v29 }
  0x50   : > { %1728 = vmatprep.mubr.msk.bf16.mxu0 %vm495_vm0, %v1825_v28  ;;  %1760 = vmatprep.mubr.msk.bf16.mxu1 %vm495_vm0, %v1841_v30 }
  0x57   : > { %1729 = vmatmul.mubr.msk.bf16.gmra.mrb[24].mxu0 %vm495_vm0, %v1826_v31  ;;  %1761 = vmatmul.mubr.msk.bf16.gmra.mrb[24].mxu1 %vm495_vm0, %v1842_v33 }
  0x58   : > { %1732 = vmatprep.mubr.msk.bf16.mxu0 %vm495_vm0, %v1827_v32  ;;  %1764 = vmatprep.mubr.msk.bf16.mxu1 %vm495_vm0, %v1843_v34 }
  0x5f   : > { %1733 = vmatmul.mubr.msk.bf16.gmra.mrb[28].mxu0 %vm495_vm0, %v1828_v35  ;;  %1765 = vmatmul.mubr.msk.bf16.gmra.mrb[28].mxu1 %vm495_vm0, %v1844_v36 }
  0xfa   : > { %v1706_v37 = vpop.f32.mrb[0].mxu0  ;;  %v2010_v44 = vpop.f32.mrb[0].mxu1 }
  0xfb   : > { %885 = vst [vmem:[%s2004_s5 + $0x10] sm:$0xff] %v1706_v37  ;;  %v626_v38 = vpop.f32.mrb[1].mxu0  ;;  %v1022_v45 = vmul.f32 %v1706_v37, %v1706_v37  ;;  %917 = vst [vmem:[%s2004_s5 + $0x110] sm:$0xff] %v2010_v44  ;;  %v2014_v48 = vpop.f32.mrb[1].mxu1 }
  0xfc   : > { %883 = vst [vmem:[%s2004_s5] sm:$0xff] %v626_v38  ;;  %v1707_v39 = vpop.f32.mrb[2].mxu0  ;;  %v1020_v41 = vmul.f32 %v626_v38, %v626_v38  ;;  %915 = vst [vmem:[%s2004_s5 + $0x100] sm:$0xff] %v2014_v48  ;;  %v2018_v49 = vpop.f32.mrb[2].mxu1 }
  0xfd   : > { %886 = vst [vmem:[%s2004_s5 + $0x18] sm:$0xff] %v1707_v39  ;;  %v629_v40 = vpop.f32.mrb[3].mxu0  ;;  %v1023_v50 = vmul.f32 %v1707_v39, %v1707_v39  ;;  %918 = vst [vmem:[%s2004_s5 + $0x118] sm:$0xff] %v2018_v49  ;;  %v2022_v54 = vpop.f32.mrb[3].mxu1 }
  0xfe   : > { %884 = vst [vmem:[%s2004_s5 + $0x8] sm:$0xff] %v629_v40  ;;  %v948_v42 = vadd.f32 %v629_v40, %v626_v38  ;;  %v1021_v43 = vmul.f32 %v629_v40, %v629_v40  ;;  %916 = vst [vmem:[%s2004_s5 + $0x108] sm:$0xff] %v2022_v54 }
 0x100   : > { %v949_v46 = vadd.f32 %v1706_v37, %v948_v42  ;;  %v1084_v47 = vadd.f32 %v1021_v43, %v1020_v41 }
 0x102   : > { %v1085_v51 = vadd.f32 %v1084_v47, %v1022_v45  ;;  %v1710_v52 = vpop.f32.mrb[4].mxu0  ;;  %v950_v53 = vadd.f32 %v1707_v39, %v949_v46  ;;  %v2030_v0 = vpop.f32.mrb[4].mxu1 }
 0x103   : > { %889 = vst [vmem:[%s2004_s5 + $0x30] sm:$0xff] %v1710_v52  ;;  %v642_v55 = vpop.f32.mrb[5].mxu0  ;;  %v1026_v1 = vmul.f32 %v1710_v52, %v1710_v52  ;;  %921 = vst [vmem:[%s2004_s5 + $0x130] sm:$0xff] %v2030_v0  ;;  %v2034_v4 = vpop.f32.mrb[5].mxu1 }
 0x104   : > { %887 = vst [vmem:[%s2004_s5 + $0x20] sm:$0xff] %v642_v55  ;;  %v951_v56 = vadd.f32 %v950_v53, %v642_v55  ;;  %v1024_v57 = vmul.f32 %v642_v55, %v642_v55  ;;  %v1086_v58 = vadd.f32 %v1085_v51, %v1023_v50  ;;  %v1711_v59 = vpop.f32.mrb[6].mxu0  ;;  %919 = vst [vmem:[%s2004_s5 + $0x120] sm:$0xff] %v2034_v4  ;;  %v2038_v5 = vpop.f32.mrb[6].mxu1 }
 0x105   : > { %890 = vst [vmem:[%s2004_s5 + $0x38] sm:$0xff] %v1711_v59  ;;  %v645_v60 = vpop.f32.mrb[7].mxu0  ;;  %v1027_v6 = vmul.f32 %v1711_v59, %v1711_v59  ;;  %922 = vst [vmem:[%s2004_s5 + $0x138] sm:$0xff] %v2038_v5  ;;  %v2042_v10 = vpop.f32.mrb[7].mxu1 }
 0x106   : > { %v1087_v61 = vadd.f32 %v1086_v58, %v1024_v57  ;;  %888 = vst [vmem:[%s2004_s5 + $0x28] sm:$0xff] %v645_v60  ;;  %v952_v62 = vadd.f32 %v951_v56, %v645_v60  ;;  %v1025_v63 = vmul.f32 %v645_v60, %v645_v60  ;;  %920 = vst [vmem:[%s2004_s5 + $0x128] sm:$0xff] %v2042_v10 }
 0x108   : > { %v953_v2 = vadd.f32 %v1710_v52, %v952_v62  ;;  %v1088_v3 = vadd.f32 %v1087_v61, %v1025_v63 }
 0x10a   : > { %v1089_v7 = vadd.f32 %v1088_v3, %v1026_v1  ;;  %v1714_v8 = vpop.f32.mrb[8].mxu0  ;;  %v954_v9 = vadd.f32 %v1711_v59, %v953_v2  ;;  %v2050_v20 = vpop.f32.mrb[8].mxu1 }
 0x10b   : > { %893 = vst [vmem:[%s2004_s5 + $0x50] sm:$0xff] %v1714_v8  ;;  %v658_v11 = vpop.f32.mrb[9].mxu0  ;;  %v1030_v21 = vmul.f32 %v1714_v8, %v1714_v8  ;;  %925 = vst [vmem:[%s2004_s5 + $0x150] sm:$0xff] %v2050_v20  ;;  %v2054_v24 = vpop.f32.mrb[9].mxu1 }
 0x10c   : > { %891 = vst [vmem:[%s2004_s5 + $0x40] sm:$0xff] %v658_v11  ;;  %v955_v12 = vadd.f32 %v954_v9, %v658_v11  ;;  %v1028_v13 = vmul.f32 %v658_v11, %v658_v11  ;;  %v1090_v14 = vadd.f32 %v1089_v7, %v1027_v6  ;;  %v1715_v15 = vpop.f32.mrb[10].mxu0  ;;  %923 = vst [vmem:[%s2004_s5 + $0x140] sm:$0xff] %v2054_v24  ;;  %v2058_v25 = vpop.f32.mrb[10].mxu1 }
 0x10d   : > { %894 = vst [vmem:[%s2004_s5 + $0x58] sm:$0xff] %v1715_v15  ;;  %v661_v16 = vpop.f32.mrb[11].mxu0  ;;  %v1031_v26 = vmul.f32 %v1715_v15, %v1715_v15  ;;  %926 = vst [vmem:[%s2004_s5 + $0x158] sm:$0xff] %v2058_v25  ;;  %v2062_v30 = vpop.f32.mrb[11].mxu1 }
 0x10e   : > { %v1091_v17 = vadd.f32 %v1090_v14, %v1028_v13  ;;  %892 = vst [vmem:[%s2004_s5 + $0x48] sm:$0xff] %v661_v16  ;;  %v956_v18 = vadd.f32 %v955_v12, %v661_v16  ;;  %v1029_v19 = vmul.f32 %v661_v16, %v661_v16  ;;  %924 = vst [vmem:[%s2004_s5 + $0x148] sm:$0xff] %v2062_v30 }
 0x110   : > { %v957_v22 = vadd.f32 %v1714_v8, %v956_v18  ;;  %v1092_v23 = vadd.f32 %v1091_v17, %v1029_v19 }
 0x112   : > { %v1093_v27 = vadd.f32 %v1092_v23, %v1030_v21  ;;  %v1718_v28 = vpop.f32.mrb[12].mxu0  ;;  %v958_v29 = vadd.f32 %v1715_v15, %v957_v22  ;;  %v2070_v40 = vpop.f32.mrb[12].mxu1 }
 0x113   : > { %897 = vst [vmem:[%s2004_s5 + $0x70] sm:$0xff] %v1718_v28  ;;  %v674_v31 = vpop.f32.mrb[13].mxu0  ;;  %v1034_v41 = vmul.f32 %v1718_v28, %v1718_v28  ;;  %929 = vst [vmem:[%s2004_s5 + $0x170] sm:$0xff] %v2070_v40  ;;  %v2074_v45 = vpop.f32.mrb[13].mxu1 }
 0x114   : > { %895 = vst [vmem:[%s2004_s5 + $0x60] sm:$0xff] %v674_v31  ;;  %v959_v32 = vadd.f32 %v958_v29, %v674_v31  ;;  %v1032_v33 = vmul.f32 %v674_v31, %v674_v31  ;;  %v1094_v34 = vadd.f32 %v1093_v27, %v1031_v26  ;;  %v1719_v35 = vpop.f32.mrb[14].mxu0  ;;  %927 = vst [vmem:[%s2004_s5 + $0x160] sm:$0xff] %v2074_v45  ;;  %v2078_v46 = vpop.f32.mrb[14].mxu1 }
 0x115   : > { %898 = vst [vmem:[%s2004_s5 + $0x78] sm:$0xff] %v1719_v35  ;;  %v677_v36 = vpop.f32.mrb[15].mxu0  ;;  %v1035_v47 = vmul.f32 %v1719_v35, %v1719_v35  ;;  %930 = vst [vmem:[%s2004_s5 + $0x178] sm:$0xff] %v2078_v46  ;;  %v2082_v53 = vpop.f32.mrb[15].mxu1 }
 0x116   : > { %v1095_v37 = vadd.f32 %v1094_v34, %v1032_v33  ;;  %896 = vst [vmem:[%s2004_s5 + $0x68] sm:$0xff] %v677_v36  ;;  %v960_v38 = vadd.f32 %v959_v32, %v677_v36  ;;  %v1033_v39 = vmul.f32 %v677_v36, %v677_v36  ;;  %928 = vst [vmem:[%s2004_s5 + $0x168] sm:$0xff] %v2082_v53 }
 0x118   : > { %v961_v42 = vadd.f32 %v1718_v28, %v960_v38  ;;  %v1096_v43 = vadd.f32 %v1095_v37, %v1033_v39 }
 0x11a   : > { %v1097_v50 = vadd.f32 %v1096_v43, %v1034_v41  ;;  %v1722_v51 = vpop.f32.mrb[16].mxu0  ;;  %v962_v52 = vadd.f32 %v1719_v35, %v961_v42  ;;  %v2090_v1 = vpop.f32.mrb[16].mxu1 }
 0x11b   : > { %901 = vst [vmem:[%s2004_s5 + $0x90] sm:$0xff] %v1722_v51  ;;  %v690_v55 = vpop.f32.mrb[17].mxu0  ;;  %v1038_v2 = vmul.f32 %v1722_v51, %v1722_v51  ;;  %933 = vst [vmem:[%s2004_s5 + $0x190] sm:$0xff] %v2090_v1  ;;  %v2094_v7 = vpop.f32.mrb[17].mxu1 }
 0x11c   : > { %899 = vst [vmem:[%s2004_s5 + $0x80] sm:$0xff] %v690_v55  ;;  %v963_v56 = vadd.f32 %v962_v52, %v690_v55  ;;  %v1036_v57 = vmul.f32 %v690_v55, %v690_v55  ;;  %v1098_v58 = vadd.f32 %v1097_v50, %v1035_v47  ;;  %v1723_v59 = vpop.f32.mrb[18].mxu0  ;;  %931 = vst [vmem:[%s2004_s5 + $0x180] sm:$0xff] %v2094_v7  ;;  %v2098_v8 = vpop.f32.mrb[18].mxu1 }
 0x11d   : > { %902 = vst [vmem:[%s2004_s5 + $0x98] sm:$0xff] %v1723_v59  ;;  %v693_v60 = vpop.f32.mrb[19].mxu0  ;;  %v1039_v9 = vmul.f32 %v1723_v59, %v1723_v59  ;;  %934 = vst [vmem:[%s2004_s5 + $0x198] sm:$0xff] %v2098_v8  ;;  %v2102_v14 = vpop.f32.mrb[19].mxu1 }
 0x11e   : > { %v1099_v61 = vadd.f32 %v1098_v58, %v1036_v57  ;;  %900 = vst [vmem:[%s2004_s5 + $0x88] sm:$0xff] %v693_v60  ;;  %v964_v62 = vadd.f32 %v963_v56, %v693_v60  ;;  %v1037_v63 = vmul.f32 %v693_v60, %v693_v60  ;;  %932 = vst [vmem:[%s2004_s5 + $0x188] sm:$0xff] %v2102_v14 }
 0x120   : > { %v965_v3 = vadd.f32 %v1722_v51, %v964_v62  ;;  %v1100_v6 = vadd.f32 %v1099_v61, %v1037_v63 }
 0x122   : > { %v1101_v11 = vadd.f32 %v1100_v6, %v1038_v2  ;;  %v1726_v12 = vpop.f32.mrb[20].mxu0  ;;  %v966_v13 = vadd.f32 %v1723_v59, %v965_v3  ;;  %v2110_v27 = vpop.f32.mrb[20].mxu1 }
 0x123   : > { %905 = vst [vmem:[%s2004_s5 + $0xb0] sm:$0xff] %v1726_v12  ;;  %v706_v15 = vpop.f32.mrb[21].mxu0  ;;  %v1042_v28 = vmul.f32 %v1726_v12, %v1726_v12  ;;  %937 = vst [vmem:[%s2004_s5 + $0x1b0] sm:$0xff] %v2110_v27  ;;  %v2114_v32 = vpop.f32.mrb[21].mxu1 }
 0x124   : > { %903 = vst [vmem:[%s2004_s5 + $0xa0] sm:$0xff] %v706_v15  ;;  %v967_v16 = vadd.f32 %v966_v13, %v706_v15  ;;  %v1040_v17 = vmul.f32 %v706_v15, %v706_v15  ;;  %v1102_v18 = vadd.f32 %v1101_v11, %v1039_v9  ;;  %v1727_v19 = vpop.f32.mrb[22].mxu0  ;;  %935 = vst [vmem:[%s2004_s5 + $0x1a0] sm:$0xff] %v2114_v32  ;;  %v2118_v33 = vpop.f32.mrb[22].mxu1 }
 0x125   : > { %906 = vst [vmem:[%s2004_s5 + $0xb8] sm:$0xff] %v1727_v19  ;;  %v709_v21 = vpop.f32.mrb[23].mxu0  ;;  %v1043_v34 = vmul.f32 %v1727_v19, %v1727_v19  ;;  %938 = vst [vmem:[%s2004_s5 + $0x1b8] sm:$0xff] %v2118_v33  ;;  %v2122_v38 = vpop.f32.mrb[23].mxu1 }
 0x126   : > { %v1103_v22 = vadd.f32 %v1102_v18, %v1040_v17  ;;  %904 = vst [vmem:[%s2004_s5 + $0xa8] sm:$0xff] %v709_v21  ;;  %v968_v23 = vadd.f32 %v967_v16, %v709_v21  ;;  %v1041_v26 = vmul.f32 %v709_v21, %v709_v21  ;;  %936 = vst [vmem:[%s2004_s5 + $0x1a8] sm:$0xff] %v2122_v38 }
 0x128   : > { %v969_v29 = vadd.f32 %v1726_v12, %v968_v23  ;;  %v1104_v31 = vadd.f32 %v1103_v22, %v1041_v26 }
 0x12a   : > { %v1105_v35 = vadd.f32 %v1104_v31, %v1042_v28  ;;  %v1730_v36 = vpop.f32.mrb[24].mxu0  ;;  %v970_v37 = vadd.f32 %v1727_v19, %v969_v29  ;;  %v2130_v56 = vpop.f32.mrb[24].mxu1 }
 0x12b   : > { %909 = vst [vmem:[%s2004_s5 + $0xd0] sm:$0xff] %v1730_v36  ;;  %v722_v39 = vpop.f32.mrb[25].mxu0  ;;  %v1046_v57 = vmul.f32 %v1730_v36, %v1730_v36  ;;  %941 = vst [vmem:[%s2004_s5 + $0x1d0] sm:$0xff] %v2130_v56  ;;  %v2134_v60 = vpop.f32.mrb[25].mxu1 }
 0x12c   : > { %907 = vst [vmem:[%s2004_s5 + $0xc0] sm:$0xff] %v722_v39  ;;  %v971_v41 = vadd.f32 %v970_v37, %v722_v39  ;;  %v1044_v42 = vmul.f32 %v722_v39, %v722_v39  ;;  %v1106_v43 = vadd.f32 %v1105_v35, %v1043_v34  ;;  %v1731_v47 = vpop.f32.mrb[26].mxu0  ;;  %939 = vst [vmem:[%s2004_s5 + $0x1c0] sm:$0xff] %v2134_v60  ;;  %v2138_v61 = vpop.f32.mrb[26].mxu1 }
 0x12d   : > { %910 = vst [vmem:[%s2004_s5 + $0xd8] sm:$0xff] %v1731_v47  ;;  %v725_v50 = vpop.f32.mrb[27].mxu0  ;;  %v1047_v62 = vmul.f32 %v1731_v47, %v1731_v47  ;;  %942 = vst [vmem:[%s2004_s5 + $0x1d8] sm:$0xff] %v2138_v61  ;;  %v2142_v6 = vpop.f32.mrb[27].mxu1 }
 0x12e   : > { %v1107_v51 = vadd.f32 %v1106_v43, %v1044_v42  ;;  %908 = vst [vmem:[%s2004_s5 + $0xc8] sm:$0xff] %v725_v50  ;;  %v972_v52 = vadd.f32 %v971_v41, %v725_v50  ;;  %v1045_v55 = vmul.f32 %v725_v50, %v725_v50  ;;  %940 = vst [vmem:[%s2004_s5 + $0x1c8] sm:$0xff] %v2142_v6 }
 0x12f   : > { %v1054_v50 = vmul.f32 %v2010_v44, %v2010_v44 }
 0x130   : > { %v973_v58 = vadd.f32 %v1730_v36, %v972_v52  ;;  %v1108_v59 = vadd.f32 %v1107_v51, %v1045_v55  ;;  %v1052_v36 = vmul.f32 %v2014_v48, %v2014_v48  ;;  %v1055_v55 = vmul.f32 %v2018_v49, %v2018_v49 }
 0x132   : > { %v1109_v63 = vadd.f32 %v1108_v59, %v1046_v57  ;;  %v1734_v2 = vpop.f32.mrb[28].mxu0  ;;  %v974_v3 = vadd.f32 %v1731_v47, %v973_v58  ;;  %v2150_v21 = vpop.f32.mrb[28].mxu1  ;;  %v1053_v47 = vmul.f32 %v2022_v54, %v2022_v54 }
 0x133   : > { %913 = vst [vmem:[%s2004_s5 + $0xf0] sm:$0xff] %v1734_v2  ;;  %v738_v9 = vpop.f32.mrb[29].mxu0  ;;  %v1050_v22 = vmul.f32 %v1734_v2, %v1734_v2  ;;  %945 = vst [vmem:[%s2004_s5 + $0x1f0] sm:$0xff] %v2150_v21  ;;  %v2154_v28 = vpop.f32.mrb[29].mxu1 }
 0x134   : > { %911 = vst [vmem:[%s2004_s5 + $0xe0] sm:$0xff] %v738_v9  ;;  %v975_v11 = vadd.f32 %v974_v3, %v738_v9  ;;  %v1048_v12 = vmul.f32 %v738_v9, %v738_v9  ;;  %v1110_v13 = vadd.f32 %v1109_v63, %v1047_v62  ;;  %v1735_v15 = vpop.f32.mrb[30].mxu0  ;;  %943 = vst [vmem:[%s2004_s5 + $0x1e0] sm:$0xff] %v2154_v28  ;;  %v2158_v29 = vpop.f32.mrb[30].mxu1 }
 0x135   : > { %914 = vst [vmem:[%s2004_s5 + $0xf8] sm:$0xff] %v1735_v15  ;;  %v741_v16 = vpop.f32.mrb[31].mxu0  ;;  %v1051_v31 = vmul.f32 %v1735_v15, %v1735_v15  ;;  %946 = vst [vmem:[%s2004_s5 + $0x1f8] sm:$0xff] %v2158_v29  ;;  %v2164_v37 = vpop.f32.mrb[31].mxu1 }
 0x136   : > { %v1111_v17 = vadd.f32 %v1110_v13, %v1048_v12  ;;  %912 = vst [vmem:[%s2004_s5 + $0xe8] sm:$0xff] %v741_v16  ;;  %v976_v18 = vadd.f32 %v975_v11, %v741_v16  ;;  %v1049_v19 = vmul.f32 %v741_v16, %v741_v16  ;;  %944 = vst [vmem:[%s2004_s5 + $0x1e8] sm:$0xff] %v2164_v37 }
 0x138   : > { %v977_v23 = vadd.f32 %v1734_v2, %v976_v18  ;;  %v1112_v26 = vadd.f32 %v1111_v17, %v1049_v19  ;;  %v1057_v2 = vmul.f32 %v2042_v10, %v2042_v10  ;;  %v1061_v17 = vmul.f32 %v2062_v30, %v2062_v30 }
 0x13a   : > { %v1113_v34 = vadd.f32 %v1112_v26, %v1050_v22  ;;  %v978_v35 = vadd.f32 %v1735_v15, %v977_v23 }
 0x13c   : > { %v979_v39 = vadd.f32 %v978_v35, %v2014_v48  ;;  %v1114_v41 = vadd.f32 %v1113_v34, %v1051_v31  ;;  %v1056_v48 = vmul.f32 %v2034_v4, %v2034_v4  ;;  %v1065_v35 = vmul.f32 %v2082_v53, %v2082_v53 }
 0x13e   : > { %v1115_v42 = vadd.f32 %v1114_v41, %v1052_v36  ;;  %v980_v43 = vadd.f32 %v979_v39, %v2022_v54 }
 0x140   : > { %v981_v51 = vadd.f32 %v2010_v44, %v980_v43  ;;  %v1116_v52 = vadd.f32 %v1115_v42, %v1053_v47  ;;  %v1058_v44 = vmul.f32 %v2030_v0, %v2030_v0 }
 0x142   : > { %v1117_v57 = vadd.f32 %v1116_v52, %v1054_v50  ;;  %v982_v58 = vadd.f32 %v2018_v49, %v981_v51  ;;  %v1059_v49 = vmul.f32 %v2038_v5, %v2038_v5  ;;  %v1069_v51 = vmul.f32 %v2102_v14, %v2102_v14 }
 0x144   : > { %v983_v59 = vadd.f32 %v982_v58, %v2034_v4  ;;  %v1118_v62 = vadd.f32 %v1117_v57, %v1055_v55  ;;  %v1060_v4 = vmul.f32 %v2054_v24, %v2054_v24 }
 0x146   : > { %v1119_v63 = vadd.f32 %v1118_v62, %v1056_v48  ;;  %v984_v54 = vadd.f32 %v983_v59, %v2042_v10 }
 0x148   : > { %v985_v3 = vadd.f32 %v2030_v0, %v984_v54  ;;  %v1120_v9 = vadd.f32 %v1119_v63, %v1057_v2  ;;  %v1062_v0 = vmul.f32 %v2050_v20, %v2050_v20  ;;  %v1073_v63 = vmul.f32 %v2122_v38, %v2122_v38 }
 0x14a   : > { %v1121_v11 = vadd.f32 %v1120_v9, %v1058_v44  ;;  %v986_v12 = vadd.f32 %v2038_v5, %v985_v3  ;;  %v1063_v5 = vmul.f32 %v2058_v25, %v2058_v25 }
 0x14c   : > { %v987_v13 = vadd.f32 %v986_v12, %v2054_v24  ;;  %v1122_v15 = vadd.f32 %v1121_v11, %v1059_v49  ;;  %v1064_v24 = vmul.f32 %v2074_v45, %v2074_v45  ;;  %v1077_v12 = vmul.f32 %v2142_v6, %v2142_v6 }
 0x14e   : > { %v1123_v16 = vadd.f32 %v1122_v15, %v1060_v4  ;;  %v988_v10 = vadd.f32 %v987_v13, %v2062_v30 }
 0x150   : > { %v989_v18 = vadd.f32 %v2050_v20, %v988_v10  ;;  %v1124_v19 = vadd.f32 %v1123_v16, %v1061_v17  ;;  %v1066_v20 = vmul.f32 %v2070_v40, %v2070_v40 }
 0x152   : > { %v1125_v22 = vadd.f32 %v1124_v19, %v1062_v0  ;;  %v990_v23 = vadd.f32 %v2058_v25, %v989_v18  ;;  %v1067_v25 = vmul.f32 %v2078_v46, %v2078_v46  ;;  %v1081_v18 = vmul.f32 %v2164_v37, %v2164_v37 }
 0x154   : > { %v991_v26 = vadd.f32 %v990_v23, %v2074_v45  ;;  %v1126_v31 = vadd.f32 %v1125_v22, %v1063_v5  ;;  %v1068_v45 = vmul.f32 %v2094_v7, %v2094_v7 }
 0x156   : > { %v1127_v34 = vadd.f32 %v1126_v31, %v1064_v24  ;;  %v992_v30 = vadd.f32 %v991_v26, %v2082_v53 }
 0x158   : > { %v993_v36 = vadd.f32 %v2070_v40, %v992_v30  ;;  %v1128_v39 = vadd.f32 %v1127_v34, %v1065_v35  ;;  %v1070_v40 = vmul.f32 %v2090_v1, %v2090_v1 }
 0x15a   : > { %v1129_v41 = vadd.f32 %v1128_v39, %v1066_v20  ;;  %v994_v42 = vadd.f32 %v2078_v46, %v993_v36  ;;  %v1071_v46 = vmul.f32 %v2098_v8, %v2098_v8  ;;  %v947_v39 = vld [vmem:[#allocation2] sm:$0x1] }
 0x15c   : > { %v995_v43 = vadd.f32 %v994_v42, %v2094_v7  ;;  %v1130_v47 = vadd.f32 %v1129_v41, %v1067_v25  ;;  %v1072_v7 = vmul.f32 %v2114_v32, %v2114_v32  ;;  %v1019_v41 = vld [vmem:[#allocation3] sm:$0x1] }
 0x15e   : > { %v1131_v50 = vadd.f32 %v1130_v47, %v1068_v45  ;;  %v996_v53 = vadd.f32 %v995_v43, %v2102_v14 }
 0x160   : > { %v997_v52 = vadd.f32 %v2090_v1, %v996_v53  ;;  %v1132_v55 = vadd.f32 %v1131_v50, %v1069_v51  ;;  %v1074_v1 = vmul.f32 %v2110_v27, %v2110_v27 }
 0x162   : > { %v1133_v57 = vadd.f32 %v1132_v55, %v1070_v40  ;;  %v998_v58 = vadd.f32 %v2098_v8, %v997_v52  ;;  %v1075_v8 = vmul.f32 %v2118_v33, %v2118_v33  ;;  %v1165_v55 = vld [vmem:[%s2567_s2] sm:$0x1] (!%p1654_p6) }
 0x164   : > { %v999_v48 = vadd.f32 %v998_v58, %v2114_v32  ;;  %v1134_v59 = vadd.f32 %v1133_v57, %v1071_v46  ;;  %v1076_v32 = vmul.f32 %v2134_v60, %v2134_v60  ;;  %v2271_v58 = vld [vmem:[%s2568_s3] sm:$0x1] (!%p1654_p6) }
 0x166   : > { %v1135_v62 = vadd.f32 %v1134_v59, %v1072_v7  ;;  %v1000_v14 = vadd.f32 %v999_v48, %v2122_v38 }
 0x168   : > { %v1001_v54 = vadd.f32 %v2110_v27, %v1000_v14  ;;  %v1136_v2 = vadd.f32 %v1135_v62, %v1073_v63  ;;  %v1078_v27 = vmul.f32 %v2130_v56, %v2130_v56 }
 0x16a   : > { %v1137_v44 = vadd.f32 %v1136_v2, %v1074_v1  ;;  %v1002_v3 = vadd.f32 %v2118_v33, %v1001_v54  ;;  %v1079_v33 = vmul.f32 %v2138_v61, %v2138_v61 }
 0x16c   : > { %v1003_v9 = vadd.f32 %v1002_v3, %v2134_v60  ;;  %v1138_v49 = vadd.f32 %v1137_v44, %v1075_v8  ;;  %v1080_v60 = vmul.f32 %v2154_v28, %v2154_v28 }
 0x16e   : > { %v1139_v11 = vadd.f32 %v1138_v49, %v1076_v32  ;;  %v1004_v38 = vadd.f32 %v1003_v9, %v2142_v6 }
 0x170   : > { %v1005_v4 = vadd.f32 %v2130_v56, %v1004_v38  ;;  %v1140_v13 = vadd.f32 %v1139_v11, %v1077_v12  ;;  %v1082_v56 = vmul.f32 %v2150_v21, %v2150_v21 }
 0x172   : > { %v1141_v15 = vadd.f32 %v1140_v13, %v1078_v27  ;;  %v1006_v16 = vadd.f32 %v2138_v61, %v1005_v4  ;;  %v1083_v61 = vmul.f32 %v2158_v29, %v2158_v29 }
 0x174   : > { %v1007_v10 = vadd.f32 %v1006_v16, %v2154_v28  ;;  %v1142_v17 = vadd.f32 %v1141_v15, %v1079_v33 }
 0x176   : > { %v1143_v0 = vadd.f32 %v1142_v17, %v1080_v60  ;;  %v1008_v6 = vadd.f32 %v1007_v10, %v2164_v37 }
 0x178   : > { %v1009_v19 = vadd.f32 %v2150_v21, %v1008_v6  ;;  %v1144_v5 = vadd.f32 %v1143_v0, %v1081_v18 }
 0x17a   : > { %v1010_v22 = vadd.f32 %v2158_v29, %v1009_v19  ;;  %v1145_v23 = vadd.f32 %v1144_v5, %v1082_v56 }
 0x17c   : > { %v1011_v28 = vrot.slane %v1010_v22, 4  ;;  %v1146_v24 = vadd.f32 %v1145_v23, %v1083_v61 }
 0x17e   : > { %v1012_v26 = vadd.f32 %v1011_v28, %v1010_v22  ;;  %v1147_v31 = vrot.slane %v1146_v24, 4 }
 0x180   : > { %v1013_v34 = vrot.slane %v1012_v26, 2  ;;  %v1148_v30 = vadd.f32 %v1147_v31, %v1146_v24 }
 0x182   : > { %v1014_v35 = vadd.f32 %v1013_v34, %v1012_v26  ;;  %v1149_v37 = vrot.slane %v1148_v30, 2 }
 0x184   : > { %v1015_v20 = vrot.slane %v1014_v35, 1  ;;  %v1150_v36 = vadd.f32 %v1149_v37, %v1148_v30 }
 0x186   : > { %v1016_v25 = vadd.f32 %v1015_v20, %v1014_v35  ;;  %v1151_v21 = vrot.slane %v1150_v36, 1  ;;  %1158 = sbr.rel (%p1654_p6) target bundleno = 493 (0x1ed), region = 44 }
 0x188   : > { %v1017_v42 = vadd.f32 %v1016_v25, %v947_v39  ;;  %v1152_v45 = vadd.f32 %v1151_v21, %v1150_v36 }
 0x18a   : > { %1018 = vst [vmem:[#allocation2] sm:$0x1] %v1017_v42  ;;  %v1153_v43 = vadd.f32 %v1152_v45, %v1019_v41 }
 0x18c   : > { %1154 = vst [vmem:[#allocation3] sm:$0x1] %v1153_v43 }
 0x191   : > { %v1159_v29 = vld [vmem:[#allocation2] sm:$0x1] }
 0x192   : > { %v1160_v50 = vmul.f32 0.00048828125, %v1159_v29 }
 0x193   : > { %v1161_v47 = vld [vmem:[#allocation3] sm:$0x1] }
 0x194   : > { %v1162_v53 = vmul.f32 0.00048828125, %v1161_v47  ;;  %v1163_v51 = vmul.f32 %v1160_v50, %v1160_v50 }
 0x196   : > { %v1164_v40 = vsub.f32 %v1162_v53, %v1163_v51 }
 0x198   : > { %v1166_v52 = vadd.f32 1e-05, %v1164_v40 }
 0x19a   : > { %1845 = vrsqrt.f32 %v1166_v52 }
 0x1a4   : > { %v1846_v46 = vpop.eup %1845 }
 0x1a5   : > { %v2266_v57 = vmul.f32 %v1846_v46, %v1165_v55 }
 0x1a7   : > { %v2274_v7 = vmul.f32 %v2266_v57, %v1160_v50 }
 0x1a9   : > { %v1171_v48 = vsub.f32 %v2271_v58, %v2274_v7 }
 0x1aa LB: >> { %v1245_v59 = vlaneseq  ;;  %s1655_s11 = sshll.u32 %s1877_s10, 9  ;;  %s1177_s10 = sadd.s32 1, %s1877_s10   ;;  %s1877_s10 = sphi %s2278_s10, %s1177_s10  }
 0x1ab   : >> { %s2287_s14 = scalar_lea.vmem %s2569_s4, %s1655_s11  ;;  %p1174_p7 = scmp.ge.s32.totalorder %s1177_s10, 4  }
 0x1ac   : >> { %v1246_v62 = vshrl.u32 %v1245_v59, 7  ;;  %v1180_v14 = vld [vmem:[%s2287_s14] sm:$0xff]  ;;  %v1181_v1 = vld [vmem:[%s2287_s14 + $0x8] sm:$0xff]  ;;  %v1182_v54 = vld [vmem:[%s2287_s14 + $0x10] sm:$0xff] }
 0x1ad   : >> { %v1183_v2 = vld [vmem:[%s2287_s14 + $0x18] sm:$0xff]  ;;  %v1184_v8 = vld [vmem:[%s2287_s14 + $0x20] sm:$0xff]  ;;  %v1185_v32 = vld [vmem:[%s2287_s14 + $0x28] sm:$0xff] }
 0x1ae   : >> { %v1247_v63 = vsub.s32 0, %v1246_v62  ;;  %v1186_v9 = vld [vmem:[%s2287_s14 + $0x30] sm:$0xff]  ;;  %v1187_v49 = vld [vmem:[%s2287_s14 + $0x38] sm:$0xff]  ;;  %v1188_v0 = vld [vmem:[%s2287_s14 + $0x40] sm:$0xff] }
 0x1af   : >> { %v1189_v6 = vld [vmem:[%s2287_s14 + $0x48] sm:$0xff]  ;;  %v1190_v18 = vld [vmem:[%s2287_s14 + $0x50] sm:$0xff]  ;;  %v1191_v22 = vld [vmem:[%s2287_s14 + $0x58] sm:$0xff] }
 0x1b0   : >> { %v2295_v44 = vrot.slane %v2266_v57, %v1247_v63  ;;  %v2300_v3 = vrot.slane %v1171_v48, %v1247_v63  ;;  %v1192_v23 = vld [vmem:[%s2287_s14 + $0x60] sm:$0xff]  ;;  %v1193_v28 = vld [vmem:[%s2287_s14 + $0x68] sm:$0xff]  ;;  %v1194_v30 = vld [vmem:[%s2287_s14 + $0x70] sm:$0xff] }
 0x1b1   : >> { %v1195_v35 = vld [vmem:[%s2287_s14 + $0x78] sm:$0xff]  ;;  %v1196_v52 = vld [vmem:[%s2287_s14 + $0x80] sm:$0xff]  ;;  %v1197_v55 = vld [vmem:[%s2287_s14 + $0x88] sm:$0xff] }
 0x1b2   : >> { %v1250_v11 = vmul.f32 %v2295_v44, %v1180_v14  ;;  %v1251_v38 = vmul.f32 %v2295_v44, %v1181_v1  ;;  %v1252_v12 = vmul.f32 %v2295_v44, %v1182_v54  ;;  %v1253_v27 = vmul.f32 %v2295_v44, %v1183_v2  ;;  %v1198_v46 = vld [vmem:[%s2287_s14 + $0x90] sm:$0xff]  ;;  %v1199_v1 = vld [vmem:[%s2287_s14 + $0x98] sm:$0xff]  ;;  %v1200_v54 = vld [vmem:[%s2287_s14 + $0xa0] sm:$0xff] }
 0x1b3   : >> { %v1254_v4 = vmul.f32 %v2295_v44, %v1184_v8  ;;  %v1255_v13 = vmul.f32 %v2295_v44, %v1185_v32  ;;  %v1256_v33 = vmul.f32 %v2295_v44, %v1186_v9  ;;  %v1257_v15 = vmul.f32 %v2295_v44, %v1187_v49  ;;  %v1201_v2 = vld [vmem:[%s2287_s14 + $0xa8] sm:$0xff] }
 0x1b4   : >> { %v1320_v16 = vadd.f32 %v2300_v3, %v1250_v11  ;;  %v1321_v60 = vadd.f32 %v2300_v3, %v1251_v38  ;;  %v1322_v10 = vadd.f32 %v2300_v3, %v1252_v12  ;;  %v1323_v17 = vadd.f32 %v2300_v3, %v1253_v27  ;;  %v1202_v11 = vld [vmem:[%s2287_s14 + $0xb0] sm:$0xff]  ;;  %v1203_v38 = vld [vmem:[%s2287_s14 + $0xb8] sm:$0xff] }
 0x1b5   : >> { %v1324_v56 = vadd.f32 %v2300_v3, %v1254_v4  ;;  %v1325_v19 = vadd.f32 %v2300_v3, %v1255_v13  ;;  %v1326_v5 = vadd.f32 %v2300_v3, %v1256_v33  ;;  %v1327_v61 = vadd.f32 %v2300_v3, %v1257_v15 }
 0x1b6   : >> { %v1384_v24 = vmax.f32 %v1320_v16, 0.0  ;;  %v1385_v26 = vmax.f32 %v1321_v60, 0.0  ;;  %v1386_v31 = vmax.f32 %v1322_v10, 0.0  ;;  %v1387_v34 = vmax.f32 %v1323_v17, 0.0 }
 0x1b7   : >> { %v1388_v37 = vmax.f32 %v1324_v56, 0.0  ;;  %v1389_v20 = vmax.f32 %v1325_v19, 0.0  ;;  %v1390_v36 = vmax.f32 %v1326_v5, 0.0  ;;  %v1391_v39 = vmax.f32 %v1327_v61, 0.0  ;;  %v1204_v61 = vld [vmem:[%s2287_s14 + $0xc0] sm:$0xff] }
 0x1b8   : >> { %1448 = vst [vmem:[%s2287_s14] sm:$0xff] %v1384_v24  ;;  %1449 = vst [vmem:[%s2287_s14 + $0x8] sm:$0xff] %v1385_v26  ;;  %v1258_v25 = vmul.f32 %v2295_v44, %v1188_v0  ;;  %v1259_v21 = vmul.f32 %v2295_v44, %v1189_v6  ;;  %v1260_v41 = vmul.f32 %v2295_v44, %v1190_v18 }
 0x1b9   : >> { %1450 = vst [vmem:[%s2287_s14 + $0x10] sm:$0xff] %v1386_v31  ;;  %1451 = vst [vmem:[%s2287_s14 + $0x18] sm:$0xff] %v1387_v34  ;;  %v1261_v42 = vmul.f32 %v2295_v44, %v1191_v22  ;;  %v1262_v45 = vmul.f32 %v2295_v44, %v1192_v23  ;;  %v1263_v43 = vmul.f32 %v2295_v44, %v1193_v28  ;;  %v1205_v22 = vld [vmem:[%s2287_s14 + $0xc8] sm:$0xff]  ;;  %v1206_v23 = vld [vmem:[%s2287_s14 + $0xd0] sm:$0xff] }
 0x1ba   : >> { %1452 = vst [vmem:[%s2287_s14 + $0x20] sm:$0xff] %v1388_v37  ;;  %1453 = vst [vmem:[%s2287_s14 + $0x28] sm:$0xff] %v1389_v20  ;;  %v1264_v29 = vmul.f32 %v2295_v44, %v1194_v30  ;;  %v1265_v47 = vmul.f32 %v2295_v44, %v1195_v35  ;;  %v1328_v50 = vadd.f32 %v2300_v3, %v1258_v25  ;;  %v1207_v34 = vld [vmem:[%s2287_s14 + $0xd8] sm:$0xff]  ;;  %v1208_v30 = vld [vmem:[%s2287_s14 + $0xe0] sm:$0xff] }
 0x1bb   : >> { %1454 = vst [vmem:[%s2287_s14 + $0x30] sm:$0xff] %v1390_v36  ;;  %1455 = vst [vmem:[%s2287_s14 + $0x38] sm:$0xff] %v1391_v39  ;;  %v1329_v53 = vadd.f32 %v2300_v3, %v1259_v21  ;;  %v1330_v51 = vadd.f32 %v2300_v3, %v1260_v41  ;;  %v1331_v40 = vadd.f32 %v2300_v3, %v1261_v42  ;;  %v1209_v35 = vld [vmem:[%s2287_s14 + $0xe8] sm:$0xff]  ;;  %v1210_v25 = vld [vmem:[%s2287_s14 + $0xf0] sm:$0xff] }
 0x1bc   : >> { %v1332_v59 = vadd.f32 %v2300_v3, %v1262_v45  ;;  %v1333_v62 = vadd.f32 %v2300_v3, %v1263_v43  ;;  %v1334_v14 = vadd.f32 %v2300_v3, %v1264_v29  ;;  %v1335_v63 = vadd.f32 %v2300_v3, %v1265_v47  ;;  %v1211_v21 = vld [vmem:[%s2287_s14 + $0xf8] sm:$0xff] }
 0x1bd   : >> { %v1392_v8 = vmax.f32 %v1328_v50, 0.0  ;;  %v1393_v32 = vmax.f32 %v1329_v53, 0.0  ;;  %v1394_v9 = vmax.f32 %v1330_v51, 0.0  ;;  %v1395_v49 = vmax.f32 %v1331_v40, 0.0 }
 0x1be   : >> { %v1396_v12 = vmax.f32 %v1332_v59, 0.0  ;;  %v1397_v27 = vmax.f32 %v1333_v62, 0.0  ;;  %v1398_v4 = vmax.f32 %v1334_v14, 0.0  ;;  %v1399_v13 = vmax.f32 %v1335_v63, 0.0  ;;  %v1212_v63 = vld [vmem:[%s2287_s14 + $0x100] sm:$0xff] }
 0x1bf   : >> { %1456 = vst [vmem:[%s2287_s14 + $0x40] sm:$0xff] %v1392_v8  ;;  %1457 = vst [vmem:[%s2287_s14 + $0x48] sm:$0xff] %v1393_v32  ;;  %v1266_v33 = vmul.f32 %v2295_v44, %v1196_v52  ;;  %v1267_v15 = vmul.f32 %v2295_v44, %v1197_v55  ;;  %v1268_v16 = vmul.f32 %v2295_v44, %v1198_v46 }
 0x1c0   : >> { %1458 = vst [vmem:[%s2287_s14 + $0x50] sm:$0xff] %v1394_v9  ;;  %1459 = vst [vmem:[%s2287_s14 + $0x58] sm:$0xff] %v1395_v49  ;;  %v1269_v60 = vmul.f32 %v2295_v44, %v1199_v1  ;;  %v1270_v10 = vmul.f32 %v2295_v44, %v1200_v54  ;;  %v1271_v17 = vmul.f32 %v2295_v44, %v1201_v2  ;;  %v1213_v1 = vld [vmem:[%s2287_s14 + $0x108] sm:$0xff]  ;;  %v1214_v54 = vld [vmem:[%s2287_s14 + $0x110] sm:$0xff] }
 0x1c1   : >> { %1460 = vst [vmem:[%s2287_s14 + $0x60] sm:$0xff] %v1396_v12  ;;  %1461 = vst [vmem:[%s2287_s14 + $0x68] sm:$0xff] %v1397_v27  ;;  %v1272_v0 = vmul.f32 %v2295_v44, %v1202_v11  ;;  %v1273_v6 = vmul.f32 %v2295_v44, %v1203_v38  ;;  %v1336_v18 = vadd.f32 %v2300_v3, %v1266_v33  ;;  %v1215_v49 = vld [vmem:[%s2287_s14 + $0x118] sm:$0xff]  ;;  %v1216_v11 = vld [vmem:[%s2287_s14 + $0x120] sm:$0xff] }
 0x1c2   : >> { %1462 = vst [vmem:[%s2287_s14 + $0x70] sm:$0xff] %v1398_v4  ;;  %1463 = vst [vmem:[%s2287_s14 + $0x78] sm:$0xff] %v1399_v13  ;;  %v1337_v56 = vadd.f32 %v2300_v3, %v1267_v15  ;;  %v1338_v19 = vadd.f32 %v2300_v3, %v1268_v16  ;;  %v1339_v5 = vadd.f32 %v2300_v3, %v1269_v60  ;;  %v1217_v38 = vld [vmem:[%s2287_s14 + $0x128] sm:$0xff]  ;;  %v1218_v33 = vld [vmem:[%s2287_s14 + $0x130] sm:$0xff] }
 0x1c3   : >> { %v1340_v28 = vadd.f32 %v2300_v3, %v1270_v10  ;;  %v1341_v24 = vadd.f32 %v2300_v3, %v1271_v17  ;;  %v1342_v26 = vadd.f32 %v2300_v3, %v1272_v0  ;;  %v1343_v31 = vadd.f32 %v2300_v3, %v1273_v6  ;;  %v1219_v15 = vld [vmem:[%s2287_s14 + $0x138] sm:$0xff] }
 0x1c4   : >> { %v1400_v37 = vmax.f32 %v1336_v18, 0.0  ;;  %v1401_v20 = vmax.f32 %v1337_v56, 0.0  ;;  %v1402_v36 = vmax.f32 %v1338_v19, 0.0  ;;  %v1403_v39 = vmax.f32 %v1339_v5, 0.0 }
 0x1c5   : >> { %v1404_v41 = vmax.f32 %v1340_v28, 0.0  ;;  %v1405_v42 = vmax.f32 %v1341_v24, 0.0  ;;  %v1406_v45 = vmax.f32 %v1342_v26, 0.0  ;;  %v1407_v43 = vmax.f32 %v1343_v31, 0.0  ;;  %v1220_v31 = vld [vmem:[%s2287_s14 + $0x140] sm:$0xff] }
 0x1c6   : >> { %1464 = vst [vmem:[%s2287_s14 + $0x80] sm:$0xff] %v1400_v37  ;;  %1465 = vst [vmem:[%s2287_s14 + $0x88] sm:$0xff] %v1401_v20  ;;  %v1274_v29 = vmul.f32 %v2295_v44, %v1204_v61  ;;  %v1275_v47 = vmul.f32 %v2295_v44, %v1205_v22  ;;  %v1276_v50 = vmul.f32 %v2295_v44, %v1206_v23 }
 0x1c7   : >> { %1466 = vst [vmem:[%s2287_s14 + $0x90] sm:$0xff] %v1402_v36  ;;  %1467 = vst [vmem:[%s2287_s14 + $0x98] sm:$0xff] %v1403_v39  ;;  %v1277_v53 = vmul.f32 %v2295_v44, %v1207_v34  ;;  %v1278_v51 = vmul.f32 %v2295_v44, %v1208_v30  ;;  %v1279_v40 = vmul.f32 %v2295_v44, %v1209_v35  ;;  %v1221_v34 = vld [vmem:[%s2287_s14 + $0x148] sm:$0xff]  ;;  %v1222_v30 = vld [vmem:[%s2287_s14 + $0x150] sm:$0xff] }
 0x1c8   : >> { %1468 = vst [vmem:[%s2287_s14 + $0xa0] sm:$0xff] %v1404_v41  ;;  %1469 = vst [vmem:[%s2287_s14 + $0xa8] sm:$0xff] %v1405_v42  ;;  %v1280_v52 = vmul.f32 %v2295_v44, %v1210_v25  ;;  %v1281_v55 = vmul.f32 %v2295_v44, %v1211_v21  ;;  %v1344_v46 = vadd.f32 %v2300_v3, %v1274_v29  ;;  %v1223_v39 = vld [vmem:[%s2287_s14 + $0x158] sm:$0xff]  ;;  %v1224_v25 = vld [vmem:[%s2287_s14 + $0x160] sm:$0xff] }
 0x1c9   : >> { %1470 = vst [vmem:[%s2287_s14 + $0xb0] sm:$0xff] %v1406_v45  ;;  %1471 = vst [vmem:[%s2287_s14 + $0xb8] sm:$0xff] %v1407_v43  ;;  %v1345_v59 = vadd.f32 %v2300_v3, %v1275_v47  ;;  %v1346_v62 = vadd.f32 %v2300_v3, %v1276_v50  ;;  %v1347_v14 = vadd.f32 %v2300_v3, %v1277_v53  ;;  %v1225_v21 = vld [vmem:[%s2287_s14 + $0x168] sm:$0xff]  ;;  %v1226_v29 = vld [vmem:[%s2287_s14 + $0x170] sm:$0xff] }
 0x1ca   : >> { %v1348_v2 = vadd.f32 %v2300_v3, %v1278_v51  ;;  %v1349_v8 = vadd.f32 %v2300_v3, %v1279_v40  ;;  %v1350_v32 = vadd.f32 %v2300_v3, %v1280_v52  ;;  %v1351_v9 = vadd.f32 %v2300_v3, %v1281_v55  ;;  %v1227_v47 = vld [vmem:[%s2287_s14 + $0x178] sm:$0xff] }
 0x1cb   : >> { %v1408_v12 = vmax.f32 %v1344_v46, 0.0  ;;  %v1409_v27 = vmax.f32 %v1345_v59, 0.0  ;;  %v1410_v4 = vmax.f32 %v1346_v62, 0.0  ;;  %v1411_v13 = vmax.f32 %v1347_v14, 0.0 }
 0x1cc   : >> { %v1412_v16 = vmax.f32 %v1348_v2, 0.0  ;;  %v1413_v60 = vmax.f32 %v1349_v8, 0.0  ;;  %v1414_v10 = vmax.f32 %v1350_v32, 0.0  ;;  %v1415_v17 = vmax.f32 %v1351_v9, 0.0  ;;  %v1228_v9 = vld [vmem:[%s2287_s14 + $0x180] sm:$0xff] }
 0x1cd   : >> { %1472 = vst [vmem:[%s2287_s14 + $0xc0] sm:$0xff] %v1408_v12  ;;  %1473 = vst [vmem:[%s2287_s14 + $0xc8] sm:$0xff] %v1409_v27  ;;  %v1282_v0 = vmul.f32 %v2295_v44, %v1212_v63  ;;  %v1283_v6 = vmul.f32 %v2295_v44, %v1213_v1  ;;  %v1284_v18 = vmul.f32 %v2295_v44, %v1214_v54 }
 0x1ce   : >> { %1474 = vst [vmem:[%s2287_s14 + $0xd0] sm:$0xff] %v1410_v4  ;;  %1475 = vst [vmem:[%s2287_s14 + $0xd8] sm:$0xff] %v1411_v13  ;;  %v1285_v56 = vmul.f32 %v2295_v44, %v1215_v49  ;;  %v1286_v19 = vmul.f32 %v2295_v44, %v1216_v11  ;;  %v1287_v5 = vmul.f32 %v2295_v44, %v1217_v38  ;;  %v1229_v49 = vld [vmem:[%s2287_s14 + $0x188] sm:$0xff]  ;;  %v1230_v11 = vld [vmem:[%s2287_s14 + $0x190] sm:$0xff] }
 0x1cf   : >> { %1476 = vst [vmem:[%s2287_s14 + $0xe0] sm:$0xff] %v1412_v16  ;;  %1477 = vst [vmem:[%s2287_s14 + $0xe8] sm:$0xff] %v1413_v60  ;;  %v1288_v61 = vmul.f32 %v2295_v44, %v1218_v33  ;;  %v1289_v22 = vmul.f32 %v2295_v44, %v1219_v15  ;;  %v1352_v23 = vadd.f32 %v2300_v3, %v1282_v0  ;;  %v1231_v13 = vld [vmem:[%s2287_s14 + $0x198] sm:$0xff]  ;;  %v1232_v33 = vld [vmem:[%s2287_s14 + $0x1a0] sm:$0xff] }
 0x1d0   : >> { %1478 = vst [vmem:[%s2287_s14 + $0xf0] sm:$0xff] %v1414_v10  ;;  %1479 = vst [vmem:[%s2287_s14 + $0xf8] sm:$0xff] %v1415_v17  ;;  %v1353_v28 = vadd.f32 %v2300_v3, %v1283_v6  ;;  %v1354_v24 = vadd.f32 %v2300_v3, %v1284_v18  ;;  %v1355_v26 = vadd.f32 %v2300_v3, %v1285_v56  ;;  %v1233_v15 = vld [vmem:[%s2287_s14 + $0x1a8] sm:$0xff]  ;;  %v1234_v0 = vld [vmem:[%s2287_s14 + $0x1b0] sm:$0xff] }
 0x1d1   : >> { %v1356_v35 = vadd.f32 %v2300_v3, %v1286_v19  ;;  %v1357_v37 = vadd.f32 %v2300_v3, %v1287_v5  ;;  %v1358_v20 = vadd.f32 %v2300_v3, %v1288_v61  ;;  %v1359_v36 = vadd.f32 %v2300_v3, %v1289_v22  ;;  %v1235_v6 = vld [vmem:[%s2287_s14 + $0x1b8] sm:$0xff] }
 0x1d2   : >> { %v1416_v41 = vmax.f32 %v1352_v23, 0.0  ;;  %v1417_v42 = vmax.f32 %v1353_v28, 0.0  ;;  %v1418_v45 = vmax.f32 %v1354_v24, 0.0  ;;  %v1419_v43 = vmax.f32 %v1355_v26, 0.0 }
 0x1d3   : >> { %v1420_v50 = vmax.f32 %v1356_v35, 0.0  ;;  %v1421_v53 = vmax.f32 %v1357_v37, 0.0  ;;  %v1422_v51 = vmax.f32 %v1358_v20, 0.0  ;;  %v1423_v40 = vmax.f32 %v1359_v36, 0.0  ;;  %v1236_v36 = vld [vmem:[%s2287_s14 + $0x1c0] sm:$0xff] }
 0x1d4   : >> { %1480 = vst [vmem:[%s2287_s14 + $0x100] sm:$0xff] %v1416_v41  ;;  %1481 = vst [vmem:[%s2287_s14 + $0x108] sm:$0xff] %v1417_v42  ;;  %v1290_v52 = vmul.f32 %v2295_v44, %v1220_v31  ;;  %v1291_v55 = vmul.f32 %v2295_v44, %v1221_v34  ;;  %v1292_v46 = vmul.f32 %v2295_v44, %v1222_v30 }
 0x1d5   : >> { %1482 = vst [vmem:[%s2287_s14 + $0x110] sm:$0xff] %v1418_v45  ;;  %1483 = vst [vmem:[%s2287_s14 + $0x118] sm:$0xff] %v1419_v43  ;;  %v1293_v59 = vmul.f32 %v2295_v44, %v1223_v39  ;;  %v1294_v62 = vmul.f32 %v2295_v44, %v1224_v25  ;;  %v1295_v14 = vmul.f32 %v2295_v44, %v1225_v21  ;;  %v1237_v39 = vld [vmem:[%s2287_s14 + $0x1c8] sm:$0xff]  ;;  %v1238_v25 = vld [vmem:[%s2287_s14 + $0x1d0] sm:$0xff] }
 0x1d6   : >> { %1484 = vst [vmem:[%s2287_s14 + $0x120] sm:$0xff] %v1420_v50  ;;  %1485 = vst [vmem:[%s2287_s14 + $0x128] sm:$0xff] %v1421_v53  ;;  %v1296_v63 = vmul.f32 %v2295_v44, %v1226_v29  ;;  %v1297_v1 = vmul.f32 %v2295_v44, %v1227_v47  ;;  %v1360_v54 = vadd.f32 %v2300_v3, %v1290_v52  ;;  %v1239_v43 = vld [vmem:[%s2287_s14 + $0x1d8] sm:$0xff]  ;;  %v1240_v29 = vld [vmem:[%s2287_s14 + $0x1e0] sm:$0xff] }
 0x1d7   : >> { %1486 = vst [vmem:[%s2287_s14 + $0x130] sm:$0xff] %v1422_v51  ;;  %1487 = vst [vmem:[%s2287_s14 + $0x138] sm:$0xff] %v1423_v40  ;;  %v1361_v2 = vadd.f32 %v2300_v3, %v1291_v55  ;;  %v1362_v8 = vadd.f32 %v2300_v3, %v1292_v46  ;;  %v1363_v32 = vadd.f32 %v2300_v3, %v1293_v59  ;;  %v1241_v47 = vld [vmem:[%s2287_s14 + $0x1e8] sm:$0xff]  ;;  %v1242_v52 = vld [vmem:[%s2287_s14 + $0x1f0] sm:$0xff] }
 0x1d8   : >> { %v1364_v38 = vadd.f32 %v2300_v3, %v1294_v62  ;;  %v1365_v12 = vadd.f32 %v2300_v3, %v1295_v14  ;;  %v1366_v27 = vadd.f32 %v2300_v3, %v1296_v63  ;;  %v1367_v4 = vadd.f32 %v2300_v3, %v1297_v1  ;;  %v1243_v55 = vld [vmem:[%s2287_s14 + $0x1f8] sm:$0xff] }
 0x1d9   : >> { %v1424_v16 = vmax.f32 %v1360_v54, 0.0  ;;  %v1425_v60 = vmax.f32 %v1361_v2, 0.0  ;;  %v1426_v10 = vmax.f32 %v1362_v8, 0.0  ;;  %v1427_v17 = vmax.f32 %v1363_v32, 0.0 }
 0x1da   : >> { %v1428_v18 = vmax.f32 %v1364_v38, 0.0  ;;  %v1429_v56 = vmax.f32 %v1365_v12, 0.0  ;;  %v1430_v19 = vmax.f32 %v1366_v27, 0.0  ;;  %v1431_v5 = vmax.f32 %v1367_v4, 0.0 }
 0x1db   : >> { %1488 = vst [vmem:[%s2287_s14 + $0x140] sm:$0xff] %v1424_v16  ;;  %1489 = vst [vmem:[%s2287_s14 + $0x148] sm:$0xff] %v1425_v60  ;;  %v1298_v61 = vmul.f32 %v2295_v44, %v1228_v9  ;;  %v1299_v22 = vmul.f32 %v2295_v44, %v1229_v49  ;;  %v1300_v23 = vmul.f32 %v2295_v44, %v1230_v11 }
 0x1dc   : >> { %1490 = vst [vmem:[%s2287_s14 + $0x150] sm:$0xff] %v1426_v10  ;;  %1491 = vst [vmem:[%s2287_s14 + $0x158] sm:$0xff] %v1427_v17  ;;  %v1301_v28 = vmul.f32 %v2295_v44, %v1231_v13  ;;  %v1302_v24 = vmul.f32 %v2295_v44, %v1232_v33  ;;  %v1303_v26 = vmul.f32 %v2295_v44, %v1233_v15 }
 0x1dd   : >> { %1492 = vst [vmem:[%s2287_s14 + $0x160] sm:$0xff] %v1428_v18  ;;  %1493 = vst [vmem:[%s2287_s14 + $0x168] sm:$0xff] %v1429_v56  ;;  %v1304_v31 = vmul.f32 %v2295_v44, %v1234_v0  ;;  %v1305_v34 = vmul.f32 %v2295_v44, %v1235_v6  ;;  %v1368_v30 = vadd.f32 %v2300_v3, %v1298_v61 }
 0x1de   : >> { %1494 = vst [vmem:[%s2287_s14 + $0x170] sm:$0xff] %v1430_v19  ;;  %1495 = vst [vmem:[%s2287_s14 + $0x178] sm:$0xff] %v1431_v5  ;;  %v1369_v35 = vadd.f32 %v2300_v3, %v1299_v22  ;;  %v1370_v37 = vadd.f32 %v2300_v3, %v1300_v23  ;;  %v1371_v20 = vadd.f32 %v2300_v3, %v1301_v28 }
 0x1df   : >> { %v1372_v21 = vadd.f32 %v2300_v3, %v1302_v24  ;;  %v1373_v41 = vadd.f32 %v2300_v3, %v1303_v26  ;;  %v1374_v42 = vadd.f32 %v2300_v3, %v1304_v31  ;;  %v1375_v45 = vadd.f32 %v2300_v3, %v1305_v34 }
 0x1e0   : >> { %v1432_v50 = vmax.f32 %v1368_v30, 0.0  ;;  %v1433_v53 = vmax.f32 %v1369_v35, 0.0  ;;  %v1434_v51 = vmax.f32 %v1370_v37, 0.0  ;;  %v1435_v40 = vmax.f32 %v1371_v20, 0.0 }
 0x1e1   : >> { %v1436_v46 = vmax.f32 %v1372_v21, 0.0  ;;  %v1437_v59 = vmax.f32 %v1373_v41, 0.0  ;;  %v1438_v62 = vmax.f32 %v1374_v42, 0.0  ;;  %v1439_v14 = vmax.f32 %v1375_v45, 0.0 }
 0x1e2   : >> { %1496 = vst [vmem:[%s2287_s14 + $0x180] sm:$0xff] %v1432_v50  ;;  %1497 = vst [vmem:[%s2287_s14 + $0x188] sm:$0xff] %v1433_v53  ;;  %v1306_v63 = vmul.f32 %v2295_v44, %v1236_v36  ;;  %v1307_v1 = vmul.f32 %v2295_v44, %v1237_v39  ;;  %v1308_v54 = vmul.f32 %v2295_v44, %v1238_v25 }
 0x1e3   : >> { %1498 = vst [vmem:[%s2287_s14 + $0x190] sm:$0xff] %v1434_v51  ;;  %1499 = vst [vmem:[%s2287_s14 + $0x198] sm:$0xff] %v1435_v40  ;;  %v1309_v2 = vmul.f32 %v2295_v44, %v1239_v43  ;;  %v1310_v8 = vmul.f32 %v2295_v44, %v1240_v29  ;;  %v1311_v32 = vmul.f32 %v2295_v44, %v1241_v47 }
 0x1e4   : >> { %1500 = vst [vmem:[%s2287_s14 + $0x1a0] sm:$0xff] %v1436_v46  ;;  %1501 = vst [vmem:[%s2287_s14 + $0x1a8] sm:$0xff] %v1437_v59  ;;  %v1312_v9 = vmul.f32 %v2295_v44, %v1242_v52  ;;  %v1313_v49 = vmul.f32 %v2295_v44, %v1243_v55  ;;  %v1376_v11 = vadd.f32 %v2300_v3, %v1306_v63 }
 0x1e5   : >> { %1502 = vst [vmem:[%s2287_s14 + $0x1b0] sm:$0xff] %v1438_v62  ;;  %1503 = vst [vmem:[%s2287_s14 + $0x1b8] sm:$0xff] %v1439_v14  ;;  %v1377_v38 = vadd.f32 %v2300_v3, %v1307_v1  ;;  %v1378_v12 = vadd.f32 %v2300_v3, %v1308_v54  ;;  %v1379_v27 = vadd.f32 %v2300_v3, %v1309_v2 }
 0x1e6   : >> { %v1380_v4 = vadd.f32 %v2300_v3, %v1310_v8  ;;  %v1381_v13 = vadd.f32 %v2300_v3, %v1311_v32  ;;  %v1382_v44 = vadd.f32 %v2300_v3, %v1312_v9  ;;  %v1383_v33 = vadd.f32 %v2300_v3, %v1313_v49  ;;  %1176 = sbr.rel (!%p1174_p7) target bundleno = 426 (0x1aa), region = 82 }
 0x1e7   : >> { %v1440_v15 = vmax.f32 %v1376_v11, 0.0  ;;  %v1441_v16 = vmax.f32 %v1377_v38, 0.0  ;;  %v1442_v60 = vmax.f32 %v1378_v12, 0.0  ;;  %v1443_v10 = vmax.f32 %v1379_v27, 0.0 }
 0x1e8   : >> { %v1444_v17 = vmax.f32 %v1380_v4, 0.0  ;;  %v1445_v0 = vmax.f32 %v1381_v13, 0.0  ;;  %v1446_v6 = vmax.f32 %v1382_v44, 0.0  ;;  %v1447_v18 = vmax.f32 %v1383_v33, 0.0 }
 0x1e9   : >> { %1504 = vst [vmem:[%s2287_s14 + $0x1c0] sm:$0xff] %v1440_v15  ;;  %1505 = vst [vmem:[%s2287_s14 + $0x1c8] sm:$0xff] %v1441_v16 }
 0x1ea   : >> { %1506 = vst [vmem:[%s2287_s14 + $0x1d0] sm:$0xff] %v1442_v60  ;;  %1507 = vst [vmem:[%s2287_s14 + $0x1d8] sm:$0xff] %v1443_v10 }
 0x1eb   : >> { %1508 = vst [vmem:[%s2287_s14 + $0x1e0] sm:$0xff] %v1444_v17  ;;  %1509 = vst [vmem:[%s2287_s14 + $0x1e8] sm:$0xff] %v1445_v0 }
 0x1ec   : >> { %1510 = vst [vmem:[%s2287_s14 + $0x1f0] sm:$0xff] %v1446_v6  ;;  %1511 = vst [vmem:[%s2287_s14 + $0x1f8] sm:$0xff] %v1447_v18 }
 0x1ed PF: > { %s14_s17 = sadd.s32 1, %s1873_s17   ;;  %s2570_s15 = smov %s1869_s16 }
 0x1ee   : > { %p11_p8 = scmp.ge.s32.totalorder %s14_s17, 6   ;;  %s2571_s16 = smov %s2573_s18 }
 0x1f0   :  { %13 = sbr.rel (!%p11_p8) target bundleno = 2 (0x2), region = 93 }

// kernel: generator_forward.9
= control target key start
LH: loop header
LB: loop body
LE: loop exit
PB: predicated region body
PF: predicated region fallthrough
CT: control target
= control target key end

     0   :  { %s1669_s15 = smov 0   ;;  %s1671_s16 = smov 0   ;;  %s2010_s0 = inlined_call_operand.vmem [shape: bf16[4,2048,32], index: 0, kind: input, shape index: {}]   ;;  %s2011_s1 = inlined_call_operand.vmem [shape: bf16[4,32,128], index: 1, kind: input, shape index: {}]   ;;  %s2012_s2 = inlined_call_operand.vmem [shape: f32[1,128], index: 2, kind: input, shape index: {}]   ;;  %s2013_s3 = inlined_call_operand.vmem [shape: f32[1,128], index: 3, kind: input, shape index: {}]   ;;  %s2014_s4 = inlined_call_operand.vmem [shape: f32[8192,128], index: 4, kind: output, shape index: {}]  }
   0x1   :  { %s1673_s17 = smov 0   ;;  %s1675_s18 = smov 0  }
   0x2   :  { %s1677_s19 = smov 0  }
   0x3 LB: > { %s23_s2 = sadd.s32 1, %s1630_s17  ;;  %s26_s3 = sadd.s32 1, %s1634_s18  ;;  %s1638_s19 = sphi %s1677_s19, %s14_s19   ;;  %s1634_s18 = sphi %s1675_s18, %s2018_s18   ;;  %s1630_s17 = sphi %s1673_s17, %s2017_s17   ;;  %s1626_s16 = sphi %s1671_s16, %s2016_s16   ;;  %s1622_s15 = sphi %s1669_s15, %s2015_s15  }
   0x4   : > { %p24_p0 = scmp.ge.s32.totalorder %s23_s2, 4  ;;  %p1201_p1 = scmp.ge.s32.totalorder %s1638_s19, 1 }
   0x5   : > { %p186_p2 = scmp.lt.s32.totalorder %s1638_s19, 17 }
   0x6   : > { %s2020_s2 = smov (%p24_p0, %s23_s2), 0  ;;  %s2022_s3 = smov (!%p24_p0, %s26_s3), %s1634_s18 }
   0x7   : > { %p187_p3 = pnand %p1201_p1, %p186_p2  ;;  %p28_p4 = scmp.ge.s32.totalorder %s2022_s3, 4 }
   0x8   : > { %s1202_s20 = sshll.u32 (!%p187_p3), %s1622_s15, 6  ;;  %p217_p5 = scmp.lt.s32.totalorder (!%p187_p3), %s1626_s16, 3  ;;  %vm474_vm0 = vcmask (!%p187_p3), 261120  }
   0x9   : > { %s2024_s3 = smov (%p28_p4, %s2022_s3), 0  ;;  %190 = sbr.rel (%p187_p3) target bundleno = 383 (0x17f), region = 36 }
   0xa   : > { %p219_p6 = scmp.lt.s32.totalorder (!%p187_p3), %s1202_s20, 255  ;;  %s1207_s6 = sshll.u32 (!%p187_p3), %s1626_s16, 2 }
   0xb   : > { %s1780_s7 = sadd.s32 (!%p187_p3), %s1622_s15, %s1207_s6 }
   0xc   : > { %s1274_s8 = sshll.u32 (!%p187_p3), %s1780_s7, 9  ;;  %p1275_p7 = scmp.ne.s32.totalorder (!%p187_p3), %s1780_s7, 15 }
   0xd   : > { %s1786_s11 = scalar_lea.vmem (!%p187_p3), %s2014_s4, %s1274_s8 }
  0x10   : > { %s218_s21 = scalar_select %p217_p5, %s1626_s16, 3 }
  0x11   : > { %s2026_s20 = smov (!%p219_p6, %s1202_s20), 255  ;;  %s1853_s12 = smov (!%p1275_p7), 0  }
  0x12   : > { %s1203_s22 = sshll.u32 %s218_s21, 8  ;;  %s1279_s23 = sshll.u32 %s218_s21, 4 }
  0x13   : > { %s222_s24 = sadd.s32 %s1203_s22, %s2026_s20  ;;  %s230_s27 = scalar_lea.vmem %s2011_s1, %s1279_s23 }
  0x14   : > { %s1204_s28 = sshll.u32 %s222_s24, 2  ;;  %v1434_v0 = vld [vmem:[%s230_s27] sm:$0xff]   ;;  %v1435_v1 = vld [vmem:[%s230_s27 + $0x8] sm:$0xff]  }
  0x15   : > { %s1712_s5 = scalar_lea.vmem %s2010_s0, %s1204_s28  ;;  %1314 = vmatprep.subr.bf16.mxu0 %v1434_v0  ;;  %1382 = vmatprep.subr.bf16.mxu1 %v1434_v0 }
  0x16   : > { %v1436_v2 = vld [vmem:[%s1712_s5] sm:$0xff]   ;;  %1315 = vmatpush3.bf16.msra.mxu0 %v1434_v0  ;;  %1384 = vmatpush3.bf16.msra.mxu1 %v1434_v0  ;;  %v1438_v4 = vld [vmem:[%s1712_s5 + $0x8] sm:$0xff]   ;;  %v1440_v6 = vld [vmem:[%s1712_s5 + $0x10] sm:$0xff]  }
  0x17   : > { %v1437_v3 = vld [vmem:[%s1712_s5 + $0x80] sm:$0xff]   ;;  %1316 = vmatprep.subr.bf16.mxu0 %v1435_v1  ;;  %1383 = vmatprep.subr.bf16.mxu1 %v1435_v1  ;;  %v1439_v5 = vld [vmem:[%s1712_s5 + $0x88] sm:$0xff]   ;;  %v1441_v7 = vld [vmem:[%s1712_s5 + $0x90] sm:$0xff]  }
  0x18   : > { %1318 = vmatprep.mubr.msk.bf16.mxu0 %vm474_vm0, %v1436_v2  ;;  %1350 = vmatprep.mubr.msk.bf16.mxu1 %vm474_vm0, %v1437_v3  ;;  %v1442_v8 = vld [vmem:[%s1712_s5 + $0x18] sm:$0xff]   ;;  %v1444_v10 = vld [vmem:[%s1712_s5 + $0x20] sm:$0xff]   ;;  %v1446_v12 = vld [vmem:[%s1712_s5 + $0x28] sm:$0xff]  }
  0x19   : > { %v1443_v9 = vld [vmem:[%s1712_s5 + $0x98] sm:$0xff]   ;;  %v1445_v11 = vld [vmem:[%s1712_s5 + $0xa0] sm:$0xff]   ;;  %v1447_v13 = vld [vmem:[%s1712_s5 + $0xa8] sm:$0xff]  }
  0x1a   : > { %1317 = vmatpush3.bf16.msra.mxu0 %v1435_v1  ;;  %1385 = vmatpush3.bf16.msra.mxu1 %v1435_v1  ;;  %v1448_v14 = vld [vmem:[%s1712_s5 + $0x30] sm:$0xff]   ;;  %v1450_v16 = vld [vmem:[%s1712_s5 + $0x38] sm:$0xff]   ;;  %v1452_v18 = vld [vmem:[%s1712_s5 + $0x40] sm:$0xff]  }
  0x1b   : > { %v1449_v15 = vld [vmem:[%s1712_s5 + $0xb0] sm:$0xff]   ;;  %v1451_v17 = vld [vmem:[%s1712_s5 + $0xb8] sm:$0xff]   ;;  %v1453_v19 = vld [vmem:[%s1712_s5 + $0xc0] sm:$0xff]  }
  0x1c   : > { %v1454_v20 = vld [vmem:[%s1712_s5 + $0x48] sm:$0xff]   ;;  %v1456_v22 = vld [vmem:[%s1712_s5 + $0x50] sm:$0xff]   ;;  %v1458_v24 = vld [vmem:[%s1712_s5 + $0x58] sm:$0xff]  }
  0x1d   : > { %1319 = vmatmul.mubr.msk.bf16.vlgmr.msra.gmra.mrb[0].mxu0 %vm474_vm0, %v1438_v4  ;;  %1351 = vmatmul.mubr.msk.bf16.vlgmr.msra.gmra.mrb[0].mxu1 %vm474_vm0, %v1439_v5  ;;  %v1455_v21 = vld [vmem:[%s1712_s5 + $0xc8] sm:$0xff]   ;;  %v1457_v23 = vld [vmem:[%s1712_s5 + $0xd0] sm:$0xff]   ;;  %v1459_v25 = vld [vmem:[%s1712_s5 + $0xd8] sm:$0xff]  }
  0x1e   : > { %1322 = vmatprep.mubr.msk.bf16.mxu0 %vm474_vm0, %v1440_v6  ;;  %1354 = vmatprep.mubr.msk.bf16.mxu1 %vm474_vm0, %v1441_v7  ;;  %v1460_v26 = vld [vmem:[%s1712_s5 + $0x60] sm:$0xff]   ;;  %v1462_v28 = vld [vmem:[%s1712_s5 + $0x68] sm:$0xff]   ;;  %v1464_v30 = vld [vmem:[%s1712_s5 + $0x70] sm:$0xff]  }
  0x1f   : > { %v1461_v27 = vld [vmem:[%s1712_s5 + $0xe0] sm:$0xff]   ;;  %v1463_v29 = vld [vmem:[%s1712_s5 + $0xe8] sm:$0xff]   ;;  %v1465_v31 = vld [vmem:[%s1712_s5 + $0xf0] sm:$0xff]  }
  0x20   : > { %v1466_v32 = vld [vmem:[%s1712_s5 + $0x78] sm:$0xff]  }
  0x21   : > { %v1467_v33 = vld [vmem:[%s1712_s5 + $0xf8] sm:$0xff]  }
  0x25   : > { %1323 = vmatmul.mubr.msk.bf16.gmra.mrb[4].mxu0 %vm474_vm0, %v1442_v8  ;;  %1355 = vmatmul.mubr.msk.bf16.gmra.mrb[4].mxu1 %vm474_vm0, %v1443_v9 }
  0x26   : > { %1326 = vmatprep.mubr.msk.bf16.mxu0 %vm474_vm0, %v1444_v10  ;;  %1358 = vmatprep.mubr.msk.bf16.mxu1 %vm474_vm0, %v1445_v11 }
  0x2d   : > { %1327 = vmatmul.mubr.msk.bf16.gmra.mrb[8].mxu0 %vm474_vm0, %v1446_v12  ;;  %1359 = vmatmul.mubr.msk.bf16.gmra.mrb[8].mxu1 %vm474_vm0, %v1447_v13 }
  0x2e   : > { %1330 = vmatprep.mubr.msk.bf16.mxu0 %vm474_vm0, %v1448_v14  ;;  %1362 = vmatprep.mubr.msk.bf16.mxu1 %vm474_vm0, %v1449_v15 }
  0x35   : > { %1331 = vmatmul.mubr.msk.bf16.gmra.mrb[12].mxu0 %vm474_vm0, %v1450_v16  ;;  %1363 = vmatmul.mubr.msk.bf16.gmra.mrb[12].mxu1 %vm474_vm0, %v1451_v17 }
  0x36   : > { %1334 = vmatprep.mubr.msk.bf16.mxu0 %vm474_vm0, %v1452_v18  ;;  %1366 = vmatprep.mubr.msk.bf16.mxu1 %vm474_vm0, %v1453_v19 }
  0x3d   : > { %1335 = vmatmul.mubr.msk.bf16.gmra.mrb[16].mxu0 %vm474_vm0, %v1454_v20  ;;  %1367 = vmatmul.mubr.msk.bf16.gmra.mrb[16].mxu1 %vm474_vm0, %v1455_v21 }
  0x3e   : > { %1338 = vmatprep.mubr.msk.bf16.mxu0 %vm474_vm0, %v1456_v22  ;;  %1370 = vmatprep.mubr.msk.bf16.mxu1 %vm474_vm0, %v1457_v23 }
  0x45   : > { %1339 = vmatmul.mubr.msk.bf16.gmra.mrb[20].mxu0 %vm474_vm0, %v1458_v24  ;;  %1371 = vmatmul.mubr.msk.bf16.gmra.mrb[20].mxu1 %vm474_vm0, %v1459_v25 }
  0x46   : > { %1342 = vmatprep.mubr.msk.bf16.mxu0 %vm474_vm0, %v1460_v26  ;;  %1374 = vmatprep.mubr.msk.bf16.mxu1 %vm474_vm0, %v1461_v27 }
  0x4d   : > { %1343 = vmatmul.mubr.msk.bf16.gmra.mrb[24].mxu0 %vm474_vm0, %v1462_v28  ;;  %1375 = vmatmul.mubr.msk.bf16.gmra.mrb[24].mxu1 %vm474_vm0, %v1463_v29 }
  0x4e   : > { %1346 = vmatprep.mubr.msk.bf16.mxu0 %vm474_vm0, %v1464_v30  ;;  %1378 = vmatprep.mubr.msk.bf16.mxu1 %vm474_vm0, %v1465_v31 }
  0x55   : > { %1347 = vmatmul.mubr.msk.bf16.gmra.mrb[28].mxu0 %vm474_vm0, %v1466_v32  ;;  %1379 = vmatmul.mubr.msk.bf16.gmra.mrb[28].mxu1 %vm474_vm0, %v1467_v33 }
  0xf0   : > { %v1320_v34 = vpop.f32.mrb[0].mxu0  ;;  %v1352_v35 = vpop.f32.mrb[0].mxu1 }
  0xf1   : > { %864 = vst [vmem:[%s1786_s11 + $0x10] sm:$0xff] %v1320_v34  ;;  %896 = vst [vmem:[%s1786_s11 + $0x110] sm:$0xff] %v1352_v35  ;;  %v605_v36 = vpop.f32.mrb[1].mxu0  ;;  %v733_v37 = vpop.f32.mrb[1].mxu1 }
  0xf2   : > { %862 = vst [vmem:[%s1786_s11] sm:$0xff] %v605_v36  ;;  %894 = vst [vmem:[%s1786_s11 + $0x100] sm:$0xff] %v733_v37  ;;  %v1321_v38 = vpop.f32.mrb[2].mxu0  ;;  %v1353_v39 = vpop.f32.mrb[2].mxu1 }
  0xf3   : > { %865 = vst [vmem:[%s1786_s11 + $0x18] sm:$0xff] %v1321_v38  ;;  %897 = vst [vmem:[%s1786_s11 + $0x118] sm:$0xff] %v1353_v39  ;;  %v608_v40 = vpop.f32.mrb[3].mxu0  ;;  %v736_v41 = vpop.f32.mrb[3].mxu1 }
  0xf4   : > { %863 = vst [vmem:[%s1786_s11 + $0x8] sm:$0xff] %v608_v40  ;;  %895 = vst [vmem:[%s1786_s11 + $0x108] sm:$0xff] %v736_v41 }
  0xf8   : > { %v1324_v42 = vpop.f32.mrb[4].mxu0  ;;  %v1356_v43 = vpop.f32.mrb[4].mxu1 }
  0xf9   : > { %868 = vst [vmem:[%s1786_s11 + $0x30] sm:$0xff] %v1324_v42  ;;  %900 = vst [vmem:[%s1786_s11 + $0x130] sm:$0xff] %v1356_v43  ;;  %v621_v44 = vpop.f32.mrb[5].mxu0  ;;  %v749_v45 = vpop.f32.mrb[5].mxu1 }
  0xfa   : > { %866 = vst [vmem:[%s1786_s11 + $0x20] sm:$0xff] %v621_v44  ;;  %898 = vst [vmem:[%s1786_s11 + $0x120] sm:$0xff] %v749_v45  ;;  %v1325_v46 = vpop.f32.mrb[6].mxu0  ;;  %v1357_v47 = vpop.f32.mrb[6].mxu1 }
  0xfb   : > { %869 = vst [vmem:[%s1786_s11 + $0x38] sm:$0xff] %v1325_v46  ;;  %901 = vst [vmem:[%s1786_s11 + $0x138] sm:$0xff] %v1357_v47  ;;  %v624_v48 = vpop.f32.mrb[7].mxu0  ;;  %v752_v49 = vpop.f32.mrb[7].mxu1 }
  0xfc   : > { %867 = vst [vmem:[%s1786_s11 + $0x28] sm:$0xff] %v624_v48  ;;  %899 = vst [vmem:[%s1786_s11 + $0x128] sm:$0xff] %v752_v49 }
 0x100   : > { %v1328_v50 = vpop.f32.mrb[8].mxu0  ;;  %v1360_v51 = vpop.f32.mrb[8].mxu1 }
 0x101   : > { %872 = vst [vmem:[%s1786_s11 + $0x50] sm:$0xff] %v1328_v50  ;;  %904 = vst [vmem:[%s1786_s11 + $0x150] sm:$0xff] %v1360_v51  ;;  %v637_v52 = vpop.f32.mrb[9].mxu0  ;;  %v765_v53 = vpop.f32.mrb[9].mxu1 }
 0x102   : > { %870 = vst [vmem:[%s1786_s11 + $0x40] sm:$0xff] %v637_v52  ;;  %902 = vst [vmem:[%s1786_s11 + $0x140] sm:$0xff] %v765_v53  ;;  %v1329_v54 = vpop.f32.mrb[10].mxu0  ;;  %v1361_v55 = vpop.f32.mrb[10].mxu1 }
 0x103   : > { %873 = vst [vmem:[%s1786_s11 + $0x58] sm:$0xff] %v1329_v54  ;;  %905 = vst [vmem:[%s1786_s11 + $0x158] sm:$0xff] %v1361_v55  ;;  %v640_v56 = vpop.f32.mrb[11].mxu0  ;;  %v768_v57 = vpop.f32.mrb[11].mxu1 }
 0x104   : > { %871 = vst [vmem:[%s1786_s11 + $0x48] sm:$0xff] %v640_v56  ;;  %903 = vst [vmem:[%s1786_s11 + $0x148] sm:$0xff] %v768_v57 }
 0x108   : > { %v1332_v58 = vpop.f32.mrb[12].mxu0  ;;  %v1364_v59 = vpop.f32.mrb[12].mxu1 }
 0x109   : > { %876 = vst [vmem:[%s1786_s11 + $0x70] sm:$0xff] %v1332_v58  ;;  %908 = vst [vmem:[%s1786_s11 + $0x170] sm:$0xff] %v1364_v59  ;;  %v653_v60 = vpop.f32.mrb[13].mxu0  ;;  %v781_v61 = vpop.f32.mrb[13].mxu1 }
 0x10a   : > { %874 = vst [vmem:[%s1786_s11 + $0x60] sm:$0xff] %v653_v60  ;;  %906 = vst [vmem:[%s1786_s11 + $0x160] sm:$0xff] %v781_v61  ;;  %v1333_v62 = vpop.f32.mrb[14].mxu0  ;;  %v1365_v63 = vpop.f32.mrb[14].mxu1 }
 0x10b   : > { %877 = vst [vmem:[%s1786_s11 + $0x78] sm:$0xff] %v1333_v62  ;;  %909 = vst [vmem:[%s1786_s11 + $0x178] sm:$0xff] %v1365_v63  ;;  %v656_v0 = vpop.f32.mrb[15].mxu0  ;;  %v784_v1 = vpop.f32.mrb[15].mxu1 }
 0x10c   : > { %875 = vst [vmem:[%s1786_s11 + $0x68] sm:$0xff] %v656_v0  ;;  %907 = vst [vmem:[%s1786_s11 + $0x168] sm:$0xff] %v784_v1 }
 0x110   : > { %v1336_v2 = vpop.f32.mrb[16].mxu0  ;;  %v1368_v3 = vpop.f32.mrb[16].mxu1 }
 0x111   : > { %880 = vst [vmem:[%s1786_s11 + $0x90] sm:$0xff] %v1336_v2  ;;  %912 = vst [vmem:[%s1786_s11 + $0x190] sm:$0xff] %v1368_v3  ;;  %v669_v4 = vpop.f32.mrb[17].mxu0  ;;  %v797_v5 = vpop.f32.mrb[17].mxu1 }
 0x112   : > { %878 = vst [vmem:[%s1786_s11 + $0x80] sm:$0xff] %v669_v4  ;;  %910 = vst [vmem:[%s1786_s11 + $0x180] sm:$0xff] %v797_v5  ;;  %v1337_v6 = vpop.f32.mrb[18].mxu0  ;;  %v1369_v7 = vpop.f32.mrb[18].mxu1 }
 0x113   : > { %881 = vst [vmem:[%s1786_s11 + $0x98] sm:$0xff] %v1337_v6  ;;  %913 = vst [vmem:[%s1786_s11 + $0x198] sm:$0xff] %v1369_v7  ;;  %v672_v8 = vpop.f32.mrb[19].mxu0  ;;  %v800_v9 = vpop.f32.mrb[19].mxu1 }
 0x114   : > { %879 = vst [vmem:[%s1786_s11 + $0x88] sm:$0xff] %v672_v8  ;;  %911 = vst [vmem:[%s1786_s11 + $0x188] sm:$0xff] %v800_v9 }
 0x118   : > { %v1340_v10 = vpop.f32.mrb[20].mxu0  ;;  %v1372_v11 = vpop.f32.mrb[20].mxu1 }
 0x119   : > { %884 = vst [vmem:[%s1786_s11 + $0xb0] sm:$0xff] %v1340_v10  ;;  %916 = vst [vmem:[%s1786_s11 + $0x1b0] sm:$0xff] %v1372_v11  ;;  %v685_v12 = vpop.f32.mrb[21].mxu0  ;;  %v813_v13 = vpop.f32.mrb[21].mxu1 }
 0x11a   : > { %882 = vst [vmem:[%s1786_s11 + $0xa0] sm:$0xff] %v685_v12  ;;  %914 = vst [vmem:[%s1786_s11 + $0x1a0] sm:$0xff] %v813_v13  ;;  %v1341_v14 = vpop.f32.mrb[22].mxu0  ;;  %v1373_v15 = vpop.f32.mrb[22].mxu1 }
 0x11b   : > { %885 = vst [vmem:[%s1786_s11 + $0xb8] sm:$0xff] %v1341_v14  ;;  %917 = vst [vmem:[%s1786_s11 + $0x1b8] sm:$0xff] %v1373_v15  ;;  %v688_v16 = vpop.f32.mrb[23].mxu0  ;;  %v816_v17 = vpop.f32.mrb[23].mxu1 }
 0x11c   : > { %883 = vst [vmem:[%s1786_s11 + $0xa8] sm:$0xff] %v688_v16  ;;  %915 = vst [vmem:[%s1786_s11 + $0x1a8] sm:$0xff] %v816_v17 }
 0x120   : > { %v1344_v18 = vpop.f32.mrb[24].mxu0  ;;  %v1376_v19 = vpop.f32.mrb[24].mxu1 }
 0x121   : > { %888 = vst [vmem:[%s1786_s11 + $0xd0] sm:$0xff] %v1344_v18  ;;  %920 = vst [vmem:[%s1786_s11 + $0x1d0] sm:$0xff] %v1376_v19  ;;  %v701_v20 = vpop.f32.mrb[25].mxu0  ;;  %v829_v21 = vpop.f32.mrb[25].mxu1 }
 0x122   : > { %886 = vst [vmem:[%s1786_s11 + $0xc0] sm:$0xff] %v701_v20  ;;  %918 = vst [vmem:[%s1786_s11 + $0x1c0] sm:$0xff] %v829_v21  ;;  %v1345_v22 = vpop.f32.mrb[26].mxu0  ;;  %v1377_v23 = vpop.f32.mrb[26].mxu1 }
 0x123   : > { %889 = vst [vmem:[%s1786_s11 + $0xd8] sm:$0xff] %v1345_v22  ;;  %921 = vst [vmem:[%s1786_s11 + $0x1d8] sm:$0xff] %v1377_v23  ;;  %v704_v24 = vpop.f32.mrb[27].mxu0  ;;  %v832_v25 = vpop.f32.mrb[27].mxu1 }
 0x124   : > { %887 = vst [vmem:[%s1786_s11 + $0xc8] sm:$0xff] %v704_v24  ;;  %919 = vst [vmem:[%s1786_s11 + $0x1c8] sm:$0xff] %v832_v25 }
 0x126   : > { %929 = sbr.rel (%p1275_p7) target bundleno = 383 (0x17f), region = 40 }
 0x128   : > { %v1348_v26 = vpop.f32.mrb[28].mxu0  ;;  %v1380_v27 = vpop.f32.mrb[28].mxu1 }
 0x129   : > { %892 = vst [vmem:[%s1786_s11 + $0xf0] sm:$0xff] %v1348_v26  ;;  %924 = vst [vmem:[%s1786_s11 + $0x1f0] sm:$0xff] %v1380_v27  ;;  %v717_v28 = vpop.f32.mrb[29].mxu0  ;;  %v845_v29 = vpop.f32.mrb[29].mxu1 }
 0x12a   : > { %890 = vst [vmem:[%s1786_s11 + $0xe0] sm:$0xff] %v717_v28  ;;  %922 = vst [vmem:[%s1786_s11 + $0x1e0] sm:$0xff] %v845_v29  ;;  %v1349_v30 = vpop.f32.mrb[30].mxu0  ;;  %v1381_v31 = vpop.f32.mrb[30].mxu1 }
 0x12b   : > { %893 = vst [vmem:[%s1786_s11 + $0xf8] sm:$0xff] %v1349_v30  ;;  %925 = vst [vmem:[%s1786_s11 + $0x1f8] sm:$0xff] %v1381_v31  ;;  %v720_v32 = vpop.f32.mrb[31].mxu0  ;;  %v848_v33 = vpop.f32.mrb[31].mxu1 }
 0x12c   : > { %891 = vst [vmem:[%s1786_s11 + $0xe8] sm:$0xff] %v720_v32  ;;  %923 = vst [vmem:[%s1786_s11 + $0x1e8] sm:$0xff] %v848_v33 }
 0x12d LB: >> { %s1276_s13 = sshll.u32 %s1642_s12, 9  ;;  %s935_s12 = sadd.s32 1, %s1642_s12   ;;  %s1642_s12 = sphi %s1853_s12, %s935_s12  }
 0x12e   : >> { %s1862_s16 = scalar_lea.vmem %s2014_s4, %s1276_s13  ;;  %p932_p8 = scmp.ge.s32.totalorder %s935_s12, 16  }
 0x133   : >> { %v938_v34 = vld [vmem:[%s1862_s16] sm:$0xff]  ;;  %v939_v35 = vld [vmem:[%s1862_s16 + $0x8] sm:$0xff]  ;;  %v940_v36 = vld [vmem:[%s1862_s16 + $0x10] sm:$0xff] }
 0x134   : >> { %1468 = vtanh.f32 %v938_v34  ;;  %v941_v37 = vld [vmem:[%s1862_s16 + $0x18] sm:$0xff]  ;;  %v942_v38 = vld [vmem:[%s1862_s16 + $0x20] sm:$0xff]  ;;  %v943_v39 = vld [vmem:[%s1862_s16 + $0x28] sm:$0xff] }
 0x135   : >> { %1470 = vtanh.f32 %v939_v35  ;;  %v944_v40 = vld [vmem:[%s1862_s16 + $0x30] sm:$0xff]  ;;  %v945_v41 = vld [vmem:[%s1862_s16 + $0x38] sm:$0xff]  ;;  %v946_v42 = vld [vmem:[%s1862_s16 + $0x40] sm:$0xff] }
 0x136   : >> { %1472 = vtanh.f32 %v940_v36  ;;  %v947_v43 = vld [vmem:[%s1862_s16 + $0x48] sm:$0xff]  ;;  %v948_v44 = vld [vmem:[%s1862_s16 + $0x50] sm:$0xff]  ;;  %v949_v45 = vld [vmem:[%s1862_s16 + $0x58] sm:$0xff] }
 0x137   : >> { %1474 = vtanh.f32 %v941_v37  ;;  %v950_v46 = vld [vmem:[%s1862_s16 + $0x60] sm:$0xff]  ;;  %v951_v48 = vld [vmem:[%s1862_s16 + $0x68] sm:$0xff]  ;;  %v952_v50 = vld [vmem:[%s1862_s16 + $0x70] sm:$0xff] }
 0x138   : >> { %1476 = vtanh.f32 %v942_v38  ;;  %v953_v52 = vld [vmem:[%s1862_s16 + $0x78] sm:$0xff]  ;;  %v954_v54 = vld [vmem:[%s1862_s16 + $0x80] sm:$0xff]  ;;  %v955_v56 = vld [vmem:[%s1862_s16 + $0x88] sm:$0xff] }
 0x139   : >> { %1478 = vtanh.f32 %v943_v39  ;;  %v956_v58 = vld [vmem:[%s1862_s16 + $0x90] sm:$0xff]  ;;  %v957_v60 = vld [vmem:[%s1862_s16 + $0x98] sm:$0xff]  ;;  %v958_v62 = vld [vmem:[%s1862_s16 + $0xa0] sm:$0xff] }
 0x13a   : >> { %1480 = vtanh.f32 %v944_v40  ;;  %v959_v0 = vld [vmem:[%s1862_s16 + $0xa8] sm:$0xff]  ;;  %v960_v2 = vld [vmem:[%s1862_s16 + $0xb0] sm:$0xff]  ;;  %v961_v4 = vld [vmem:[%s1862_s16 + $0xb8] sm:$0xff] }
 0x13b   : >> { %1482 = vtanh.f32 %v945_v41  ;;  %v962_v6 = vld [vmem:[%s1862_s16 + $0xc0] sm:$0xff]  ;;  %v963_v8 = vld [vmem:[%s1862_s16 + $0xc8] sm:$0xff]  ;;  %v964_v10 = vld [vmem:[%s1862_s16 + $0xd0] sm:$0xff] }
 0x13c   : >> { %1484 = vtanh.f32 %v946_v42  ;;  %v965_v12 = vld [vmem:[%s1862_s16 + $0xd8] sm:$0xff]  ;;  %v966_v14 = vld [vmem:[%s1862_s16 + $0xe0] sm:$0xff]  ;;  %v967_v16 = vld [vmem:[%s1862_s16 + $0xe8] sm:$0xff] }
 0x13d   : >> { %1486 = vtanh.f32 %v947_v43  ;;  %v968_v18 = vld [vmem:[%s1862_s16 + $0xf0] sm:$0xff]  ;;  %v969_v20 = vld [vmem:[%s1862_s16 + $0xf8] sm:$0xff]  ;;  %v970_v22 = vld [vmem:[%s1862_s16 + $0x100] sm:$0xff] }
 0x13e   : >> { %v1469_v47 = vpop.eup %1468  ;;  %1488 = vtanh.f32 %v948_v44  ;;  %v971_v24 = vld [vmem:[%s1862_s16 + $0x108] sm:$0xff]  ;;  %v972_v26 = vld [vmem:[%s1862_s16 + $0x110] sm:$0xff]  ;;  %v973_v28 = vld [vmem:[%s1862_s16 + $0x118] sm:$0xff] }
 0x13f   : >> { %v1471_v49 = vpop.eup %1470  ;;  %1066 = vst [vmem:[%s1862_s16] sm:$0xff] %v1469_v47  ;;  %1490 = vtanh.f32 %v949_v45  ;;  %v974_v30 = vld [vmem:[%s1862_s16 + $0x120] sm:$0xff]  ;;  %v975_v32 = vld [vmem:[%s1862_s16 + $0x128] sm:$0xff]  ;;  %v976_v34 = vld [vmem:[%s1862_s16 + $0x130] sm:$0xff] }
 0x140   : >> { %v1473_v51 = vpop.eup %1472  ;;  %1067 = vst [vmem:[%s1862_s16 + $0x8] sm:$0xff] %v1471_v49  ;;  %1492 = vtanh.f32 %v950_v46  ;;  %v977_v36 = vld [vmem:[%s1862_s16 + $0x138] sm:$0xff]  ;;  %v978_v38 = vld [vmem:[%s1862_s16 + $0x140] sm:$0xff]  ;;  %v979_v40 = vld [vmem:[%s1862_s16 + $0x148] sm:$0xff] }
 0x141   : >> { %v1475_v53 = vpop.eup %1474  ;;  %1068 = vst [vmem:[%s1862_s16 + $0x10] sm:$0xff] %v1473_v51  ;;  %1494 = vtanh.f32 %v951_v48  ;;  %v980_v42 = vld [vmem:[%s1862_s16 + $0x150] sm:$0xff]  ;;  %v981_v44 = vld [vmem:[%s1862_s16 + $0x158] sm:$0xff]  ;;  %v982_v46 = vld [vmem:[%s1862_s16 + $0x160] sm:$0xff] }
 0x142   : >> { %v1477_v55 = vpop.eup %1476  ;;  %1069 = vst [vmem:[%s1862_s16 + $0x18] sm:$0xff] %v1475_v53  ;;  %1496 = vtanh.f32 %v952_v50  ;;  %v983_v48 = vld [vmem:[%s1862_s16 + $0x168] sm:$0xff]  ;;  %v984_v50 = vld [vmem:[%s1862_s16 + $0x170] sm:$0xff] }
 0x143   : >> { %v1479_v57 = vpop.eup %1478  ;;  %1070 = vst [vmem:[%s1862_s16 + $0x20] sm:$0xff] %v1477_v55  ;;  %1498 = vtanh.f32 %v953_v52  ;;  %v985_v52 = vld [vmem:[%s1862_s16 + $0x178] sm:$0xff] }
 0x144   : >> { %v1481_v59 = vpop.eup %1480  ;;  %1071 = vst [vmem:[%s1862_s16 + $0x28] sm:$0xff] %v1479_v57  ;;  %1500 = vtanh.f32 %v954_v54  ;;  %v986_v54 = vld [vmem:[%s1862_s16 + $0x180] sm:$0xff] }
 0x145   : >> { %v1483_v61 = vpop.eup %1482  ;;  %1072 = vst [vmem:[%s1862_s16 + $0x30] sm:$0xff] %v1481_v59  ;;  %1502 = vtanh.f32 %v955_v56  ;;  %v987_v56 = vld [vmem:[%s1862_s16 + $0x188] sm:$0xff] }
 0x146   : >> { %v1485_v63 = vpop.eup %1484  ;;  %1073 = vst [vmem:[%s1862_s16 + $0x38] sm:$0xff] %v1483_v61  ;;  %1504 = vtanh.f32 %v956_v58  ;;  %v988_v58 = vld [vmem:[%s1862_s16 + $0x190] sm:$0xff] }
 0x147   : >> { %v1487_v1 = vpop.eup %1486  ;;  %1074 = vst [vmem:[%s1862_s16 + $0x40] sm:$0xff] %v1485_v63  ;;  %1506 = vtanh.f32 %v957_v60  ;;  %v989_v60 = vld [vmem:[%s1862_s16 + $0x198] sm:$0xff] }
 0x148   : >> { %v1489_v3 = vpop.eup %1488  ;;  %1075 = vst [vmem:[%s1862_s16 + $0x48] sm:$0xff] %v1487_v1  ;;  %1508 = vtanh.f32 %v958_v62  ;;  %v990_v62 = vld [vmem:[%s1862_s16 + $0x1a0] sm:$0xff] }
 0x149   : >> { %v1491_v5 = vpop.eup %1490  ;;  %1076 = vst [vmem:[%s1862_s16 + $0x50] sm:$0xff] %v1489_v3  ;;  %1510 = vtanh.f32 %v959_v0  ;;  %v991_v0 = vld [vmem:[%s1862_s16 + $0x1a8] sm:$0xff] }
 0x14a   : >> { %v1493_v7 = vpop.eup %1492  ;;  %1077 = vst [vmem:[%s1862_s16 + $0x58] sm:$0xff] %v1491_v5  ;;  %1512 = vtanh.f32 %v960_v2  ;;  %v992_v2 = vld [vmem:[%s1862_s16 + $0x1b0] sm:$0xff] }
 0x14b   : >> { %v1495_v9 = vpop.eup %1494  ;;  %1078 = vst [vmem:[%s1862_s16 + $0x60] sm:$0xff] %v1493_v7  ;;  %1514 = vtanh.f32 %v961_v4  ;;  %v993_v4 = vld [vmem:[%s1862_s16 + $0x1b8] sm:$0xff] }
 0x14c   : >> { %v1497_v11 = vpop.eup %1496  ;;  %1079 = vst [vmem:[%s1862_s16 + $0x68] sm:$0xff] %v1495_v9  ;;  %1516 = vtanh.f32 %v962_v6  ;;  %v994_v6 = vld [vmem:[%s1862_s16 + $0x1c0] sm:$0xff] }
 0x14d   : >> { %v1499_v13 = vpop.eup %1498  ;;  %1080 = vst [vmem:[%s1862_s16 + $0x70] sm:$0xff] %v1497_v11  ;;  %1518 = vtanh.f32 %v963_v8  ;;  %v995_v8 = vld [vmem:[%s1862_s16 + $0x1c8] sm:$0xff] }
 0x14e   : >> { %v1501_v15 = vpop.eup %1500  ;;  %1081 = vst [vmem:[%s1862_s16 + $0x78] sm:$0xff] %v1499_v13  ;;  %1520 = vtanh.f32 %v964_v10  ;;  %v996_v10 = vld [vmem:[%s1862_s16 + $0x1d0] sm:$0xff] }
 0x14f   : >> { %v1503_v17 = vpop.eup %1502  ;;  %1082 = vst [vmem:[%s1862_s16 + $0x80] sm:$0xff] %v1501_v15  ;;  %1522 = vtanh.f32 %v965_v12  ;;  %v997_v12 = vld [vmem:[%s1862_s16 + $0x1d8] sm:$0xff] }
 0x150   : >> { %v1505_v19 = vpop.eup %1504  ;;  %1083 = vst [vmem:[%s1862_s16 + $0x88] sm:$0xff] %v1503_v17  ;;  %1524 = vtanh.f32 %v966_v14  ;;  %v998_v14 = vld [vmem:[%s1862_s16 + $0x1e0] sm:$0xff] }
 0x151   : >> { %v1507_v21 = vpop.eup %1506  ;;  %1084 = vst [vmem:[%s1862_s16 + $0x90] sm:$0xff] %v1505_v19  ;;  %1526 = vtanh.f32 %v967_v16  ;;  %v999_v16 = vld [vmem:[%s1862_s16 + $0x1e8] sm:$0xff] }
 0x152   : >> { %v1509_v23 = vpop.eup %1508  ;;  %1085 = vst [vmem:[%s1862_s16 + $0x98] sm:$0xff] %v1507_v21  ;;  %1528 = vtanh.f32 %v968_v18  ;;  %v1000_v18 = vld [vmem:[%s1862_s16 + $0x1f0] sm:$0xff] }
 0x153   : >> { %v1511_v25 = vpop.eup %1510  ;;  %1086 = vst [vmem:[%s1862_s16 + $0xa0] sm:$0xff] %v1509_v23  ;;  %1530 = vtanh.f32 %v969_v20  ;;  %v1001_v20 = vld [vmem:[%s1862_s16 + $0x1f8] sm:$0xff] }
 0x154   : >> { %v1513_v27 = vpop.eup %1512  ;;  %1087 = vst [vmem:[%s1862_s16 + $0xa8] sm:$0xff] %v1511_v25  ;;  %1532 = vtanh.f32 %v970_v22 }
 0x155   : >> { %v1515_v29 = vpop.eup %1514  ;;  %1088 = vst [vmem:[%s1862_s16 + $0xb0] sm:$0xff] %v1513_v27  ;;  %1534 = vtanh.f32 %v971_v24 }
 0x156   : >> { %v1517_v31 = vpop.eup %1516  ;;  %1089 = vst [vmem:[%s1862_s16 + $0xb8] sm:$0xff] %v1515_v29  ;;  %1536 = vtanh.f32 %v972_v26 }
 0x157   : >> { %v1519_v33 = vpop.eup %1518  ;;  %1090 = vst [vmem:[%s1862_s16 + $0xc0] sm:$0xff] %v1517_v31  ;;  %1538 = vtanh.f32 %v973_v28 }
 0x158   : >> { %v1521_v35 = vpop.eup %1520  ;;  %1091 = vst [vmem:[%s1862_s16 + $0xc8] sm:$0xff] %v1519_v33  ;;  %1540 = vtanh.f32 %v974_v30 }
 0x159   : >> { %v1523_v37 = vpop.eup %1522  ;;  %1092 = vst [vmem:[%s1862_s16 + $0xd0] sm:$0xff] %v1521_v35  ;;  %1542 = vtanh.f32 %v975_v32 }
 0x15a   : >> { %v1525_v39 = vpop.eup %1524  ;;  %1093 = vst [vmem:[%s1862_s16 + $0xd8] sm:$0xff] %v1523_v37  ;;  %1544 = vtanh.f32 %v976_v34 }
 0x15b   : >> { %v1527_v41 = vpop.eup %1526  ;;  %1094 = vst [vmem:[%s1862_s16 + $0xe0] sm:$0xff] %v1525_v39  ;;  %1546 = vtanh.f32 %v977_v36 }
 0x15c   : >> { %v1529_v43 = vpop.eup %1528  ;;  %1095 = vst [vmem:[%s1862_s16 + $0xe8] sm:$0xff] %v1527_v41  ;;  %1548 = vtanh.f32 %v978_v38 }
 0x15d   : >> { %v1531_v45 = vpop.eup %1530  ;;  %1096 = vst [vmem:[%s1862_s16 + $0xf0] sm:$0xff] %v1529_v43  ;;  %1550 = vtanh.f32 %v979_v40 }
 0x15e   : >> { %v1533_v47 = vpop.eup %1532  ;;  %1097 = vst [vmem:[%s1862_s16 + $0xf8] sm:$0xff] %v1531_v45  ;;  %1552 = vtanh.f32 %v980_v42 }
 0x15f   : >> { %v1535_v49 = vpop.eup %1534  ;;  %1098 = vst [vmem:[%s1862_s16 + $0x100] sm:$0xff] %v1533_v47  ;;  %1554 = vtanh.f32 %v981_v44 }
 0x160   : >> { %v1537_v51 = vpop.eup %1536  ;;  %1099 = vst [vmem:[%s1862_s16 + $0x108] sm:$0xff] %v1535_v49  ;;  %1556 = vtanh.f32 %v982_v46 }
 0x161   : >> { %v1539_v53 = vpop.eup %1538  ;;  %1100 = vst [vmem:[%s1862_s16 + $0x110] sm:$0xff] %v1537_v51  ;;  %1558 = vtanh.f32 %v983_v48 }
 0x162   : >> { %v1541_v55 = vpop.eup %1540  ;;  %1101 = vst [vmem:[%s1862_s16 + $0x118] sm:$0xff] %v1539_v53  ;;  %1560 = vtanh.f32 %v984_v50 }
 0x163   : >> { %v1543_v57 = vpop.eup %1542  ;;  %1102 = vst [vmem:[%s1862_s16 + $0x120] sm:$0xff] %v1541_v55  ;;  %1562 = vtanh.f32 %v985_v52 }
 0x164   : >> { %v1545_v59 = vpop.eup %1544  ;;  %1103 = vst [vmem:[%s1862_s16 + $0x128] sm:$0xff] %v1543_v57  ;;  %1564 = vtanh.f32 %v986_v54 }
 0x165   : >> { %v1547_v61 = vpop.eup %1546  ;;  %1104 = vst [vmem:[%s1862_s16 + $0x130] sm:$0xff] %v1545_v59  ;;  %1566 = vtanh.f32 %v987_v56 }
 0x166   : >> { %v1549_v63 = vpop.eup %1548  ;;  %1105 = vst [vmem:[%s1862_s16 + $0x138] sm:$0xff] %v1547_v61  ;;  %1568 = vtanh.f32 %v988_v58 }
 0x167   : >> { %v1551_v1 = vpop.eup %1550  ;;  %1106 = vst [vmem:[%s1862_s16 + $0x140] sm:$0xff] %v1549_v63  ;;  %1570 = vtanh.f32 %v989_v60 }
 0x168   : >> { %v1553_v3 = vpop.eup %1552  ;;  %1107 = vst [vmem:[%s1862_s16 + $0x148] sm:$0xff] %v1551_v1  ;;  %1572 = vtanh.f32 %v990_v62 }
 0x169   : >> { %v1555_v5 = vpop.eup %1554  ;;  %1108 = vst [vmem:[%s1862_s16 + $0x150] sm:$0xff] %v1553_v3  ;;  %1574 = vtanh.f32 %v991_v0 }
 0x16a   : >> { %v1557_v7 = vpop.eup %1556  ;;  %1109 = vst [vmem:[%s1862_s16 + $0x158] sm:$0xff] %v1555_v5  ;;  %1576 = vtanh.f32 %v992_v2 }
 0x16b   : >> { %v1559_v9 = vpop.eup %1558  ;;  %1110 = vst [vmem:[%s1862_s16 + $0x160] sm:$0xff] %v1557_v7  ;;  %1578 = vtanh.f32 %v993_v4 }
 0x16c   : >> { %v1561_v11 = vpop.eup %1560  ;;  %1111 = vst [vmem:[%s1862_s16 + $0x168] sm:$0xff] %v1559_v9  ;;  %1580 = vtanh.f32 %v994_v6 }
 0x16d   : >> { %v1563_v13 = vpop.eup %1562  ;;  %1112 = vst [vmem:[%s1862_s16 + $0x170] sm:$0xff] %v1561_v11  ;;  %1582 = vtanh.f32 %v995_v8 }
 0x16e   : >> { %v1565_v15 = vpop.eup %1564  ;;  %1113 = vst [vmem:[%s1862_s16 + $0x178] sm:$0xff] %v1563_v13  ;;  %1584 = vtanh.f32 %v996_v10 }
 0x16f   : >> { %v1567_v17 = vpop.eup %1566  ;;  %1114 = vst [vmem:[%s1862_s16 + $0x180] sm:$0xff] %v1565_v15  ;;  %1586 = vtanh.f32 %v997_v12 }
 0x170   : >> { %v1569_v19 = vpop.eup %1568  ;;  %1115 = vst [vmem:[%s1862_s16 + $0x188] sm:$0xff] %v1567_v17  ;;  %1588 = vtanh.f32 %v998_v14 }
 0x171   : >> { %v1571_v21 = vpop.eup %1570  ;;  %1116 = vst [vmem:[%s1862_s16 + $0x190] sm:$0xff] %v1569_v19  ;;  %1590 = vtanh.f32 %v999_v16 }
 0x172   : >> { %v1573_v22 = vpop.eup %1572  ;;  %1117 = vst [vmem:[%s1862_s16 + $0x198] sm:$0xff] %v1571_v21  ;;  %1592 = vtanh.f32 %v1000_v18 }
 0x173   : >> { %v1575_v23 = vpop.eup %1574  ;;  %1118 = vst [vmem:[%s1862_s16 + $0x1a0] sm:$0xff] %v1573_v22  ;;  %1594 = vtanh.f32 %v1001_v20 }
 0x174   : >> { %v1577_v24 = vpop.eup %1576  ;;  %1119 = vst [vmem:[%s1862_s16 + $0x1a8] sm:$0xff] %v1575_v23 }
 0x175   : >> { %v1579_v25 = vpop.eup %1578  ;;  %1120 = vst [vmem:[%s1862_s16 + $0x1b0] sm:$0xff] %v1577_v24 }
 0x176   : >> { %v1581_v26 = vpop.eup %1580  ;;  %1121 = vst [vmem:[%s1862_s16 + $0x1b8] sm:$0xff] %v1579_v25 }
 0x177   : >> { %v1583_v27 = vpop.eup %1582  ;;  %1122 = vst [vmem:[%s1862_s16 + $0x1c0] sm:$0xff] %v1581_v26 }
 0x178   : >> { %v1585_v28 = vpop.eup %1584  ;;  %1123 = vst [vmem:[%s1862_s16 + $0x1c8] sm:$0xff] %v1583_v27  ;;  %934 = sbr.rel (!%p932_p8) target bundleno = 301 (0x12d), region = 78 }
 0x179   : >> { %v1587_v29 = vpop.eup %1586  ;;  %1124 = vst [vmem:[%s1862_s16 + $0x1d0] sm:$0xff] %v1585_v28 }
 0x17a   : >> { %v1589_v30 = vpop.eup %1588  ;;  %1125 = vst [vmem:[%s1862_s16 + $0x1d8] sm:$0xff] %v1587_v29 }
 0x17b   : >> { %v1591_v31 = vpop.eup %1590  ;;  %1126 = vst [vmem:[%s1862_s16 + $0x1e0] sm:$0xff] %v1589_v30 }
 0x17c   : >> { %v1593_v32 = vpop.eup %1592  ;;  %1127 = vst [vmem:[%s1862_s16 + $0x1e8] sm:$0xff] %v1591_v31 }
 0x17d   : >> { %v1595_v33 = vpop.eup %1594  ;;  %1128 = vst [vmem:[%s1862_s16 + $0x1f0] sm:$0xff] %v1593_v32 }
 0x17e   : >> { %1129 = vst [vmem:[%s1862_s16 + $0x1f8] sm:$0xff] %v1595_v33 }
 0x17f PF: > { %s14_s19 = sadd.s32 1, %s1638_s19   ;;  %s2015_s15 = smov %s1630_s17 }
 0x180   : > { %p11_p9 = scmp.ge.s32.totalorder %s14_s19, 18   ;;  %s2016_s16 = smov %s1634_s18 }
 0x181   : > { %s2017_s17 = smov %s2020_s2  ;;  %s2018_s18 = smov %s2024_s3 }
 0x182   :  { %13 = sbr.rel (!%p11_p9) target bundleno = 3 (0x3), region = 89 }

</bundles_post_ra>
